<compile_context>
chip_gen: v5e
topology: v5e:2x2
jax: 0.10.0
libtpu: 0.0.40
codegen_flags: <defaults>
</compile_context>

<pallas_src>
import functools

import jax
import jax.numpy as jnp
from jax.experimental import pallas as pl
from jax.experimental.pallas import tpu as pltpu

BN_EPS = 1e-5
LANE = 128
SUBLANE = 8


def _round_up(x, m):
    return (x + m - 1) // m * m


def _pick_tile_h(h, w):
    """Largest divisor of H giving roughly <= 1024 output rows per tile."""
    target = max(1, 1024 // max(w, 1))
    th = min(h, target)
    while h % th != 0:
        th -= 1
    return th


# ---------------------------------------------------------------------------
# Kernels
# ---------------------------------------------------------------------------
def _conv_tile(xt_ref, xm_ref, xb_ref, w_ref, *, th, wo, cinp, cpad):
    """3x3 'same' conv of one (th x wo) spatial row-tile as 9 shifted matmuls.

    xt/xm/xb refs: (1, th, wo + 2, cinp) bf16 -- padded-input rows shifted by
    dy = 0 / 1 / 2.  w_ref: (3, 3, cinp, cpad) bf16.
    Returns the conv output tile, shape (th * wo, cpad), f32 (MXU accumulate).
    """
    w = w_ref[...]                                       # hoisted weight load
    acc = jnp.zeros((th * wo, cpad), jnp.float32)
    for dy, x_ref in enumerate((xt_ref, xm_ref, xb_ref)):
        x = x_ref[0]                                     # (th, wo + 2, cinp)
        for dx in range(3):
            lhs = x[:, dx:dx + wo, :].reshape(th * wo, cinp)   # bf16
            acc = acc + jnp.dot(lhs, w[dy, dx],
                                preferred_element_type=jnp.float32)
    return acc


def _stats_kernel(xt_ref, xm_ref, xb_ref, w_ref, stats_ref,
                  *, th, wo, cinp, cpad):
    """Pass 1: per-tile per-channel sum (row 0) and sum-of-squares (row 1)."""
    acc = _conv_tile(xt_ref, xm_ref, xb_ref, w_ref,
                     th=th, wo=wo, cinp=cinp, cpad=cpad)
    s = jnp.sum(acc, axis=0, keepdims=True)              # (1, cpad) f32
    ss = jnp.sum(acc * acc, axis=0, keepdims=True)       # (1, cpad) f32
    pad = jnp.zeros((SUBLANE - 2, cpad), jnp.float32)
    stats_ref[...] = jnp.concatenate([s, ss, pad], axis=0)


def _apply_kernel(xt_ref, xm_ref, xb_ref, w_ref, scale_ref, shift_ref, o_ref,
                  *, th, wo, cinp, cpad):
    """Pass 2: recompute conv tile, apply folded BN (scale/shift) + ReLU."""
    acc = _conv_tile(xt_ref, xm_ref, xb_ref, w_ref,
                     th=th, wo=wo, cinp=cinp, cpad=cpad)
    y = acc * scale_ref[...] + shift_ref[...]            # all f32
    o_ref[...] = jnp.maximum(y, 0.0)


# ---------------------------------------------------------------------------
# One Conv2DBlock: 3x3 'same' conv (no bias) + BatchNorm(train stats) + ReLU
# ---------------------------------------------------------------------------
def conv2d_block(x_nhwc, w_hwio, gamma, beta, *, tile_h=None):
    n, h, w, cin = x_nhwc.shape
    cout = w_hwio.shape[-1]
    cinp = _round_up(cin, SUBLANE)     # sublane-aligned contraction channels
    cpad = _round_up(cout, LANE)       # lane-dense output channels

    # TODO(synk): support W not a multiple of 8 by padding W inside the tile.
    assert w % SUBLANE == 0, "W must be a multiple of 8 for this kernel"
    th = tile_h if tile_h is not None else _pick_tile_h(h, w)
    assert h % th == 0, "tile_h must divide H"
    nh = h // th

    # Channel-pad, 'same' spatial pad, cast MXU operands to bf16.
    xp = jnp.pad(x_nhwc, ((0, 0), (1, 1), (1, 1), (0, cinp - cin)))
    xp = xp.astype(jnp.bfloat16)
    x_t = xp[:, 0:h]                   # dy = 0 rows   (n, h, w + 2, cinp)
    x_m = xp[:, 1:h + 1]               # dy = 1 rows
    x_b = xp[:, 2:h + 2]               # dy = 2 rows
    wp = jnp.pad(w_hwio, ((0, 0), (0, 0), (0, cinp - cin), (0, cpad - cout)))
    wp = wp.astype(jnp.bfloat16)

    x_spec = pl.BlockSpec((1, th, w + 2, cinp), lambda i, j: (i, j, 0, 0))
    w_spec = pl.BlockSpec((3, 3, cinp, cpad), lambda i, j: (0, 0, 0, 0))
    vec_spec = pl.BlockSpec((1, cpad), lambda i, j: (0, 0))
    cparams = pltpu.CompilerParams(
        dimension_semantics=("parallel", "parallel"))

    flops = 2 * n * h * w * (9 * cinp) * cpad
    in_bytes = 3 * n * h * (w + 2) * cinp * 2 + 9 * cinp * cpad * 2

    # ---- pass 1: per-tile channel sums / sums-of-squares --------------------
    stats = pl.pallas_call(
        functools.partial(_stats_kernel, th=th, wo=w, cinp=cinp, cpad=cpad),
        out_shape=jax.ShapeDtypeStruct((n * nh * SUBLANE, cpad), jnp.float32),
        grid=(n, nh),
        in_specs=[x_spec, x_spec, x_spec, w_spec],
        out_specs=pl.BlockSpec((SUBLANE, cpad), lambda i, j: (i * nh + j, 0)),
        compiler_params=cparams,
        cost_estimate=pl.CostEstimate(
            flops=flops, transcendentals=0,
            bytes_accessed=in_bytes + n * nh * SUBLANE * cpad * 4),
    )(x_t, x_m, x_b, wp)

    # ---- fold BN (biased batch stats) + affine into scale/shift (f32, tiny) -
    stats = stats.reshape(n * nh, SUBLANE, cpad)
    m_count = n * h * w
    mean = jnp.sum(stats[:, 0, :], axis=0) / m_count
    var = jnp.maximum(jnp.sum(stats[:, 1, :], axis=0) / m_count - mean * mean,
                      0.0)
    gamma_p = jnp.pad(gamma.astype(jnp.float32), (0, cpad - cout))
    beta_p = jnp.pad(beta.astype(jnp.float32), (0, cpad - cout))
    scale = gamma_p * jax.lax.rsqrt(var + BN_EPS)        # padded channels -> 0
    shift = beta_p - mean * scale
    scale = scale.reshape(1, cpad)
    shift = shift.reshape(1, cpad)

    # ---- pass 2: conv + normalize + ReLU, lane-dense (th*w, 128) tiles ------
    out = pl.pallas_call(
        functools.partial(_apply_kernel, th=th, wo=w, cinp=cinp, cpad=cpad),
        out_shape=jax.ShapeDtypeStruct((n * h * w, cpad), jnp.float32),
        grid=(n, nh),
        in_specs=[x_spec, x_spec, x_spec, w_spec, vec_spec, vec_spec],
        out_specs=pl.BlockSpec((th * w, cpad), lambda i, j: (i * nh + j, 0)),
        compiler_params=cparams,
        cost_estimate=pl.CostEstimate(
            flops=flops, transcendentals=0,
            bytes_accessed=in_bytes + n * h * w * cpad * 4 + 2 * cpad * 4),
    )(x_t, x_m, x_b, wp, scale, shift)

    return out.reshape(n, h, w, cpad)[..., :cout]


def double_2d_conv(x_nchw, params, *, tile_h=None):
    """Double2DConv forward.  Input/output are NCHW (PyTorch convention)."""
    x = jnp.transpose(x_nchw, (0, 2, 3, 1))                   # NCHW -> NHWC
    x = conv2d_block(x, params["w1"], params["gamma1"], params["beta1"],
                     tile_h=tile_h)
    x = conv2d_block(x, params["w2"], params["gamma2"], params["beta2"],
                     tile_h=tile_h)
    return jnp.transpose(x, (0, 3, 1, 2))                     # NHWC -> NCHW


# ---------------------------------------------------------------------------
# Pure-JAX reference (correctness check only; f32 end-to-end).
# ---------------------------------------------------------------------------
def _ref_block(x_nhwc, w_hwio, gamma, beta):
    y = jax.lax.conv_general_dilated(
        x_nhwc, w_hwio, window_strides=(1, 1), padding="SAME",
        dimension_numbers=("NHWC", "HWIO", "NHWC"),
        precision=jax.lax.Precision.HIGHEST)
    mean = y.mean(axis=(0, 1, 2), keepdims=True)
    var = ((y - mean) ** 2).mean(axis=(0, 1, 2), keepdims=True)
    y = (y - mean) * jax.lax.rsqrt(var + BN_EPS)
    y = y * gamma.reshape(1, 1, 1, -1) + beta.reshape(1, 1, 1, -1)
    return jnp.maximum(y, 0.0)


def _ref_double(x_nchw, params):
    x = jnp.transpose(x_nchw, (0, 2, 3, 1))
    x = _ref_block(x, params["w1"], params["gamma1"], params["beta1"])
    x = _ref_block(x, params["w2"], params["gamma2"], params["beta2"])
    return jnp.transpose(x, (0, 3, 1, 2))


if __name__ == "__main__":
    N, Cin, Cout, H, W = 2, 4, 8, 16, 16

    key = jax.random.PRNGKey(0)
    k = jax.random.split(key, 7)

    x = jax.random.normal(k[0], (N, Cin, H, W), jnp.float32)  # NCHW input

    params = {
        # conv_1: in_dim=4 -> out_dim=8 ; conv_2: 8 -> 8 ; HWIO weights.
        "w1": 0.2 * jax.random.normal(k[1], (3, 3, Cin, Cout), jnp.float32),
        "w2": 0.2 * jax.random.normal(k[2], (3, 3, Cout, Cout), jnp.float32),
        "gamma1": 1.0 + 0.1 * jax.random.normal(k[3], (Cout,), jnp.float32),
        "beta1": 0.1 * jax.random.normal(k[4], (Cout,), jnp.float32),
        "gamma2": 1.0 + 0.1 * jax.random.normal(k[5], (Cout,), jnp.float32),
        "beta2": 0.1 * jax.random.normal(k[6], (Cout,), jnp.float32),
    }

    # tile_h=8 exercises multiple H tiles (and the cross-tile BN reduction).
    fwd = jax.jit(functools.partial(double_2d_conv, tile_h=8))
    out = jax.block_until_ready(fwd(x, params))
    assert out.shape == (N, Cout, H, W), out.shape

    ref = jax.block_until_ready(_ref_double(x, params))
    # bf16 MXU operands (f32 accumulation) => slightly looser tolerance than
    # a pure-f32 comparison; BN/ReLU math is exact f32.
    max_err = float(jnp.max(jnp.abs(out - ref)))
    assert jnp.allclose(out, ref, rtol=3e-2, atol=3e-2), max_err

    print("KERNEL_OK")
</pallas_src>

<mosaic_0001>
module attributes {stable_mosaic.version = 11 : i64} {
  func.func @_apply_kernel(%arg0: i32, %arg1: i32, %arg2: memref<1x8x18x8xbf16, #tpu.memory_space<vmem>>, %arg3: memref<1x8x18x8xbf16, #tpu.memory_space<vmem>>, %arg4: memref<1x8x18x8xbf16, #tpu.memory_space<vmem>>, %arg5: memref<3x3x8x128xbf16, #tpu.memory_space<vmem>>, %arg6: memref<1x128xf32, #tpu.memory_space<vmem>>, %arg7: memref<1x128xf32, #tpu.memory_space<vmem>>, %arg8: memref<128x128xf32, #tpu.memory_space<vmem>>) attributes {dimension_semantics = [#tpu.dimension_semantics<parallel>, #tpu.dimension_semantics<parallel>], iteration_bounds = array<i64: 2, 2>, scalar_prefetch = 0 : i64, scratch_operands = 0 : i64, tpu.core_type = #tpu.core_type<tc>, window_params = [{transform_indices = @transform_0, window_bounds = array<i64: 1, 8, 18, 8>}, {transform_indices = @transform_1, window_bounds = array<i64: 1, 8, 18, 8>}, {transform_indices = @transform_2, window_bounds = array<i64: 1, 8, 18, 8>}, {pipeline_mode = #tpu.pipeline_mode<synchronous>, transform_indices = @transform_3, window_bounds = array<i64: 3, 3, 8, 128>}, {pipeline_mode = #tpu.pipeline_mode<synchronous>, transform_indices = @transform_4, window_bounds = array<i64: 1, 128>}, {pipeline_mode = #tpu.pipeline_mode<synchronous>, transform_indices = @transform_5, window_bounds = array<i64: 1, 128>}, {transform_indices = @transform_6, window_bounds = array<i64: 128, 128>}]} {
    %c0 = arith.constant 0 : index
    %c0_0 = arith.constant 0 : index
    %c0_1 = arith.constant 0 : index
    %c0_2 = arith.constant 0 : index
    %0 = vector.load %arg5[%c0, %c0_0, %c0_1, %c0_2] : memref<3x3x8x128xbf16, #tpu.memory_space<vmem>>, vector<3x3x8x128xbf16>
    %cst = arith.constant 0.000000e+00 : f32
    %1 = vector.broadcast %cst : f32 to vector<128x128xf32>
    %c0_3 = arith.constant 0 : index
    %c0_4 = arith.constant 0 : index
    %c0_5 = arith.constant 0 : index
    %c0_6 = arith.constant 0 : index
    %2 = vector.load %arg2[%c0_3, %c0_4, %c0_5, %c0_6] : memref<1x8x18x8xbf16, #tpu.memory_space<vmem>>, vector<1x8x18x8xbf16>
    %3 = vector.shape_cast %2 : vector<1x8x18x8xbf16> to vector<8x18x8xbf16>
    %4 = vector.extract_strided_slice %3 {offsets = [0, 0, 0], sizes = [8, 16, 8], strides = [1, 1, 1]} : vector<8x18x8xbf16> to vector<8x16x8xbf16>
    %5 = vector.shape_cast %4 : vector<8x16x8xbf16> to vector<128x8xbf16>
    %6 = vector.extract_strided_slice %0 {offsets = [0, 0, 0, 0], sizes = [1, 1, 8, 128], strides = [1, 1, 1, 1]} : vector<3x3x8x128xbf16> to vector<1x1x8x128xbf16>
    %7 = vector.shape_cast %6 : vector<1x1x8x128xbf16> to vector<8x128xbf16>
    %cst_7 = arith.constant dense<0.000000e+00> : vector<128x128xf32>
    %8 = tpu.matmul %5, %7, %cst_7 {dimension_numbers = #tpu.dot_dimension_numbers<[1], [0], [0], [1], [0, 0, 1, 1], [], []>} : vector<128x8xbf16>, vector<8x128xbf16>, vector<128x128xf32> -> vector<128x128xf32>
    %9 = arith.addf %1, %8 : vector<128x128xf32>
    %10 = vector.extract_strided_slice %3 {offsets = [0, 1, 0], sizes = [8, 16, 8], strides = [1, 1, 1]} : vector<8x18x8xbf16> to vector<8x16x8xbf16>
    %11 = vector.shape_cast %10 : vector<8x16x8xbf16> to vector<128x8xbf16>
    %12 = vector.extract_strided_slice %0 {offsets = [0, 1, 0, 0], sizes = [1, 1, 8, 128], strides = [1, 1, 1, 1]} : vector<3x3x8x128xbf16> to vector<1x1x8x128xbf16>
    %13 = vector.shape_cast %12 : vector<1x1x8x128xbf16> to vector<8x128xbf16>
    %cst_8 = arith.constant dense<0.000000e+00> : vector<128x128xf32>
    %14 = tpu.matmul %11, %13, %cst_8 {dimension_numbers = #tpu.dot_dimension_numbers<[1], [0], [0], [1], [0, 0, 1, 1], [], []>} : vector<128x8xbf16>, vector<8x128xbf16>, vector<128x128xf32> -> vector<128x128xf32>
    %15 = arith.addf %9, %14 : vector<128x128xf32>
    %16 = vector.extract_strided_slice %3 {offsets = [0, 2, 0], sizes = [8, 16, 8], strides = [1, 1, 1]} : vector<8x18x8xbf16> to vector<8x16x8xbf16>
    %17 = vector.shape_cast %16 : vector<8x16x8xbf16> to vector<128x8xbf16>
    %18 = vector.extract_strided_slice %0 {offsets = [0, 2, 0, 0], sizes = [1, 1, 8, 128], strides = [1, 1, 1, 1]} : vector<3x3x8x128xbf16> to vector<1x1x8x128xbf16>
    %19 = vector.shape_cast %18 : vector<1x1x8x128xbf16> to vector<8x128xbf16>
    %cst_9 = arith.constant dense<0.000000e+00> : vector<128x128xf32>
    %20 = tpu.matmul %17, %19, %cst_9 {dimension_numbers = #tpu.dot_dimension_numbers<[1], [0], [0], [1], [0, 0, 1, 1], [], []>} : vector<128x8xbf16>, vector<8x128xbf16>, vector<128x128xf32> -> vector<128x128xf32>
    %21 = arith.addf %15, %20 : vector<128x128xf32>
    %c0_10 = arith.constant 0 : index
    %c0_11 = arith.constant 0 : index
    %c0_12 = arith.constant 0 : index
    %c0_13 = arith.constant 0 : index
    %22 = vector.load %arg3[%c0_10, %c0_11, %c0_12, %c0_13] : memref<1x8x18x8xbf16, #tpu.memory_space<vmem>>, vector<1x8x18x8xbf16>
    %23 = vector.shape_cast %22 : vector<1x8x18x8xbf16> to vector<8x18x8xbf16>
    %24 = vector.extract_strided_slice %23 {offsets = [0, 0, 0], sizes = [8, 16, 8], strides = [1, 1, 1]} : vector<8x18x8xbf16> to vector<8x16x8xbf16>
    %25 = vector.shape_cast %24 : vector<8x16x8xbf16> to vector<128x8xbf16>
    %26 = vector.extract_strided_slice %0 {offsets = [1, 0, 0, 0], sizes = [1, 1, 8, 128], strides = [1, 1, 1, 1]} : vector<3x3x8x128xbf16> to vector<1x1x8x128xbf16>
    %27 = vector.shape_cast %26 : vector<1x1x8x128xbf16> to vector<8x128xbf16>
    %cst_14 = arith.constant dense<0.000000e+00> : vector<128x128xf32>
    %28 = tpu.matmul %25, %27, %cst_14 {dimension_numbers = #tpu.dot_dimension_numbers<[1], [0], [0], [1], [0, 0, 1, 1], [], []>} : vector<128x8xbf16>, vector<8x128xbf16>, vector<128x128xf32> -> vector<128x128xf32>
    %29 = arith.addf %21, %28 : vector<128x128xf32>
    %30 = vector.extract_strided_slice %23 {offsets = [0, 1, 0], sizes = [8, 16, 8], strides = [1, 1, 1]} : vector<8x18x8xbf16> to vector<8x16x8xbf16>
    %31 = vector.shape_cast %30 : vector<8x16x8xbf16> to vector<128x8xbf16>
    %32 = vector.extract_strided_slice %0 {offsets = [1, 1, 0, 0], sizes = [1, 1, 8, 128], strides = [1, 1, 1, 1]} : vector<3x3x8x128xbf16> to vector<1x1x8x128xbf16>
    %33 = vector.shape_cast %32 : vector<1x1x8x128xbf16> to vector<8x128xbf16>
    %cst_15 = arith.constant dense<0.000000e+00> : vector<128x128xf32>
    %34 = tpu.matmul %31, %33, %cst_15 {dimension_numbers = #tpu.dot_dimension_numbers<[1], [0], [0], [1], [0, 0, 1, 1], [], []>} : vector<128x8xbf16>, vector<8x128xbf16>, vector<128x128xf32> -> vector<128x128xf32>
    %35 = arith.addf %29, %34 : vector<128x128xf32>
    %36 = vector.extract_strided_slice %23 {offsets = [0, 2, 0], sizes = [8, 16, 8], strides = [1, 1, 1]} : vector<8x18x8xbf16> to vector<8x16x8xbf16>
    %37 = vector.shape_cast %36 : vector<8x16x8xbf16> to vector<128x8xbf16>
    %38 = vector.extract_strided_slice %0 {offsets = [1, 2, 0, 0], sizes = [1, 1, 8, 128], strides = [1, 1, 1, 1]} : vector<3x3x8x128xbf16> to vector<1x1x8x128xbf16>
    %39 = vector.shape_cast %38 : vector<1x1x8x128xbf16> to vector<8x128xbf16>
    %cst_16 = arith.constant dense<0.000000e+00> : vector<128x128xf32>
    %40 = tpu.matmul %37, %39, %cst_16 {dimension_numbers = #tpu.dot_dimension_numbers<[1], [0], [0], [1], [0, 0, 1, 1], [], []>} : vector<128x8xbf16>, vector<8x128xbf16>, vector<128x128xf32> -> vector<128x128xf32>
    %41 = arith.addf %35, %40 : vector<128x128xf32>
    %c0_17 = arith.constant 0 : index
    %c0_18 = arith.constant 0 : index
    %c0_19 = arith.constant 0 : index
    %c0_20 = arith.constant 0 : index
    %42 = vector.load %arg4[%c0_17, %c0_18, %c0_19, %c0_20] : memref<1x8x18x8xbf16, #tpu.memory_space<vmem>>, vector<1x8x18x8xbf16>
    %43 = vector.shape_cast %42 : vector<1x8x18x8xbf16> to vector<8x18x8xbf16>
    %44 = vector.extract_strided_slice %43 {offsets = [0, 0, 0], sizes = [8, 16, 8], strides = [1, 1, 1]} : vector<8x18x8xbf16> to vector<8x16x8xbf16>
    %45 = vector.shape_cast %44 : vector<8x16x8xbf16> to vector<128x8xbf16>
    %46 = vector.extract_strided_slice %0 {offsets = [2, 0, 0, 0], sizes = [1, 1, 8, 128], strides = [1, 1, 1, 1]} : vector<3x3x8x128xbf16> to vector<1x1x8x128xbf16>
    %47 = vector.shape_cast %46 : vector<1x1x8x128xbf16> to vector<8x128xbf16>
    %cst_21 = arith.constant dense<0.000000e+00> : vector<128x128xf32>
    %48 = tpu.matmul %45, %47, %cst_21 {dimension_numbers = #tpu.dot_dimension_numbers<[1], [0], [0], [1], [0, 0, 1, 1], [], []>} : vector<128x8xbf16>, vector<8x128xbf16>, vector<128x128xf32> -> vector<128x128xf32>
    %49 = arith.addf %41, %48 : vector<128x128xf32>
    %50 = vector.extract_strided_slice %43 {offsets = [0, 1, 0], sizes = [8, 16, 8], strides = [1, 1, 1]} : vector<8x18x8xbf16> to vector<8x16x8xbf16>
    %51 = vector.shape_cast %50 : vector<8x16x8xbf16> to vector<128x8xbf16>
    %52 = vector.extract_strided_slice %0 {offsets = [2, 1, 0, 0], sizes = [1, 1, 8, 128], strides = [1, 1, 1, 1]} : vector<3x3x8x128xbf16> to vector<1x1x8x128xbf16>
    %53 = vector.shape_cast %52 : vector<1x1x8x128xbf16> to vector<8x128xbf16>
    %cst_22 = arith.constant dense<0.000000e+00> : vector<128x128xf32>
    %54 = tpu.matmul %51, %53, %cst_22 {dimension_numbers = #tpu.dot_dimension_numbers<[1], [0], [0], [1], [0, 0, 1, 1], [], []>} : vector<128x8xbf16>, vector<8x128xbf16>, vector<128x128xf32> -> vector<128x128xf32>
    %55 = arith.addf %49, %54 : vector<128x128xf32>
    %56 = vector.extract_strided_slice %43 {offsets = [0, 2, 0], sizes = [8, 16, 8], strides = [1, 1, 1]} : vector<8x18x8xbf16> to vector<8x16x8xbf16>
    %57 = vector.shape_cast %56 : vector<8x16x8xbf16> to vector<128x8xbf16>
    %58 = vector.extract_strided_slice %0 {offsets = [2, 2, 0, 0], sizes = [1, 1, 8, 128], strides = [1, 1, 1, 1]} : vector<3x3x8x128xbf16> to vector<1x1x8x128xbf16>
    %59 = vector.shape_cast %58 : vector<1x1x8x128xbf16> to vector<8x128xbf16>
    %cst_23 = arith.constant dense<0.000000e+00> : vector<128x128xf32>
    %60 = tpu.matmul %57, %59, %cst_23 {dimension_numbers = #tpu.dot_dimension_numbers<[1], [0], [0], [1], [0, 0, 1, 1], [], []>} : vector<128x8xbf16>, vector<8x128xbf16>, vector<128x128xf32> -> vector<128x128xf32>
    %61 = arith.addf %55, %60 : vector<128x128xf32>
    %c0_24 = arith.constant 0 : index
    %c0_25 = arith.constant 0 : index
    %62 = vector.load %arg6[%c0_24, %c0_25] : memref<1x128xf32, #tpu.memory_space<vmem>>, vector<1x128xf32>
    %63 = vector.broadcast %62 : vector<1x128xf32> to vector<128x128xf32>
    %64 = arith.mulf %61, %63 : vector<128x128xf32>
    %c0_26 = arith.constant 0 : index
    %c0_27 = arith.constant 0 : index
    %65 = vector.load %arg7[%c0_26, %c0_27] : memref<1x128xf32, #tpu.memory_space<vmem>>, vector<1x128xf32>
    %66 = vector.broadcast %65 : vector<1x128xf32> to vector<128x128xf32>
    %67 = arith.addf %64, %66 : vector<128x128xf32>
    %cst_28 = arith.constant 0.000000e+00 : f32
    %68 = vector.broadcast %cst_28 : f32 to vector<128x128xf32>
    %69 = arith.maximumf %67, %68 : vector<128x128xf32>
    %c0_29 = arith.constant 0 : index
    %c0_30 = arith.constant 0 : index
    %70 = vector.load %arg8[%c0_29, %c0_30] : memref<128x128xf32, #tpu.memory_space<vmem>>, vector<128x128xf32>
    tpu.vector_store %arg8[%c0_29, %c0_30], %69 {strides = array<i32>} : memref<128x128xf32, #tpu.memory_space<vmem>>, vector<128x128xf32>,
    return
  }
  func.func @transform_0(%arg0: i32, %arg1: i32) -> (i32, i32, i32, i32) {
    %c0_i32 = arith.constant 0 : i32
    %c0_i32_0 = arith.constant 0 : i32
    %c0_i32_1 = arith.constant 0 : i32
    return %arg0, %arg1, %c0_i32, %c0_i32_0 : i32, i32, i32, i32
  }
  func.func @transform_1(%arg0: i32, %arg1: i32) -> (i32, i32, i32, i32) {
    %c0_i32 = arith.constant 0 : i32
    %c0_i32_0 = arith.constant 0 : i32
    %c0_i32_1 = arith.constant 0 : i32
    return %arg0, %arg1, %c0_i32, %c0_i32_0 : i32, i32, i32, i32
  }
  func.func @transform_2(%arg0: i32, %arg1: i32) -> (i32, i32, i32, i32) {
    %c0_i32 = arith.constant 0 : i32
    %c0_i32_0 = arith.constant 0 : i32
    %c0_i32_1 = arith.constant 0 : i32
    return %arg0, %arg1, %c0_i32, %c0_i32_0 : i32, i32, i32, i32
  }
  func.func @transform_3(%arg0: i32, %arg1: i32) -> (i32, i32, i32, i32) {
    %c0_i32 = arith.constant 0 : i32
    %c0_i32_0 = arith.constant 0 : i32
    %c0_i32_1 = arith.constant 0 : i32
    %c0_i32_2 = arith.constant 0 : i32
    %c0_i32_3 = arith.constant 0 : i32
    return %c0_i32, %c0_i32_0, %c0_i32_1, %c0_i32_2 : i32, i32, i32, i32
  }
  func.func @transform_4(%arg0: i32, %arg1: i32) -> (i32, i32) {
    %c0_i32 = arith.constant 0 : i32
    %c0_i32_0 = arith.constant 0 : i32
    %c0_i32_1 = arith.constant 0 : i32
    return %c0_i32, %c0_i32_0 : i32, i32
  }
  func.func @transform_5(%arg0: i32, %arg1: i32) -> (i32, i32) {
    %c0_i32 = arith.constant 0 : i32
    %c0_i32_0 = arith.constant 0 : i32
    %c0_i32_1 = arith.constant 0 : i32
    return %c0_i32, %c0_i32_0 : i32, i32
  }
  func.func @transform_6(%arg0: i32, %arg1: i32) -> (i32, i32) {
    %c2_i32 = arith.constant 2 : i32
    %0 = arith.muli %arg0, %c2_i32 : i32
    %1 = arith.addi %0, %arg1 : i32
    %c0_i32 = arith.constant 0 : i32
    %c0_i32_0 = arith.constant 0 : i32
    return %1, %c0_i32 : i32, i32
  }
}

module attributes {stable_mosaic.version = 11 : i64} {
  func.func @_stats_kernel(%arg0: i32, %arg1: i32, %arg2: memref<1x8x18x8xbf16, #tpu.memory_space<vmem>>, %arg3: memref<1x8x18x8xbf16, #tpu.memory_space<vmem>>, %arg4: memref<1x8x18x8xbf16, #tpu.memory_space<vmem>>, %arg5: memref<3x3x8x128xbf16, #tpu.memory_space<vmem>>, %arg6: memref<8x128xf32, #tpu.memory_space<vmem>>) attributes {dimension_semantics = [#tpu.dimension_semantics<parallel>, #tpu.dimension_semantics<parallel>], iteration_bounds = array<i64: 2, 2>, scalar_prefetch = 0 : i64, scratch_operands = 0 : i64, tpu.core_type = #tpu.core_type<tc>, window_params = [{transform_indices = @transform_0, window_bounds = array<i64: 1, 8, 18, 8>}, {transform_indices = @transform_1, window_bounds = array<i64: 1, 8, 18, 8>}, {transform_indices = @transform_2, window_bounds = array<i64: 1, 8, 18, 8>}, {pipeline_mode = #tpu.pipeline_mode<synchronous>, transform_indices = @transform_3, window_bounds = array<i64: 3, 3, 8, 128>}, {transform_indices = @transform_4, window_bounds = array<i64: 8, 128>}]} {
    %c0 = arith.constant 0 : index
    %c0_0 = arith.constant 0 : index
    %c0_1 = arith.constant 0 : index
    %c0_2 = arith.constant 0 : index
    %0 = vector.load %arg5[%c0, %c0_0, %c0_1, %c0_2] : memref<3x3x8x128xbf16, #tpu.memory_space<vmem>>, vector<3x3x8x128xbf16>
    %cst = arith.constant 0.000000e+00 : f32
    %1 = vector.broadcast %cst : f32 to vector<128x128xf32>
    %c0_3 = arith.constant 0 : index
    %c0_4 = arith.constant 0 : index
    %c0_5 = arith.constant 0 : index
    %c0_6 = arith.constant 0 : index
    %2 = vector.load %arg2[%c0_3, %c0_4, %c0_5, %c0_6] : memref<1x8x18x8xbf16, #tpu.memory_space<vmem>>, vector<1x8x18x8xbf16>
    %3 = vector.shape_cast %2 : vector<1x8x18x8xbf16> to vector<8x18x8xbf16>
    %4 = vector.extract_strided_slice %3 {offsets = [0, 0, 0], sizes = [8, 16, 8], strides = [1, 1, 1]} : vector<8x18x8xbf16> to vector<8x16x8xbf16>
    %5 = vector.shape_cast %4 : vector<8x16x8xbf16> to vector<128x8xbf16>
    %6 = vector.extract_strided_slice %0 {offsets = [0, 0, 0, 0], sizes = [1, 1, 8, 128], strides = [1, 1, 1, 1]} : vector<3x3x8x128xbf16> to vector<1x1x8x128xbf16>
    %7 = vector.shape_cast %6 : vector<1x1x8x128xbf16> to vector<8x128xbf16>
    %cst_7 = arith.constant dense<0.000000e+00> : vector<128x128xf32>
    %8 = tpu.matmul %5, %7, %cst_7 {dimension_numbers = #tpu.dot_dimension_numbers<[1], [0], [0], [1], [0, 0, 1, 1], [], []>} : vector<128x8xbf16>, vector<8x128xbf16>, vector<128x128xf32> -> vector<128x128xf32>
    %9 = arith.addf %1, %8 : vector<128x128xf32>
    %10 = vector.extract_strided_slice %3 {offsets = [0, 1, 0], sizes = [8, 16, 8], strides = [1, 1, 1]} : vector<8x18x8xbf16> to vector<8x16x8xbf16>
    %11 = vector.shape_cast %10 : vector<8x16x8xbf16> to vector<128x8xbf16>
    %12 = vector.extract_strided_slice %0 {offsets = [0, 1, 0, 0], sizes = [1, 1, 8, 128], strides = [1, 1, 1, 1]} : vector<3x3x8x128xbf16> to vector<1x1x8x128xbf16>
    %13 = vector.shape_cast %12 : vector<1x1x8x128xbf16> to vector<8x128xbf16>
    %cst_8 = arith.constant dense<0.000000e+00> : vector<128x128xf32>
    %14 = tpu.matmul %11, %13, %cst_8 {dimension_numbers = #tpu.dot_dimension_numbers<[1], [0], [0], [1], [0, 0, 1, 1], [], []>} : vector<128x8xbf16>, vector<8x128xbf16>, vector<128x128xf32> -> vector<128x128xf32>
    %15 = arith.addf %9, %14 : vector<128x128xf32>
    %16 = vector.extract_strided_slice %3 {offsets = [0, 2, 0], sizes = [8, 16, 8], strides = [1, 1, 1]} : vector<8x18x8xbf16> to vector<8x16x8xbf16>
    %17 = vector.shape_cast %16 : vector<8x16x8xbf16> to vector<128x8xbf16>
    %18 = vector.extract_strided_slice %0 {offsets = [0, 2, 0, 0], sizes = [1, 1, 8, 128], strides = [1, 1, 1, 1]} : vector<3x3x8x128xbf16> to vector<1x1x8x128xbf16>
    %19 = vector.shape_cast %18 : vector<1x1x8x128xbf16> to vector<8x128xbf16>
    %cst_9 = arith.constant dense<0.000000e+00> : vector<128x128xf32>
    %20 = tpu.matmul %17, %19, %cst_9 {dimension_numbers = #tpu.dot_dimension_numbers<[1], [0], [0], [1], [0, 0, 1, 1], [], []>} : vector<128x8xbf16>, vector<8x128xbf16>, vector<128x128xf32> -> vector<128x128xf32>
    %21 = arith.addf %15, %20 : vector<128x128xf32>
    %c0_10 = arith.constant 0 : index
    %c0_11 = arith.constant 0 : index
    %c0_12 = arith.constant 0 : index
    %c0_13 = arith.constant 0 : index
    %22 = vector.load %arg3[%c0_10, %c0_11, %c0_12, %c0_13] : memref<1x8x18x8xbf16, #tpu.memory_space<vmem>>, vector<1x8x18x8xbf16>
    %23 = vector.shape_cast %22 : vector<1x8x18x8xbf16> to vector<8x18x8xbf16>
    %24 = vector.extract_strided_slice %23 {offsets = [0, 0, 0], sizes = [8, 16, 8], strides = [1, 1, 1]} : vector<8x18x8xbf16> to vector<8x16x8xbf16>
    %25 = vector.shape_cast %24 : vector<8x16x8xbf16> to vector<128x8xbf16>
    %26 = vector.extract_strided_slice %0 {offsets = [1, 0, 0, 0], sizes = [1, 1, 8, 128], strides = [1, 1, 1, 1]} : vector<3x3x8x128xbf16> to vector<1x1x8x128xbf16>
    %27 = vector.shape_cast %26 : vector<1x1x8x128xbf16> to vector<8x128xbf16>
    %cst_14 = arith.constant dense<0.000000e+00> : vector<128x128xf32>
    %28 = tpu.matmul %25, %27, %cst_14 {dimension_numbers = #tpu.dot_dimension_numbers<[1], [0], [0], [1], [0, 0, 1, 1], [], []>} : vector<128x8xbf16>, vector<8x128xbf16>, vector<128x128xf32> -> vector<128x128xf32>
    %29 = arith.addf %21, %28 : vector<128x128xf32>
    %30 = vector.extract_strided_slice %23 {offsets = [0, 1, 0], sizes = [8, 16, 8], strides = [1, 1, 1]} : vector<8x18x8xbf16> to vector<8x16x8xbf16>
    %31 = vector.shape_cast %30 : vector<8x16x8xbf16> to vector<128x8xbf16>
    %32 = vector.extract_strided_slice %0 {offsets = [1, 1, 0, 0], sizes = [1, 1, 8, 128], strides = [1, 1, 1, 1]} : vector<3x3x8x128xbf16> to vector<1x1x8x128xbf16>
    %33 = vector.shape_cast %32 : vector<1x1x8x128xbf16> to vector<8x128xbf16>
    %cst_15 = arith.constant dense<0.000000e+00> : vector<128x128xf32>
    %34 = tpu.matmul %31, %33, %cst_15 {dimension_numbers = #tpu.dot_dimension_numbers<[1], [0], [0], [1], [0, 0, 1, 1], [], []>} : vector<128x8xbf16>, vector<8x128xbf16>, vector<128x128xf32> -> vector<128x128xf32>
    %35 = arith.addf %29, %34 : vector<128x128xf32>
    %36 = vector.extract_strided_slice %23 {offsets = [0, 2, 0], sizes = [8, 16, 8], strides = [1, 1, 1]} : vector<8x18x8xbf16> to vector<8x16x8xbf16>
    %37 = vector.shape_cast %36 : vector<8x16x8xbf16> to vector<128x8xbf16>
    %38 = vector.extract_strided_slice %0 {offsets = [1, 2, 0, 0], sizes = [1, 1, 8, 128], strides = [1, 1, 1, 1]} : vector<3x3x8x128xbf16> to vector<1x1x8x128xbf16>
    %39 = vector.shape_cast %38 : vector<1x1x8x128xbf16> to vector<8x128xbf16>
    %cst_16 = arith.constant dense<0.000000e+00> : vector<128x128xf32>
    %40 = tpu.matmul %37, %39, %cst_16 {dimension_numbers = #tpu.dot_dimension_numbers<[1], [0], [0], [1], [0, 0, 1, 1], [], []>} : vector<128x8xbf16>, vector<8x128xbf16>, vector<128x128xf32> -> vector<128x128xf32>
    %41 = arith.addf %35, %40 : vector<128x128xf32>
    %c0_17 = arith.constant 0 : index
    %c0_18 = arith.constant 0 : index
    %c0_19 = arith.constant 0 : index
    %c0_20 = arith.constant 0 : index
    %42 = vector.load %arg4[%c0_17, %c0_18, %c0_19, %c0_20] : memref<1x8x18x8xbf16, #tpu.memory_space<vmem>>, vector<1x8x18x8xbf16>
    %43 = vector.shape_cast %42 : vector<1x8x18x8xbf16> to vector<8x18x8xbf16>
    %44 = vector.extract_strided_slice %43 {offsets = [0, 0, 0], sizes = [8, 16, 8], strides = [1, 1, 1]} : vector<8x18x8xbf16> to vector<8x16x8xbf16>
    %45 = vector.shape_cast %44 : vector<8x16x8xbf16> to vector<128x8xbf16>
    %46 = vector.extract_strided_slice %0 {offsets = [2, 0, 0, 0], sizes = [1, 1, 8, 128], strides = [1, 1, 1, 1]} : vector<3x3x8x128xbf16> to vector<1x1x8x128xbf16>
    %47 = vector.shape_cast %46 : vector<1x1x8x128xbf16> to vector<8x128xbf16>
    %cst_21 = arith.constant dense<0.000000e+00> : vector<128x128xf32>
    %48 = tpu.matmul %45, %47, %cst_21 {dimension_numbers = #tpu.dot_dimension_numbers<[1], [0], [0], [1], [0, 0, 1, 1], [], []>} : vector<128x8xbf16>, vector<8x128xbf16>, vector<128x128xf32> -> vector<128x128xf32>
    %49 = arith.addf %41, %48 : vector<128x128xf32>
    %50 = vector.extract_strided_slice %43 {offsets = [0, 1, 0], sizes = [8, 16, 8], strides = [1, 1, 1]} : vector<8x18x8xbf16> to vector<8x16x8xbf16>
    %51 = vector.shape_cast %50 : vector<8x16x8xbf16> to vector<128x8xbf16>
    %52 = vector.extract_strided_slice %0 {offsets = [2, 1, 0, 0], sizes = [1, 1, 8, 128], strides = [1, 1, 1, 1]} : vector<3x3x8x128xbf16> to vector<1x1x8x128xbf16>
    %53 = vector.shape_cast %52 : vector<1x1x8x128xbf16> to vector<8x128xbf16>
    %cst_22 = arith.constant dense<0.000000e+00> : vector<128x128xf32>
    %54 = tpu.matmul %51, %53, %cst_22 {dimension_numbers = #tpu.dot_dimension_numbers<[1], [0], [0], [1], [0, 0, 1, 1], [], []>} : vector<128x8xbf16>, vector<8x128xbf16>, vector<128x128xf32> -> vector<128x128xf32>
    %55 = arith.addf %49, %54 : vector<128x128xf32>
    %56 = vector.extract_strided_slice %43 {offsets = [0, 2, 0], sizes = [8, 16, 8], strides = [1, 1, 1]} : vector<8x18x8xbf16> to vector<8x16x8xbf16>
    %57 = vector.shape_cast %56 : vector<8x16x8xbf16> to vector<128x8xbf16>
    %58 = vector.extract_strided_slice %0 {offsets = [2, 2, 0, 0], sizes = [1, 1, 8, 128], strides = [1, 1, 1, 1]} : vector<3x3x8x128xbf16> to vector<1x1x8x128xbf16>
    %59 = vector.shape_cast %58 : vector<1x1x8x128xbf16> to vector<8x128xbf16>
    %cst_23 = arith.constant dense<0.000000e+00> : vector<128x128xf32>
    %60 = tpu.matmul %57, %59, %cst_23 {dimension_numbers = #tpu.dot_dimension_numbers<[1], [0], [0], [1], [0, 0, 1, 1], [], []>} : vector<128x8xbf16>, vector<8x128xbf16>, vector<128x128xf32> -> vector<128x128xf32>
    %61 = arith.addf %55, %60 : vector<128x128xf32>
    %cst_24 = arith.constant dense<0.000000e+00> : vector<128xf32>
    %62 = vector.multi_reduction <add>, %61, %cst_24 [0] : vector<128x128xf32> to vector<128xf32>
    %63 = vector.shape_cast %62 : vector<128xf32> to vector<1x128xf32>
    %64 = arith.mulf %61, %61 : vector<128x128xf32>
    %cst_25 = arith.constant dense<0.000000e+00> : vector<128xf32>
    %65 = vector.multi_reduction <add>, %64, %cst_25 [0] : vector<128x128xf32> to vector<128xf32>
    %66 = vector.shape_cast %65 : vector<128xf32> to vector<1x128xf32>
    %cst_26 = arith.constant 0.000000e+00 : f32
    %67 = vector.broadcast %cst_26 : f32 to vector<6x128xf32>
    %68 = tpu.concatenate %63, %66, %67 in 0 : vector<1x128xf32>, vector<1x128xf32>, vector<6x128xf32> -> vector<8x128xf32>
    %c0_27 = arith.constant 0 : index
    %c0_28 = arith.constant 0 : index
    %69 = vector.load %arg6[%c0_27, %c0_28] : memref<8x128xf32, #tpu.memory_space<vmem>>, vector<8x128xf32>
    tpu.vector_store %arg6[%c0_27, %c0_28], %68 {strides = array<i32>} : memref<8x128xf32, #tpu.memory_space<vmem>>, vector<8x128xf32>,
    return
  }
  func.func @transform_0(%arg0: i32, %arg1: i32) -> (i32, i32, i32, i32) {
    %c0_i32 = arith.constant 0 : i32
    %c0_i32_0 = arith.constant 0 : i32
    %c0_i32_1 = arith.constant 0 : i32
    return %arg0, %arg1, %c0_i32, %c0_i32_0 : i32, i32, i32, i32
  }
  func.func @transform_1(%arg0: i32, %arg1: i32) -> (i32, i32, i32, i32) {
    %c0_i32 = arith.constant 0 : i32
    %c0_i32_0 = arith.constant 0 : i32
    %c0_i32_1 = arith.constant 0 : i32
    return %arg0, %arg1, %c0_i32, %c0_i32_0 : i32, i32, i32, i32
  }
  func.func @transform_2(%arg0: i32, %arg1: i32) -> (i32, i32, i32, i32) {
    %c0_i32 = arith.constant 0 : i32
    %c0_i32_0 = arith.constant 0 : i32
    %c0_i32_1 = arith.constant 0 : i32
    return %arg0, %arg1, %c0_i32, %c0_i32_0 : i32, i32, i32, i32
  }
  func.func @transform_3(%arg0: i32, %arg1: i32) -> (i32, i32, i32, i32) {
    %c0_i32 = arith.constant 0 : i32
    %c0_i32_0 = arith.constant 0 : i32
    %c0_i32_1 = arith.constant 0 : i32
    %c0_i32_2 = arith.constant 0 : i32
    %c0_i32_3 = arith.constant 0 : i32
    return %c0_i32, %c0_i32_0, %c0_i32_1, %c0_i32_2 : i32, i32, i32, i32
  }
  func.func @transform_4(%arg0: i32, %arg1: i32) -> (i32, i32) {
    %c2_i32 = arith.constant 2 : i32
    %0 = arith.muli %arg0, %c2_i32 : i32
    %1 = arith.addi %0, %arg1 : i32
    %c0_i32 = arith.constant 0 : i32
    %c0_i32_0 = arith.constant 0 : i32
    return %1, %c0_i32 : i32, i32
  }
}

</mosaic_0001>

<bundles_post_ra>
// kernel: double_2d_conv.4
= control target key start
LH: loop header
LB: loop body
LE: loop exit
PB: predicated region body
PF: predicated region fallthrough
CT: control target
= control target key end

     0   :  { %s2761_s15 = smov 0   ;;  %s2763_s16 = smov 0   ;;  %s3655_s0 = inlined_call_operand.vmem [shape: bf16[2,16,18,8], index: 0, kind: input, shape index: {}]   ;;  %s3656_s1 = inlined_call_operand.vmem [shape: bf16[2,16,18,8], index: 1, kind: input, shape index: {}]   ;;  %s3657_s2 = inlined_call_operand.vmem [shape: bf16[2,16,18,8], index: 2, kind: input, shape index: {}]   ;;  %s3658_s3 = inlined_call_operand.vmem [shape: bf16[3,3,8,128], index: 3, kind: input, shape index: {}]   ;;  %s3659_s4 = inlined_call_operand.vmem [shape: f32[32,128], index: 4, kind: output, shape index: {}]  }
   0x1   :  { %s2765_s17 = smov 0   ;;  %s2767_s18 = smov 0  }
   0x2   :  { %s2769_s19 = smov 0  }
   0x3 LB: > { %s23_s20 = sadd.s32 1, %s2726_s17  ;;  %s26_s21 = sadd.s32 1, %s2730_s18  ;;  %s2734_s19 = sphi %s2769_s19, %s14_s19   ;;  %s2730_s18 = sphi %s2767_s18, %s3671_s18   ;;  %s2726_s17 = sphi %s2765_s17, %s3670_s17   ;;  %s2722_s16 = sphi %s2763_s16, %s3669_s16   ;;  %s2718_s15 = sphi %s2761_s15, %s3668_s15  }
   0x4   : > { %p24_p0 = scmp.ge.s32.totalorder %s23_s20, 2  ;;  %p2424_p1 = scmp.ge.s32.totalorder %s2734_s19, 1 }
   0x5   : > { %p222_p2 = scmp.lt.s32.totalorder %s2734_s19, 5 }
   0x6   : > { %s3673_s20 = smov (%p24_p0, %s23_s20), 0  ;;  %s3675_s21 = smov (!%p24_p0, %s26_s21), %s2730_s18 }
   0x7   : > { %p223_p3 = pnand %p2424_p1, %p222_p2  ;;  %p28_p4 = scmp.ge.s32.totalorder %s3675_s21, 2 }
   0x9   : > { %s3677_s21 = smov (%p28_p4, %s3675_s21), 0  ;;  %226 = sbr.rel (%p223_p3) target bundleno = 485 (0x1e5), region = 36 }
   0xe   : > { %v317_v0 = vld [vmem:[%s3658_s3 + $0x4] sm:$0xf]  ;;  %vm593_vm0 = vcmask 1043456   ;;  %s2425_s24 = sshll.u32 %s2718_s15, 3  ;;  %p275_p5 = scmp.lt.s32.totalorder %s2722_s16, 1  ;;  %vm568_vm3 = vcmask 64512  }
   0xf   : > { %v595_v1 = vsel %vm593_vm0, %v317_v0, 0  ;;  %p277_p6 = scmp.lt.s32.totalorder %s2425_s24, 15  ;;  %v318_v2 = vld [vmem:[%s3658_s3 + $0x8] sm:$0xf]  ;;  %v319_v4 = vld [vmem:[%s3658_s3 + $0xc] sm:$0xf] }
  0x10   : > { %2651 = vmatpush.bf16.msra.mxu1 %v595_v1  ;;  %2652 = vmatpush.bf16.msra.mxu2 %v595_v1  ;;  %s276_s25 = scalar_select %p275_p5, %s2722_s16, 1  ;;  %v878_v3 = vsel %vm593_vm0, %v318_v2, 0  ;;  %v316_v5 = vld [vmem:[%s3658_s3] sm:$0xf]  ;;  %v320_v6 = vld [vmem:[%s3658_s3 + $0x10] sm:$0xf] }
  0x11   : > { %2653 = vmatpush.bf16.msra.mxu3 %v595_v1  ;;  %604 = vmatpush.bf16.msra.mxu0 %v595_v1  ;;  %s3679_s24 = smov (!%p277_p6, %s2425_s24), 15  ;;  %v1034_v7 = vsel %vm593_vm0, %v319_v4, 0  ;;  %v711_v8 = vsel %vm593_vm0, %v316_v5, 0  ;;  %v1342_v9 = vsel %vm593_vm0, %v320_v6, 0  ;;  %vm349_vm1 = vsmask.f32 3328 }
  0x12   : > { %s2655_s28 = smul.u32 48, %s276_s25  ;;  %vm350_vm2 = vsmask.f32 7440  ;;  %vm770_vm5 = vcmask 1042432   ;;  %vm771_vm6 = vcmask 1046532   ;;  %vm2291_vm8 = vcmask 1040384  }
  0x13   : > { %s2654_s29 = smul.u32 3, %s3679_s24  ;;  %vm2862_vm4 = vmor %vm349_vm1, %vm350_vm2  ;;  %vm2293_vm9 = vcmask 1041408  }
  0x14   : > { %887 = vmatpush.bf16.msrb.mxu2 %v878_v3  ;;  %720 = vmatpush.bf16.msrb.mxu1 %v711_v8  ;;  %vm3002_vm7 = vmor %vm770_vm5, %vm771_vm6 }
  0x15   : > { %s281_s10 = sadd.s32 %s2655_s28, %s2654_s29  ;;  %1043 = vmatpush.bf16.msrb.mxu3 %v1034_v7  ;;  %1351 = vmatpush.bf16.msrb.mxu0 %v1342_v9 }
  0x16   : > { %s2818_s11 = sshll.u32 %s281_s10, 2  ;;  %s2431_s10 = sshll.u32 %s2722_s16, 1 }
  0x17   : > { %s2824_s14 = scalar_lea.vmem %s3655_s0, %s2818_s11  ;;  %s2977_s24 = scalar_lea.vmem %s3656_s1, %s2818_s11 }
  0x18   : > { %v2827_v10 = vld [vmem:[%s2824_s14 + $0x18] sm:$0xf]  ;;  %v2830_v11 = vld [vmem:[%s2824_s14 + $0x1c] sm:$0xf]  ;;  %v2833_v12 = vld [vmem:[%s2824_s14 + $0x20] sm:$0x1]  ;;  %s3251_s9 = scalar_lea.vmem %s3657_s2, %s2818_s11  ;;  %s308_s11 = sadd.s32 %s2718_s15, %s2431_s10 }
  0x19   : > { %v401_v13 = vshrl.u32 %v2827_v10, 16  ;;  %v404_v14 = vshll.u32 %v2827_v10, 16  ;;  %v410_v15 = vshll.u32 %v2830_v11, 16  ;;  %v414_v16 = vshrl.u32 %v2830_v11, 16  ;;  %v2840_v17 = vld [vmem:[%s2824_s14 + $0x30] sm:$0xf] }
  0x1a   : > { %v420_v18 = vshll.u32 %v2833_v12, 16  ;;  %v2844_v19 = vld [vmem:[%s2824_s14 + $0x34] sm:$0xf]  ;;  %v2847_v20 = vld [vmem:[%s2824_s14 + $0x38] sm:$0x1]  ;;  %v449_v21 = vshrl.u32 %v2840_v17, 16 }
  0x1b   : > { %v403_v22 = vrot.slane %v401_v13, 4  ;;  %v406_v23 = vrot.slane %v404_v14, 5  ;;  %v412_v24 = vrot.slane %v410_v15, 5  ;;  %v416_v25 = vrot.slane %v414_v16, 4  ;;  %v2851_v26 = vld [vmem:[%s2824_s14 + $0x48] sm:$0xf] }
  0x1c   : > { %v422_v27 = vrot.slane %v420_v18, 5  ;;  %v451_v28 = vrot.slane %v449_v21, 4  ;;  %v452_v29 = vshll.u32 %v2840_v17, 16  ;;  %v458_v30 = vshll.u32 %v2844_v19, 16  ;;  %v2858_v35 = vld [vmem:[%s2824_s14 + $0x4c] sm:$0xf] }
  0x1d   : > { %v407_v31 = vor.u32 %v406_v23, %v403_v22  ;;  %v417_v32 = vor.u32 %v416_v25, %v412_v24  ;;  %v462_v33 = vshrl.u32 %v2844_v19, 16  ;;  %v468_v34 = vshll.u32 %v2847_v20, 16  ;;  %v2869_v46 = vld [vmem:[%s2824_s14 + $0x50] sm:$0x1]  ;;  %v2878_v54 = vld [vmem:[%s2824_s14] sm:$0xf] }
  0x1e   : > { %v454_v37 = vrot.slane %v452_v29, 5  ;;  %v460_v38 = vrot.slane %v458_v30, 5  ;;  %v497_v39 = vshrl.u32 %v2851_v26, 16  ;;  %v500_v40 = vshll.u32 %v2851_v26, 16  ;;  %v2884_v2 = vld [vmem:[%s2824_s14 + $0x4] sm:$0xf] }
  0x1f   : > { %v408_v41 = vrot.slane %v407_v31, 4  ;;  %v418_v42 = vrot.slane %v417_v32, 4  ;;  %v464_v43 = vrot.slane %v462_v33, 4  ;;  %v470_v44 = vrot.slane %v468_v34, 5  ;;  %v2890_v8 = vld [vmem:[%s2824_s14 + $0x8] sm:$0x1] }
  0x20   : > { %v455_v45 = vor.u32 %v454_v37, %v451_v28  ;;  %v499_v47 = vrot.slane %v497_v39, 4  ;;  %v502_v48 = vrot.slane %v500_v40, 5  ;;  %v506_v49 = vshll.u32 %v2858_v35, 16  ;;  %v2897_v16 = vld [vmem:[%s2824_s14 + $0x24] sm:$0xf]  ;;  %p309_p7 = scmp.lt.s32.totalorder %s308_s11, 3 }
  0x21   : > { %v413_v50 = vsel %vm2862_vm4, %v408_v41, %v412_v24  ;;  %v423_v51 = vsel %vm2862_vm4, %v418_v42, %v422_v27  ;;  %v465_v52 = vor.u32 %v464_v43, %v460_v38  ;;  %v510_v53 = vshrl.u32 %v2858_v35, 16  ;;  %v2904_v29 = vld [vmem:[%s2824_s14 + $0x28] sm:$0xf]  ;;  %v2909_v33 = vld [vmem:[%s2824_s14 + $0x2c] sm:$0x1] }
  0x22   : > { %v548_v55 = vunpack.c.l.b16 %v413_v50  ;;  %v549_v56 = vunpack.c.l.b16 %v423_v51  ;;  %v456_v57 = vrot.slane %v455_v45, 4  ;;  %v503_v58 = vor.u32 %v502_v48, %v499_v47  ;;  %v2915_v41 = vld [vmem:[%s2824_s14 + $0x3c] sm:$0xf]  ;;  %s3681_s11 = smov (!%p309_p7, %s308_s11), 3 }
  0x23   : > { %v466_v59 = vrot.slane %v465_v52, 4  ;;  %v508_v60 = vrot.slane %v506_v49, 5  ;;  %v512_v61 = vrot.slane %v510_v53, 4  ;;  %v516_v62 = vshll.u32 %v2869_v46, 16  ;;  %s2432_s12 = sshll.u32 %s3681_s11, 3 }
  0x24   : > { %v562_v63 = vpack.c.b16 %v549_v56, %v548_v55  ;;  %v461_v0 = vsel %vm2862_vm4, %v456_v57, %v460_v38  ;;  %v504_v1 = vrot.slane %v503_v58, 4  ;;  %v353_v3 = vshrl.u32 %v2878_v54, 16  ;;  %v2921_v55 = vld [vmem:[%s2824_s14 + $0x40] sm:$0xf]  ;;  %s312_s13 = scalar_lea.vmem %s3659_s4, %s2432_s12 }
  0x25   : > { %v471_v4 = vsel %vm2862_vm4, %v466_v59, %v470_v44  ;;  %v552_v5 = vunpack.c.l.b16 %v461_v0  ;;  %v513_v6 = vor.u32 %v512_v61, %v508_v60  ;;  %v518_v7 = vrot.slane %v516_v62, 5  ;;  %v2932_v62 = vld [vmem:[%s2824_s14 + $0x54] sm:$0xf] }
  0x26   : > { %2435 = vmatmul.msk.bf16.vlgmr.msra.gmra.mxu1 %vm568_vm3, %v562_v63  ;;  %v553_v9 = vunpack.c.l.b16 %v471_v4  ;;  %v509_v13 = vsel %vm2862_vm4, %v504_v1, %v508_v60  ;;  %v355_v14 = vrot.slane %v353_v3, 4  ;;  %v356_v15 = vshll.u32 %v2878_v54, 16  ;;  %v2928_v60 = vld [vmem:[%s2824_s14 + $0x44] sm:$0x1] }
  0x27   : > { %v514_v18 = vrot.slane %v513_v6, 4  ;;  %v556_v21 = vunpack.c.l.b16 %v509_v13  ;;  %v362_v22 = vshll.u32 %v2884_v2, 16  ;;  %v366_v23 = vshrl.u32 %v2884_v2, 16 }
  0x28   : > { %v564_v24 = vpack.c.b16 %v553_v9, %v552_v5  ;;  %v358_v25 = vrot.slane %v356_v15, 5  ;;  %v372_v27 = vshll.u32 %v2890_v8, 16  ;;  %v778_v28 = vrot.slane %v2890_v8, 5 }
  0x29   : > { %v519_v30 = vsel %vm2862_vm4, %v514_v18, %v518_v7  ;;  %v364_v31 = vrot.slane %v362_v22, 5  ;;  %v368_v32 = vrot.slane %v366_v23, 4  ;;  %v425_v34 = vshrl.u32 %v2897_v16, 16 }
  0x2a   : > { %2437 = vmatmul.msk.bf16.vlgmr.msra.gmra.mxu2 %vm568_vm3, %v564_v24  ;;  %v557_v37 = vunpack.c.l.b16 %v519_v30  ;;  %v359_v38 = vor.u32 %v358_v25, %v355_v14  ;;  %v374_v39 = vrot.slane %v372_v27, 5  ;;  %v428_v40 = vshll.u32 %v2897_v16, 16  ;;  %v2943_v24 = vld [vmem:[%s2824_s14 + $0x58] sm:$0xf]  ;;  %v2946_v25 = vld [vmem:[%s2824_s14 + $0x5c] sm:$0x1] }
  0x2b   : > { %v369_v42 = vor.u32 %v368_v32, %v364_v31  ;;  %v427_v43 = vrot.slane %v425_v34, 4  ;;  %v434_v44 = vshll.u32 %v2904_v29, 16  ;;  %v438_v45 = vshrl.u32 %v2904_v29, 16  ;;  %v2951_v34 = vld [vmem:[%s2824_s14 + $0xc] sm:$0xf] }
  0x2c   : > { %v566_v47 = vpack.c.b16 %v557_v37, %v556_v21  ;;  %v360_v48 = vrot.slane %v359_v38, 4  ;;  %v430_v49 = vrot.slane %v428_v40, 5  ;;  %v444_v50 = vshll.u32 %v2909_v33, 16 }
  0x2d   : > { %v370_v51 = vrot.slane %v369_v42, 4  ;;  %v436_v52 = vrot.slane %v434_v44, 5  ;;  %v440_v53 = vrot.slane %v438_v45, 4  ;;  %v473_v56 = vshrl.u32 %v2915_v41, 16 }
  0x2e   : > { %2439 = vmatmul.msk.bf16.vlgmr.msra.gmra.mxu3 %vm568_vm3, %v566_v47  ;;  %v365_v57 = vsel %vm2862_vm4, %v360_v48, %v364_v31  ;;  %v431_v58 = vor.u32 %v430_v49, %v427_v43  ;;  %v446_v59 = vrot.slane %v444_v50, 5  ;;  %v476_v61 = vshll.u32 %v2915_v41, 16  ;;  %v2961_v50 = vld [vmem:[%s2824_s14 + $0x10] sm:$0xf] }
  0x2f   : > { %v375_v63 = vsel %vm2862_vm4, %v370_v51, %v374_v39  ;;  %v544_v0 = vunpack.c.l.b16 %v365_v57  ;;  %v441_v1 = vor.u32 %v440_v53, %v436_v52  ;;  %v475_v3 = vrot.slane %v473_v56, 4 }
  0x30   : > { %v545_v4 = vunpack.c.l.b16 %v375_v63  ;;  %v432_v5 = vrot.slane %v431_v58, 4  ;;  %v478_v6 = vrot.slane %v476_v61, 5  ;;  %v482_v7 = vshll.u32 %v2921_v55, 16  ;;  %v2965_v58 = vld [vmem:[%s2824_s14 + $0x14] sm:$0x1] }
  0x31   : > { %v442_v9 = vrot.slane %v441_v1, 4  ;;  %v486_v13 = vshrl.u32 %v2921_v55, 16  ;;  %v492_v14 = vshll.u32 %v2928_v60, 16  ;;  %v521_v15 = vshrl.u32 %v2932_v62, 16 }
  0x32   : > { %v560_v18 = vpack.c.b16 %v545_v4, %v544_v0  ;;  %v437_v21 = vsel %vm2862_vm4, %v432_v5, %v436_v52  ;;  %v479_v22 = vor.u32 %v478_v6, %v475_v3  ;;  %v484_v23 = vrot.slane %v482_v7, 5 }
  0x33   : > { %v447_v27 = vsel %vm2862_vm4, %v442_v9, %v446_v59  ;;  %v550_v30 = vunpack.c.l.b16 %v437_v21  ;;  %v488_v31 = vrot.slane %v486_v13, 4  ;;  %v494_v32 = vrot.slane %v492_v14, 5 }
  0x34   : > { %2433 = vmatmul.msk.bf16.vlgmr.msra.gmra.mxu0 %vm568_vm3, %v560_v18  ;;  %v551_v37 = vunpack.c.l.b16 %v447_v27  ;;  %v480_v38 = vrot.slane %v479_v22, 4  ;;  %v523_v39 = vrot.slane %v521_v15, 4  ;;  %v524_v40 = vshll.u32 %v2932_v62, 16 }
  0x35   : > { %v489_v42 = vor.u32 %v488_v31, %v484_v23  ;;  %v530_v43 = vshll.u32 %v2943_v24, 16  ;;  %v534_v44 = vshrl.u32 %v2943_v24, 16  ;;  %v540_v45 = vshll.u32 %v2946_v25, 16  ;;  %v2986_v31 = vld [vmem:[%s2977_s24] sm:$0xf] }
  0x36   : > { %v563_v47 = vpack.c.b16 %v551_v37, %v550_v30  ;;  %v485_v48 = vsel %vm2862_vm4, %v480_v38, %v484_v23  ;;  %v526_v49 = vrot.slane %v524_v40, 5  ;;  %v377_v51 = vshrl.u32 %v2951_v34, 16  ;;  %v322_v30 = vld [vmem:[%s3658_s3 + $0x18] sm:$0xf] }
  0x37   : > { %v490_v52 = vrot.slane %v489_v42, 4  ;;  %v554_v53 = vunpack.c.l.b16 %v485_v48  ;;  %v532_v56 = vrot.slane %v530_v43, 5  ;;  %v536_v57 = vrot.slane %v534_v44, 4 }
  0x38   : > { %2436 = vmatmul.msk.bf16.gmra.mxu1 %vm568_vm3, %v563_v47  ;;  %v527_v59 = vor.u32 %v526_v49, %v523_v39  ;;  %v542_v61 = vrot.slane %v540_v45, 5  ;;  %v379_v63 = vrot.slane %v377_v51, 4  ;;  %v380_v0 = vshll.u32 %v2951_v34, 16  ;;  %v2995_v47 = vld [vmem:[%s2977_s24 + $0x4] sm:$0xf] }
  0x39   : > { %v495_v1 = vsel %vm2862_vm4, %v490_v52, %v494_v32  ;;  %v537_v3 = vor.u32 %v536_v57, %v532_v56  ;;  %v386_v4 = vshll.u32 %v2961_v50, 16  ;;  %v390_v5 = vshrl.u32 %v2961_v50, 16 }
  0x3a   : > { %v555_v6 = vunpack.c.l.b16 %v495_v1  ;;  %v528_v7 = vrot.slane %v527_v59, 4  ;;  %v382_v9 = vrot.slane %v380_v0, 5  ;;  %v396_v13 = vshll.u32 %v2965_v58, 16 }
  0x3b   : > { %v538_v14 = vrot.slane %v537_v3, 4  ;;  %v388_v15 = vrot.slane %v386_v4, 5  ;;  %v392_v18 = vrot.slane %v390_v5, 4  ;;  %v2481_v42 = vrot.slane %v2878_v54, 9  ;;  %v321_v3 = vld [vmem:[%s3658_s3 + $0x14] sm:$0xf] }
  0x3c   : > { %v565_v21 = vpack.c.b16 %v555_v6, %v554_v53  ;;  %v533_v22 = vsel %vm2862_vm4, %v528_v7, %v532_v56  ;;  %v383_v23 = vor.u32 %v382_v9, %v379_v63  ;;  %v398_v27 = vrot.slane %v396_v13, 5  ;;  %v324_v9 = vld [vmem:[%s3658_s3 + $0x20] sm:$0xf] }
  0x3d   : > { %v543_v32 = vsel %vm2862_vm4, %v538_v14, %v542_v61  ;;  %v558_v37 = vunpack.c.l.b16 %v533_v22  ;;  %v393_v38 = vor.u32 %v392_v18, %v388_v15  ;;  %v775_v43 = vrot.slane %v2884_v2, 5  ;;  %v3007_v2 = vld [vmem:[%s2977_s24 + $0x8] sm:$0x1]  ;;  %v323_v61 = vld [vmem:[%s3658_s3 + $0x1c] sm:$0xf]  ;;  %v2627_v14 = vld [vmem:[%s2824_s14] sm:$0xff] }
  0x3e   : > { %2438 = vmatmul.msk.bf16.gmra.mxu2 %vm568_vm3, %v565_v21  ;;  %v559_v39 = vunpack.c.l.b16 %v543_v32  ;;  %v384_v40 = vrot.slane %v383_v23, 4  ;;  %v1678_v45 = vsel %vm593_vm0, %v322_v30, 0  ;;  %v1102_v48 = vshrl.u32 %v2986_v31, 16 }
  0x3f   : > { %v394_v44 = vrot.slane %v393_v38, 4  ;;  %v1105_v49 = vshll.u32 %v2986_v31, 16  ;;  %v777_v54 = vrot.slane %v775_v43, 4  ;;  %1687 = vmatpush.bf16.msra.mxu2 %v1678_v45  ;;  %v1111_v1 = vshll.u32 %v2995_v47, 16  ;;  %v3036_v38 = vld [vmem:[%s2977_s24 + $0xc] sm:$0xf] }
  0x40   : > { %v567_v51 = vpack.c.b16 %v559_v39, %v558_v37  ;;  %v389_v52 = vsel %vm2862_vm4, %v384_v40, %v388_v15  ;;  %v1104_v59 = vrot.slane %v1102_v48, 4  ;;  %v776_v4 = vsel %vm3002_vm7, %v2481_v42, %v775_v43  ;;  %v3040_v39 = vld [vmem:[%s2977_s24 + $0x10] sm:$0xf] }
  0x41   : > { %v399_v56 = vsel %vm2862_vm4, %v394_v44, %v398_v27  ;;  %v546_v57 = vunpack.c.l.b16 %v389_v52  ;;  %v1107_v0 = vrot.slane %v1105_v49, 5  ;;  %v779_v5 = vsel %vm3002_vm7, %v777_v54, %v778_v28 }
  0x42   : > { %2440 = vmatmul.msk.bf16.gmra.mxu3 %vm568_vm3, %v567_v51  ;;  %v547_v63 = vunpack.c.l.b16 %v399_v56  ;;  %v1115_v6 = vshrl.u32 %v2995_v47, 16  ;;  %v1121_v7 = vshll.u32 %v3007_v2, 16  ;;  %v1113_v18 = vrot.slane %v1111_v1, 5 }
  0x43   : > { %v1108_v15 = vor.u32 %v1107_v0, %v1104_v59  ;;  %v1986_v21 = vsel %vm593_vm0, %v323_v61, 0  ;;  %v1522_v28 = vsel %vm593_vm0, %v321_v3, 0  ;;  %v829_v22 = vunpack.c.l.b16 %v776_v4  ;;  %v2635_v0 = vld [vmem:[%s2977_s24] sm:$0xff] }
  0x44   : > { %v561_v13 = vpack.c.b16 %v547_v63, %v546_v57  ;;  %v1117_v8 = vrot.slane %v1115_v6, 4  ;;  %1995 = vmatpush.bf16.msra.mxu3 %v1986_v21  ;;  %v830_v23 = vunpack.c.l.b16 %v779_v5  ;;  %1531 = vmatpush.bf16.msra.mxu1 %v1522_v28  ;;  %v2166_v30 = vsel %vm593_vm0, %v324_v9, 0 }
  0x45   : > { %v1109_v27 = vrot.slane %v1108_v15, 4  ;;  %v1123_v37 = vrot.slane %v1121_v7, 5  ;;  %2175 = vmatpush.bf16.msra.mxu0 %v2166_v30  ;;  %v782_v42 = vrot.slane %v2961_v50, 5  ;;  %v1126_v45 = vshrl.u32 %v3036_v38, 16  ;;  %v3074_v30 = vld [vmem:[%s2977_s24 + $0x18] sm:$0xf] }
  0x46   : > { %2434 = vmatmul.msk.bf16.gmra.mxu0 %vm568_vm3, %v561_v13  ;;  %v1118_v32 = vor.u32 %v1117_v8, %v1113_v18  ;;  %v845_v43 = vpack.c.b16 %v830_v23, %v829_v22  ;;  %v1129_v48 = vshll.u32 %v3036_v38, 16  ;;  %v1135_v51 = vshll.u32 %v3040_v39, 16  ;;  %v2628_v8 = vld [vmem:[%s2824_s14 + $0xc] sm:$0xff] }
  0x47   : > { %v1114_v44 = vsel %vm2862_vm4, %v1109_v27, %v1113_v18  ;;  %v1139_v52 = vshrl.u32 %v3040_v39, 16  ;;  %v2483_v54 = vrot.slane %v2827_v10, 9  ;;  %v2482_v50 = vrot.slane %v2951_v34, 9 }
  0x48   : > { %2473 = vmatmul.msk.bf16.vlgmr.msrb.gmra.mxu1 %vm568_vm3, %v2627_v14  ;;  %v1119_v40 = vrot.slane %v1118_v32, 4  ;;  %v789_v56 = vrot.slane %v2830_v11, 5  ;;  %v1293_v57 = vunpack.c.l.b16 %v1114_v44  ;;  %v784_v59 = vrot.slane %v782_v42, 4  ;;  %v3061_v11 = vld [vmem:[%s2977_s24 + $0x14] sm:$0x1] }
  0x49   : > { %v785_v61 = vrot.slane %v2965_v58, 5  ;;  %v792_v63 = vrot.slane %v2833_v12, 5  ;;  %v1128_v3 = vrot.slane %v1126_v45, 4  ;;  %v1131_v4 = vrot.slane %v1129_v48, 5 }
  0x4a   : > { %v1124_v49 = vsel %vm2862_vm4, %v1119_v40, %v1123_v37  ;;  %v790_v10 = vsel %vm3002_vm7, %v2483_v54, %v789_v56  ;;  %v1137_v5 = vrot.slane %v1135_v51, 5  ;;  %v1141_v34 = vrot.slane %v1139_v52, 4  ;;  %v3078_v40 = vld [vmem:[%s2977_s24 + $0x1c] sm:$0xf] }
  0x4b   : > { %v1294_v1 = vunpack.c.l.b16 %v1124_v49  ;;  %v791_v6 = vrot.slane %v789_v56, 4  ;;  %v833_v7 = vunpack.c.l.b16 %v790_v10  ;;  %v783_v12 = vsel %vm3002_vm7, %v2482_v50, %v782_v42 }
  0x4c   : > { %v786_v13 = vsel %vm3002_vm7, %v784_v59, %v785_v61  ;;  %v1132_v14 = vor.u32 %v1131_v4, %v1128_v3  ;;  %v1142_v18 = vor.u32 %v1141_v34, %v1137_v5  ;;  %v1145_v21 = vshll.u32 %v3061_v11, 16  ;;  %v2636_v59 = vld [vmem:[%s2977_s24 + $0xc] sm:$0xff] }
  0x4d   : > { %v793_v58 = vsel %vm3002_vm7, %v791_v6, %v792_v63  ;;  %v1309_v9 = vpack.c.b16 %v1294_v1, %v1293_v57  ;;  %v831_v22 = vunpack.c.l.b16 %v783_v12  ;;  %v832_v23 = vunpack.c.l.b16 %v786_v13  ;;  %v3108_v13 = vld [vmem:[%s2977_s24 + $0x28] sm:$0xf] }
  0x4e   : > { %2489 = vmatmul.msk.bf16.vlgmr.msrb.gmra.mxu2 %vm568_vm3, %v845_v43  ;;  %v834_v15 = vunpack.c.l.b16 %v793_v58  ;;  %v1133_v27 = vrot.slane %v1132_v14, 4  ;;  %v1143_v32 = vrot.slane %v1142_v18, 4  ;;  %v1147_v37 = vrot.slane %v1145_v21, 5  ;;  %v2629_v58 = vld [vmem:[%s2824_s14 + $0x18] sm:$0xff] }
  0x4f   : > { %v2484_v42 = vrot.slane %v2897_v16, 9  ;;  %v796_v43 = vrot.slane %v2904_v29, 5  ;;  %v846_v44 = vpack.c.b16 %v832_v23, %v831_v22  ;;  %v1150_v45 = vshrl.u32 %v3074_v30, 16 }
  0x50   : > { %v847_v28 = vpack.c.b16 %v834_v15, %v833_v7  ;;  %v799_v48 = vrot.slane %v2909_v33, 5  ;;  %v1138_v49 = vsel %vm2862_vm4, %v1133_v27, %v1137_v5  ;;  %v1153_v51 = vshll.u32 %v3074_v30, 16  ;;  %v3098_v5 = vld [vmem:[%s2977_s24 + $0x20] sm:$0x1] }
  0x51   : > { %v797_v52 = vsel %vm3002_vm7, %v2484_v42, %v796_v43  ;;  %v798_v54 = vrot.slane %v796_v43, 4  ;;  %v1148_v16 = vsel %vm2862_vm4, %v1143_v32, %v1147_v37  ;;  %v1159_v29 = vshll.u32 %v3078_v40, 16 }
  0x52   : > { %2529 = vmatmul.msk.bf16.vlgmr.msrb.gmra.mxu3 %vm568_vm3, %v2635_v0  ;;  %v1163_v50 = vshrl.u32 %v3078_v40, 16  ;;  %v835_v56 = vunpack.c.l.b16 %v797_v52  ;;  %v1295_v61 = vunpack.c.l.b16 %v1138_v49  ;;  %v1296_v63 = vunpack.c.l.b16 %v1148_v16 }
  0x53   : > { %v800_v33 = vsel %vm3002_vm7, %v798_v54, %v799_v48  ;;  %v1152_v0 = vrot.slane %v1150_v45, 4  ;;  %v1155_v1 = vrot.slane %v1153_v51, 5  ;;  %v1161_v3 = vrot.slane %v1159_v29, 5  ;;  %v2637_v45 = vld [vmem:[%s2977_s24 + $0x18] sm:$0xff]  ;;  %v3122_v51 = vld [vmem:[%s2977_s24 + $0x2c] sm:$0x1] }
  0x54   : > { %v836_v57 = vunpack.c.l.b16 %v800_v33  ;;  %v1165_v4 = vrot.slane %v1163_v50, 4  ;;  %v1310_v34 = vpack.c.b16 %v1296_v63, %v1295_v61  ;;  %v1169_v12 = vshll.u32 %v3098_v5, 16  ;;  %v2630_v50 = vld [vmem:[%s2824_s14 + $0x24] sm:$0xff] }
  0x55   : > { %v1156_v6 = vor.u32 %v1155_v1, %v1152_v0  ;;  %v1183_v22 = vshll.u32 %v3108_v13, 16  ;;  %v1187_v23 = vshrl.u32 %v3108_v13, 16  ;;  %v1193_v16 = vshll.u32 %v3122_v51, 16 }
  0x56   : > { %2537 = vmatmul.msk.bf16.vlgmr.msrb.gmra.mxu0 %vm568_vm3, %v1309_v9  ;;  %v848_v10 = vpack.c.b16 %v836_v57, %v835_v56  ;;  %v1166_v7 = vor.u32 %v1165_v4, %v1161_v3  ;;  %v3105_v9 = vld [vmem:[%s2977_s24 + $0x24] sm:$0xf]  ;;  %v1171_v18 = vrot.slane %v1169_v12, 5  ;;  %v2485_v12 = vrot.slane %v2840_v17, 9 }
  0x57   : > { %v1157_v14 = vrot.slane %v1156_v6, 4  ;;  %v1174_v21 = vshrl.u32 %v3105_v9, 16  ;;  %v1185_v43 = vrot.slane %v1183_v22, 5  ;;  %v1195_v57 = vrot.slane %v1193_v16, 5 }
  0x58   : > { %2474 = vmatmul.msk.bf16.gmra.mxu1 %vm568_vm3, %v2628_v8  ;;  %v1167_v15 = vrot.slane %v1166_v7, 4  ;;  %v1177_v8 = vshll.u32 %v3105_v9, 16  ;;  %v806_v22 = vrot.slane %v2847_v20, 5 }
  0x59   : > { %v1162_v27 = vsel %vm2862_vm4, %v1157_v14, %v1161_v3  ;;  %v1176_v37 = vrot.slane %v1174_v21, 4 }
  0x5a   : > { %v1172_v32 = vsel %vm2862_vm4, %v1167_v15, %v1171_v18  ;;  %v1179_v42 = vrot.slane %v1177_v8, 5  ;;  %v1297_v48 = vunpack.c.l.b16 %v1162_v27 }
  0x5b   : > { %v1298_v49 = vunpack.c.l.b16 %v1172_v32 }
  0x5c   : > { %v1180_v52 = vor.u32 %v1179_v42, %v1176_v37  ;;  %v2631_v42 = vld [vmem:[%s2824_s14 + $0x30] sm:$0xff] }
  0x5d   : > { %v1311_v29 = vpack.c.b16 %v1298_v49, %v1297_v48  ;;  %v3161_v49 = vld [vmem:[%s2977_s24 + $0x3c] sm:$0xf] }
  0x5e   : > { %2490 = vmatmul.msk.bf16.gmra.mxu2 %vm568_vm3, %v846_v44  ;;  %v1189_v44 = vrot.slane %v1187_v23, 4  ;;  %v1181_v56 = vrot.slane %v1180_v52, 4  ;;  %v3149_v23 = vld [vmem:[%s2977_s24 + $0x38] sm:$0x1]  ;;  %v3164_v52 = vld [vmem:[%s2977_s24 + $0x40] sm:$0xf] }
  0x5f   : > { %v1217_v32 = vshll.u32 %v3149_v23, 16 }
  0x60   : > { %v1190_v54 = vor.u32 %v1189_v44, %v1185_v43  ;;  %v1186_v61 = vsel %vm2862_vm4, %v1181_v56, %v1185_v43  ;;  %v1222_v56 = vshrl.u32 %v3161_v49, 16 }
  0x61   : > { %v1299_v6 = vunpack.c.l.b16 %v1186_v61  ;;  %v1219_v48 = vrot.slane %v1217_v32, 5  ;;  %v1235_v61 = vshrl.u32 %v3164_v52, 16 }
  0x62   : > { %2530 = vmatmul.msk.bf16.gmra.mxu3 %vm568_vm3, %v2636_v59  ;;  %v1191_v33 = vrot.slane %v1190_v54, 4  ;;  %v3132_v59 = vld [vmem:[%s2977_s24 + $0x34] sm:$0xf] }
  0x63   : > { %v1207_v3 = vshll.u32 %v3132_v59, 16  ;;  %v1211_v4 = vshrl.u32 %v3132_v59, 16 }
  0x64   : > { %v1196_v63 = vsel %vm2862_vm4, %v1191_v33, %v1195_v57  ;;  %v1225_v33 = vshll.u32 %v3161_v49, 16  ;;  %v1231_v57 = vshll.u32 %v3164_v52, 16 }
  0x65   : > { %v1300_v7 = vunpack.c.l.b16 %v1196_v63  ;;  %v1209_v18 = vrot.slane %v1207_v3, 5  ;;  %v1213_v21 = vrot.slane %v1211_v4, 4  ;;  %v2486_v3 = vrot.slane %v2915_v41, 9 }
  0x66   : > { %2538 = vmatmul.msk.bf16.gmra.mxu0 %vm568_vm3, %v1310_v34  ;;  %v803_v34 = vrot.slane %v2844_v19, 5 }
  0x67   : > { %v1312_v27 = vpack.c.b16 %v1300_v7, %v1299_v6  ;;  %v1227_v6 = vrot.slane %v1225_v33, 5  ;;  %v1233_v7 = vrot.slane %v1231_v57, 5 }
  0x68   : > { %2475 = vmatmul.msk.bf16.gmra.mxu1 %vm568_vm3, %v2629_v58  ;;  %v2638_v58 = vld [vmem:[%s2977_s24 + $0x24] sm:$0xff]  ;;  %v805_v8 = vrot.slane %v803_v34, 4  ;;  %v804_v17 = vsel %vm3002_vm7, %v2485_v12, %v803_v34  ;;  %v1224_v34 = vrot.slane %v1222_v56, 4  ;;  %v1237_v12 = vrot.slane %v1235_v61, 4  ;;  %v2640_v56 = vld [vmem:[%s2977_s24 + $0x3c] sm:$0xff] }
  0x69   : > { %v837_v43 = vunpack.c.l.b16 %v804_v17  ;;  %v3191_v17 = vld [vmem:[%s2977_s24 + $0x48] sm:$0xf] }
  0x6a   : > { %v807_v37 = vsel %vm3002_vm7, %v805_v8, %v806_v22  ;;  %v2632_v8 = vld [vmem:[%s2824_s14 + $0x3c] sm:$0xff] }
  0x6b   : > { %v838_v20 = vunpack.c.l.b16 %v807_v37  ;;  %v3194_v37 = vld [vmem:[%s2977_s24 + $0x4c] sm:$0xf] }
  0x6d   : > { %v849_v54 = vpack.c.b16 %v838_v20, %v837_v43  ;;  %v1249_v43 = vshll.u32 %v3191_v17, 16 }
  0x6e   : > { %2491 = vmatmul.msk.bf16.gmra.mxu2 %vm568_vm3, %v847_v28  ;;  %v3129_v28 = vld [vmem:[%s2977_s24 + $0x30] sm:$0xf] }
  0x6f   : > { %v1198_v0 = vshrl.u32 %v3129_v28, 16  ;;  %v1201_v1 = vshll.u32 %v3129_v28, 16 }
  0x71   : > { %v1200_v14 = vrot.slane %v1198_v0, 4  ;;  %v1203_v15 = vrot.slane %v1201_v1, 5  ;;  %v2639_v0 = vld [vmem:[%s2977_s24 + $0x30] sm:$0xff] }
  0x72   : > { %2531 = vmatmul.msk.bf16.gmra.mxu3 %vm568_vm3, %v2637_v45 }
  0x73   : > { %v1204_v19 = vor.u32 %v1203_v15, %v1200_v14 }
  0x75   : > { %v1205_v44 = vrot.slane %v1204_v19, 4 }
  0x76   : > { %2539 = vmatmul.msk.bf16.gmra.mxu0 %vm568_vm3, %v1311_v29 }
  0x77   : > { %v1210_v16 = vsel %vm2862_vm4, %v1205_v44, %v1209_v18  ;;  %v1255_v44 = vshll.u32 %v3194_v37, 16 }
  0x78   : > { %2476 = vmatmul.msk.bf16.gmra.mxu1 %vm568_vm3, %v2630_v50  ;;  %v810_v50 = vrot.slane %v2921_v55, 5  ;;  %v1301_v63 = vunpack.c.l.b16 %v1210_v16  ;;  %v813_v55 = vrot.slane %v2928_v60, 5  ;;  %v1259_v16 = vshrl.u32 %v3194_v37, 16 }
  0x79   : > { %v1257_v61 = vrot.slane %v1255_v44, 5 }
  0x7a   : > { %v812_v4 = vrot.slane %v810_v50, 4  ;;  %v811_v15 = vsel %vm3002_vm7, %v2486_v3, %v810_v50  ;;  %v1251_v50 = vrot.slane %v1249_v43, 5  ;;  %v1261_v3 = vrot.slane %v1259_v16, 4 }
  0x7b   : > { %v839_v22 = vunpack.c.l.b16 %v811_v15 }
  0x7c   : > { %v814_v41 = vsel %vm3002_vm7, %v812_v4, %v813_v55  ;;  %v3211_v4 = vld [vmem:[%s2977_s24 + $0x50] sm:$0x1] }
  0x7e   : > { %2492 = vmatmul.msk.bf16.gmra.mxu2 %vm568_vm3, %v848_v10  ;;  %v1214_v10 = vor.u32 %v1213_v21, %v1209_v18  ;;  %v1228_v18 = vor.u32 %v1227_v6, %v1224_v34  ;;  %v1238_v21 = vor.u32 %v1237_v12, %v1233_v7  ;;  %v2633_v12 = vld [vmem:[%s2824_s14 + $0x48] sm:$0xff] }
  0x80   : > { %v1215_v45 = vrot.slane %v1214_v10, 4  ;;  %v1229_v19 = vrot.slane %v1228_v18, 4  ;;  %v1239_v10 = vrot.slane %v1238_v21, 4 }
  0x82   : > { %2532 = vmatmul.msk.bf16.gmra.mxu3 %vm568_vm3, %v2638_v58  ;;  %v1220_v29 = vsel %vm2862_vm4, %v1215_v45, %v1219_v48  ;;  %v3180_v58 = vld [vmem:[%s2977_s24 + $0x44] sm:$0x1]  ;;  %v1234_v45 = vsel %vm2862_vm4, %v1229_v19, %v1233_v7  ;;  %v1262_v7 = vor.u32 %v1261_v3, %v1257_v61 }
  0x83   : > { %v1302_v1 = vunpack.c.l.b16 %v1220_v29  ;;  %v1241_v60 = vshll.u32 %v3180_v58, 16  ;;  %v1303_v33 = vunpack.c.l.b16 %v1234_v45 }
  0x84   : > { %v1263_v18 = vrot.slane %v1262_v7, 4  ;;  %v3270_v7 = vld [vmem:[%s3251_s9 + $0x4] sm:$0xf] }
  0x85   : > { %v1313_v14 = vpack.c.b16 %v1302_v1, %v1301_v63  ;;  %v1243_v32 = vrot.slane %v1241_v60, 5  ;;  %v2487_v63 = vrot.slane %v2851_v26, 9  ;;  %v820_v1 = vrot.slane %v2869_v46, 5  ;;  %v3224_v60 = vld [vmem:[%s2977_s24 + $0x54] sm:$0xf] }
  0x86   : > { %2540 = vmatmul.msk.bf16.gmra.mxu0 %vm568_vm3, %v1312_v27  ;;  %v840_v27 = vunpack.c.l.b16 %v814_v41  ;;  %v1265_v46 = vshll.u32 %v3211_v4, 16  ;;  %v1270_v19 = vshrl.u32 %v3224_v60, 16 }
  0x87   : > { %v1244_v48 = vsel %vm2862_vm4, %v1239_v10, %v1243_v32  ;;  %v1273_v10 = vshll.u32 %v3224_v60, 16 }
  0x88   : > { %2477 = vmatmul.msk.bf16.gmra.mxu1 %vm568_vm3, %v2631_v42  ;;  %v1246_v42 = vshrl.u32 %v3191_v17, 16  ;;  %v850_v20 = vpack.c.b16 %v840_v27, %v839_v22  ;;  %v1304_v57 = vunpack.c.l.b16 %v1244_v48  ;;  %v1267_v21 = vrot.slane %v1265_v46, 5  ;;  %v2634_v46 = vld [vmem:[%s2824_s14 + $0x54] sm:$0xff] }
  0x8a   : > { %v1248_v29 = vrot.slane %v1246_v42, 4  ;;  %v1314_v55 = vpack.c.b16 %v1304_v57, %v1303_v33  ;;  %v1268_v42 = vsel %vm2862_vm4, %v1263_v18, %v1267_v21  ;;  %v2488_v33 = vrot.slane %v2932_v62, 9 }
  0x8b   : > { %v1306_v16 = vunpack.c.l.b16 %v1268_v42 }
  0x8e   : > { %2493 = vmatmul.msk.bf16.gmra.mxu2 %vm568_vm3, %v849_v54  ;;  %v817_v54 = vrot.slane %v2858_v35, 5  ;;  %v1252_v35 = vor.u32 %v1251_v50, %v1248_v29  ;;  %v1272_v29 = vrot.slane %v1270_v19, 4  ;;  %v1275_v50 = vrot.slane %v1273_v10, 5 }
  0x90   : > { %v818_v6 = vsel %vm3002_vm7, %v2487_v63, %v817_v54  ;;  %v1276_v3 = vor.u32 %v1275_v50, %v1272_v29 }
  0x91   : > { %v841_v15 = vunpack.c.l.b16 %v818_v6 }
  0x92   : > { %2533 = vmatmul.msk.bf16.gmra.mxu3 %vm568_vm3, %v2639_v0  ;;  %v819_v0 = vrot.slane %v817_v54, 4  ;;  %v2641_v54 = vld [vmem:[%s2977_s24 + $0x48] sm:$0xff]  ;;  %v1277_v10 = vrot.slane %v1276_v3, 4 }
  0x94   : > { %v821_v26 = vsel %vm3002_vm7, %v819_v0, %v820_v1 }
  0x95   : > { %v842_v41 = vunpack.c.l.b16 %v821_v26 }
  0x96   : > { %2541 = vmatmul.msk.bf16.gmra.mxu0 %vm568_vm3, %v1313_v14  ;;  %v1253_v14 = vrot.slane %v1252_v35, 4  ;;  %v3262_v35 = vld [vmem:[%s3251_s9] sm:$0xf] }
  0x97   : > { %v851_v27 = vpack.c.b16 %v842_v41, %v841_v15  ;;  %v1746_v15 = vshrl.u32 %v3262_v35, 16  ;;  %v1749_v41 = vshll.u32 %v3262_v35, 16 }
  0x98   : > { %2478 = vmatmul.msk.bf16.gmra.mxu1 %vm568_vm3, %v2632_v8  ;;  %v3227_v8 = vld [vmem:[%s2977_s24 + $0x58] sm:$0xf]  ;;  %v1258_v22 = vsel %vm2862_vm4, %v1253_v14, %v1257_v61  ;;  %v827_v61 = vrot.slane %v2946_v25, 5  ;;  %v1419_v14 = vrot.slane %v2995_v47, 5  ;;  %v1422_v47 = vrot.slane %v3007_v2, 5 }
  0x99   : > { %v1279_v32 = vshll.u32 %v3227_v8, 16  ;;  %v1283_v44 = vshrl.u32 %v3227_v8, 16  ;;  %v1305_v45 = vunpack.c.l.b16 %v1258_v22  ;;  %v1755_v22 = vshll.u32 %v3270_v7, 16 }
  0x9b   : > { %v1285_v63 = vrot.slane %v1283_v44, 4  ;;  %v1315_v62 = vpack.c.b16 %v1306_v16, %v1305_v45  ;;  %v2545_v44 = vrot.slane %v2986_v31, 9  ;;  %v1421_v45 = vrot.slane %v1419_v14, 4 }
  0x9c   : > { %v1751_v16 = vrot.slane %v1749_v41, 5  ;;  %v1757_v50 = vrot.slane %v1755_v22, 5 }
  0x9d   : > { %v1420_v31 = vsel %vm3002_vm7, %v2545_v44, %v1419_v14  ;;  %v1423_v3 = vsel %vm3002_vm7, %v1421_v45, %v1422_v47  ;;  %v3310_v47 = vld [vmem:[%s3251_s9 + $0xc] sm:$0xf]  ;;  %v3313_v44 = vld [vmem:[%s3251_s9 + $0x10] sm:$0xf] }
  0x9e   : > { %2494 = vmatmul.msk.bf16.gmra.mxu2 %vm568_vm3, %v850_v20  ;;  %v824_v20 = vrot.slane %v2943_v24, 5  ;;  %v3254_v24 = vld [vmem:[%s2977_s24 + $0x5c] sm:$0x1]  ;;  %v1474_v41 = vunpack.c.l.b16 %v1423_v3  ;;  %v1770_v3 = vshrl.u32 %v3310_v47, 16 }
  0x9f   : > { %v1289_v26 = vshll.u32 %v3254_v24, 16 }
  0xa0   : > { %v826_v57 = vrot.slane %v824_v20, 4  ;;  %v825_v25 = vsel %vm3002_vm7, %v2488_v33, %v824_v20 }
  0xa1   : > { %v843_v18 = vunpack.c.l.b16 %v825_v25  ;;  %v1291_v42 = vrot.slane %v1289_v26, 5 }
  0xa2   : > { %2534 = vmatmul.msk.bf16.gmra.mxu3 %vm568_vm3, %v2640_v56  ;;  %v1281_v56 = vrot.slane %v1279_v32, 5 }
  0xa3   : > { %v3214_v34 = vpop.f32.mrf.mxu1 }
  0xa4   : > { %v1286_v6 = vor.u32 %v1285_v63, %v1281_v56  ;;  %v1591_v63 = vld [vmem:[%s3251_s9 + $0x8] sm:$0x1] }
  0xa6   : > { %2542 = vmatmul.msk.bf16.gmra.mxu0 %vm568_vm3, %v1314_v55  ;;  %v828_v55 = vsel %vm3002_vm7, %v826_v57, %v827_v61  ;;  %v1287_v32 = vrot.slane %v1286_v6, 4  ;;  %v1282_v61 = vsel %vm2862_vm4, %v1277_v10, %v1281_v56  ;;  %v2063_v10 = vrot.slane %v3270_v7, 5 }
  0xa7   : > { %v844_v21 = vunpack.c.l.b16 %v828_v55  ;;  %v2642_v55 = vld [vmem:[%s2977_s24 + $0x54] sm:$0xff]  ;;  %v1307_v6 = vunpack.c.l.b16 %v1282_v61 }
  0xa8   : > { %2479 = vmatmul.msk.bf16.gmra.mxu1 %vm568_vm3, %v2633_v12  ;;  %v1292_v2 = vsel %vm2862_vm4, %v1287_v32, %v1291_v42 }
  0xa9   : > { %v852_v29 = vpack.c.b16 %v844_v21, %v843_v18  ;;  %v1308_v56 = vunpack.c.l.b16 %v1292_v2  ;;  %v2065_v2 = vrot.slane %v2063_v10, 4 }
  0xab   : > { %v3237_v43 = vpop.f32.mrf.mxu1  ;;  %v1316_v14 = vpack.c.b16 %v1308_v56, %v1307_v6  ;;  %v1429_v6 = vrot.slane %v3061_v11, 5  ;;  %v2643_v56 = vld [vmem:[%s3251_s9] sm:$0xff] }
  0xad   : > { %v3241_v48 = vpop.f32.mrf.mxu2 }
  0xae   : > { %2495 = vmatmul.msk.bf16.gmra.mxu2 %vm568_vm3, %v851_v27  ;;  %v1759_v27 = vshrl.u32 %v3270_v7, 16 }
  0xb0   : > { %v1761_v33 = vrot.slane %v1759_v27, 4 }
  0xb1   : > { %v3256_v0 = vpop.f32.mrf.mxu0  ;;  %v3258_v1 = vpop.f32.mrf.mxu3 }
  0xb2   : > { %2535 = vmatmul.msk.bf16.gmra.mxu3 %vm568_vm3, %v2641_v54  ;;  %v1748_v54 = vrot.slane %v1746_v15, 4  ;;  %v1762_v26 = vor.u32 %v1761_v33, %v1757_v50  ;;  %v1473_v15 = vunpack.c.l.b16 %v1420_v31  ;;  %v1426_v33 = vrot.slane %v3040_v39, 5 }
  0xb3   : > { %v2066_v31 = vrot.slane %v1591_v63, 5 }
  0xb4   : > { %v1752_v25 = vor.u32 %v1751_v16, %v1748_v54  ;;  %v1763_v22 = vrot.slane %v1762_v26, 4  ;;  %v1489_v42 = vpack.c.b16 %v1474_v41, %v1473_v15 }
  0xb5   : > { %v3273_v12 = vpop.f32.mrf.mxu1  ;;  %v3281_v19 = vpop.f32.mrf.mxu2  ;;  %v2067_v15 = vsel %vm3002_vm7, %v2065_v2, %v2066_v31 }
  0xb6   : > { %2543 = vmatmul.msk.bf16.gmra.mxu0 %vm568_vm3, %v1315_v62  ;;  %v1753_v21 = vrot.slane %v1752_v25, 4  ;;  %v1773_v25 = vshll.u32 %v3310_v47, 16 }
  0xb8   : > { %2480 = vmatmul.msk.bf16.gmra.mxu1 %vm568_vm3, %v2634_v46  ;;  %v1765_v46 = vshll.u32 %v1591_v63, 16  ;;  %v1758_v16 = vsel %vm2862_vm4, %v1753_v21, %v1757_v50  ;;  %v1779_v50 = vshll.u32 %v3313_v44, 16  ;;  %v1772_v21 = vrot.slane %v1770_v3, 4 }
  0xb9   : > { %v3285_v20 = vpop.f32.mrf.mxu0  ;;  %v3288_v57 = vpop.f32.mrf.mxu3  ;;  %v1937_v63 = vunpack.c.l.b16 %v1758_v16 }
  0xba   : > { %v1767_v27 = vrot.slane %v1765_v46, 5 }
  0xbc   : > { %v1768_v61 = vsel %vm2862_vm4, %v1763_v22, %v1767_v27  ;;  %v1781_v22 = vrot.slane %v1779_v50, 5 }
  0xbd   : > { %v3295_v62 = vpop.f32.mrf.mxu1  ;;  %v1938_v26 = vunpack.c.l.b16 %v1768_v61  ;;  %v2118_v61 = vunpack.c.l.b16 %v2067_v15  ;;  %v2610_v15 = vrot.slane %v3310_v47, 9 }
  0xbe   : > { %2496 = vmatmul.msk.bf16.gmra.mxu2 %vm568_vm3, %v852_v29  ;;  %v2609_v29 = vrot.slane %v3262_v35, 9  ;;  %v1783_v35 = vshrl.u32 %v3313_v44, 16 }
  0xbf   : > { %v1953_v16 = vpack.c.b16 %v1938_v26, %v1937_v63 }
  0xc0   : > { %v2064_v46 = vsel %vm3002_vm7, %v2609_v29, %v2063_v10  ;;  %v1785_v27 = vrot.slane %v1783_v35, 4 }
  0xc1   : > { %v3303_v18 = vpop.f32.mrf.mxu2  ;;  %v2117_v29 = vunpack.c.l.b16 %v2064_v46 }
  0xc2   : > { %2536 = vmatmul.msk.bf16.gmra.mxu3 %vm568_vm3, %v2642_v55  ;;  %v1428_v55 = vrot.slane %v1426_v33, 4  ;;  %v1786_v3 = vor.u32 %v1785_v27, %v1781_v22 }
  0xc3   : > { %v3307_v32 = vpop.f32.mrf.mxu0 }
  0xc4   : > { %v1430_v10 = vsel %vm3002_vm7, %v1428_v55, %v1429_v6  ;;  %v3355_v55 = vld [vmem:[%s3251_s9 + $0x1c] sm:$0xf]  ;;  %v1787_v63 = vrot.slane %v1786_v3, 4 }
  0xc5   : > { %v3315_v45 = vpop.f32.mrf.mxu3  ;;  %v722_v54 = vpop.f32.mrf.mxu1  ;;  %v1476_v35 = vunpack.c.l.b16 %v1430_v10  ;;  %v1436_v10 = vrot.slane %v3098_v5, 5 }
  0xc6   : > { %3664 = vst [vmem:[#allocation2_spill] sm:$0xff] %v3315_v45  ;;  %2544 = vmatmul.msk.bf16.gmra.mxu0 %vm568_vm3, %v1316_v14  ;;  %v723_v7 = vadd.f32 %v722_v54, %v3256_v0  ;;  %v2546_v0 = vrot.slane %v3036_v38, 9  ;;  %v1775_v14 = vrot.slane %v1773_v25, 5  ;;  %v3351_v45 = vld [vmem:[%s3251_s9 + $0x18] sm:$0xf] }
  0xc8   : > { %2553 = vmatmul.msk.bf16.vlgmr.msra.gmra.mxu1 %vm568_vm3, %v1489_v42  ;;  %v1594_v42 = vld [vmem:[%s3251_s9 + $0x14] sm:$0x1]  ;;  %v1427_v54 = vsel %vm3002_vm7, %v2546_v0, %v1426_v33  ;;  %v1776_v31 = vor.u32 %v1775_v14, %v1772_v21  ;;  %v2133_v33 = vpack.c.b16 %v2118_v61, %v2117_v29  ;;  %v1794_v21 = vshrl.u32 %v3351_v45, 16 }
  0xc9   : > { %v3330_v39 = vpop.f32.mrf.mxu2  ;;  %v1789_v25 = vshll.u32 %v1594_v42, 16  ;;  %v1475_v50 = vunpack.c.l.b16 %v1427_v54  ;;  %v1797_v14 = vshll.u32 %v3351_v45, 16  ;;  %v1433_v54 = vrot.slane %v3078_v40, 5 }
  0xca   : > { %v2073_v40 = vrot.slane %v1594_v42, 5  ;;  %v1597_v42 = vld [vmem:[%s3251_s9 + $0x20] sm:$0x1] }
  0xcb   : > { %v3339_v41 = vpop.f32.mrf.mxu0  ;;  %v1791_v26 = vrot.slane %v1789_v25, 5  ;;  %v1490_v46 = vpack.c.b16 %v1476_v35, %v1475_v50  ;;  %v1799_v3 = vrot.slane %v1797_v14, 5  ;;  %v2547_v50 = vrot.slane %v3074_v30, 9 }
  0xcc   : > { %v1435_v35 = vrot.slane %v1433_v54, 4 }
  0xcd   : > { %v3342_v38 = vpop.f32.mrf.mxu3  ;;  %v724_v11 = vpop.f32.mrf.mxu1  ;;  %v1792_v29 = vsel %vm2862_vm4, %v1787_v63, %v1791_v26  ;;  %v1434_v14 = vsel %vm3002_vm7, %v2547_v50, %v1433_v54 }
  0xce   : > { %3665 = vst [vmem:[#allocation3_spill] sm:$0xff] %v3342_v38  ;;  %2593 = vmatmul.msk.bf16.vlgmr.msra.gmra.mxu2 %vm568_vm3, %v2643_v56  ;;  %v725_v2 = vadd.f32 %v724_v11, %v3285_v20  ;;  %v1777_v56 = vrot.slane %v1776_v31, 4  ;;  %v2070_v20 = vrot.slane %v3313_v44, 5  ;;  %v1796_v31 = vrot.slane %v1794_v21, 4 }
  0xcf   : > { %v1940_v26 = vunpack.c.l.b16 %v1792_v29  ;;  %v1437_v30 = vsel %vm3002_vm7, %v1435_v35, %v1436_v10  ;;  %v1477_v29 = vunpack.c.l.b16 %v1434_v14  ;;  %v2077_v35 = vrot.slane %v3355_v55, 5 }
  0xd0   : > { %v1782_v47 = vsel %vm2862_vm4, %v1777_v56, %v1781_v22  ;;  %v2072_v61 = vrot.slane %v2070_v20, 4  ;;  %v2071_v5 = vsel %vm3002_vm7, %v2610_v15, %v2070_v20  ;;  %v2644_v56 = vld [vmem:[%s3251_s9 + $0xc] sm:$0xff]  ;;  %v1800_v15 = vor.u32 %v1799_v3, %v1796_v31 }
  0xd1   : > { %v889_v38 = vpop.f32.mrf.mxu2  ;;  %v1939_v63 = vunpack.c.l.b16 %v1782_v47  ;;  %v2119_v20 = vunpack.c.l.b16 %v2071_v5  ;;  %v2080_v14 = vrot.slane %v1597_v42, 5 }
  0xd2   : > { %2601 = vmatmul.msk.bf16.vlgmr.msra.gmra.mxu3 %vm568_vm3, %v1953_v16  ;;  %v929_v0 = vadd.f32 %v889_v38, %v723_v7  ;;  %v1803_v7 = vshll.u32 %v3355_v55, 16  ;;  %v1807_v38 = vshrl.u32 %v3355_v55, 16  ;;  %v1801_v5 = vrot.slane %v1800_v15, 4 }
  0xd3   : > { %v1353_v6 = vpop.f32.mrf.mxu0 }
  0xd4   : > { %v1805_v22 = vrot.slane %v1803_v7, 5 }
  0xd5   : > { %v1045_v27 = vpop.f32.mrf.mxu3  ;;  %v727_v11 = vpop.f32.mrf.mxu1 }
  0xd6   : > { %2617 = vmatmul.msk.bf16.vlgmr.msra.gmra.mxu0 %vm568_vm3, %v2133_v33  ;;  %v1085_v44 = vadd.f32 %v1045_v27, %v929_v0  ;;  %v728_v16 = vadd.f32 %v727_v11, %v3307_v32  ;;  %v1809_v33 = vrot.slane %v1807_v38, 4  ;;  %v1954_v38 = vpack.c.b16 %v1940_v26, %v1939_v63 }
  0xd7   : > { %v1806_v26 = vsel %vm2862_vm4, %v1801_v5, %v1805_v22 }
  0xd8   : > { %2554 = vmatmul.msk.bf16.gmra.mxu1 %vm568_vm3, %v1490_v46  ;;  %v3374_v25 = vadd.f32 %v1353_v6, %v1085_v44  ;;  %v2074_v46 = vsel %vm3002_vm7, %v2072_v61, %v2073_v40  ;;  %v1810_v11 = vor.u32 %v1809_v33, %v1805_v22  ;;  %v1478_v61 = vunpack.c.l.b16 %v1437_v30  ;;  %v3392_v33 = vld [vmem:[%s3251_s9 + $0x24] sm:$0xf] }
  0xd9   : > { %v891_v32 = vpop.f32.mrf.mxu2  ;;  %v2120_v44 = vunpack.c.l.b16 %v2074_v46  ;;  %v1818_v15 = vshrl.u32 %v3392_v33, 16 }
  0xda   : > { %v930_v0 = vadd.f32 %v891_v32, %v725_v2  ;;  %v1813_v2 = vshll.u32 %v1597_v42, 16  ;;  %v1811_v31 = vrot.slane %v1810_v11, 4 }
  0xdb   : > { %v1355_v27 = vpop.f32.mrf.mxu0  ;;  %v2134_v10 = vpack.c.b16 %v2120_v44, %v2119_v20 }
  0xdc   : > { %v1815_v54 = vrot.slane %v1813_v2, 5 }
  0xdd   : > { %v1047_v21 = vpop.f32.mrf.mxu3  ;;  %v729_v6 = vpop.f32.mrf.mxu1 }
  0xde   : > { %v1086_v7 = vadd.f32 %v1047_v21, %v930_v0  ;;  %2594 = vmatmul.msk.bf16.gmra.mxu2 %vm568_vm3, %v2644_v56  ;;  %v730_v47 = vadd.f32 %v729_v6, %v3339_v41  ;;  %v1491_v0 = vpack.c.b16 %v1478_v61, %v1477_v29  ;;  %v3395_v56 = vld [vmem:[%s3251_s9 + $0x28] sm:$0xf]  ;;  %v1816_v46 = vsel %vm2862_vm4, %v1811_v31, %v1815_v54  ;;  %v2645_v29 = vld [vmem:[%s3251_s9 + $0x18] sm:$0xff] }
  0xdf   : > { %v1821_v21 = vshll.u32 %v3392_v33, 16  ;;  %v2079_v6 = vrot.slane %v2077_v35, 4  ;;  %v1827_v22 = vshll.u32 %v3395_v56, 16  ;;  %v1831_v30 = vshrl.u32 %v3395_v56, 16 }
  0xe0   : > { %v3388_v32 = vadd.f32 %v1355_v27, %v1086_v7  ;;  %v1440_v27 = vrot.slane %v3108_v13, 5  ;;  %v1942_v2 = vunpack.c.l.b16 %v1816_v46  ;;  %v2548_v7 = vrot.slane %v3105_v9, 9 }
  0xe1   : > { %v894_v40 = vpop.f32.mrf.mxu2  ;;  %v1820_v61 = vrot.slane %v1818_v15, 4  ;;  %v1829_v31 = vrot.slane %v1827_v22, 5  ;;  %v1833_v54 = vrot.slane %v1831_v30, 4  ;;  %v2084_v15 = vrot.slane %v3395_v56, 5  ;;  %v3428_v22 = vld [vmem:[%s3251_s9 + $0x30] sm:$0xf] }
  0xe2   : > { %2602 = vmatmul.msk.bf16.gmra.mxu3 %vm568_vm3, %v1954_v38  ;;  %v931_v3 = vadd.f32 %v894_v40, %v728_v16  ;;  %v2611_v16 = vrot.slane %v3351_v45, 9  ;;  %v1443_v45 = vrot.slane %v3122_v51, 5  ;;  %v1442_v38 = vrot.slane %v1440_v27, 4 }
  0xe3   : > { %v1358_v50 = vpop.f32.mrf.mxu0  ;;  %v1823_v40 = vrot.slane %v1821_v21, 5  ;;  %v2081_v51 = vsel %vm3002_vm7, %v2079_v6, %v2080_v14  ;;  %v2086_v56 = vrot.slane %v2084_v15, 4 }
  0xe4   : > { %v2078_v42 = vsel %vm3002_vm7, %v2611_v16, %v2077_v35  ;;  %v1444_v35 = vsel %vm3002_vm7, %v1442_v38, %v1443_v45  ;;  %v1834_v16 = vor.u32 %v1833_v54, %v1829_v31  ;;  %v2612_v38 = vrot.slane %v3392_v33, 9 }
  0xe5   : > { %v1050_v41 = vpop.f32.mrf.mxu3  ;;  %v732_v63 = vpop.f32.mrf.mxu1  ;;  %v1824_v46 = vor.u32 %v1823_v40, %v1820_v61  ;;  %v1480_v6 = vunpack.c.l.b16 %v1444_v35  ;;  %v1845_v61 = vshll.u32 %v3428_v22, 16 }
  0xe6   : > { %2618 = vmatmul.msk.bf16.gmra.mxu0 %vm568_vm3, %v2134_v10  ;;  %v1087_v55 = vadd.f32 %v1050_v41, %v931_v3  ;;  %v733_v20 = vadd.f32 %v732_v63, %v3214_v34  ;;  %v1941_v34 = vunpack.c.l.b16 %v1806_v26  ;;  %v1600_v10 = vld [vmem:[%s3251_s9 + $0x2c] sm:$0x1]  ;;  %v2122_v63 = vunpack.c.l.b16 %v2081_v51 }
  0xe7   : > { %v1825_v45 = vrot.slane %v1824_v46, 4 }
  0xe8   : > { %2555 = vmatmul.msk.bf16.gmra.mxu1 %vm568_vm3, %v1491_v0  ;;  %v3411_v13 = vadd.f32 %v1358_v50, %v1087_v55  ;;  %v1955_v50 = vpack.c.b16 %v1942_v2, %v1941_v34  ;;  %v2121_v0 = vunpack.c.l.b16 %v2078_v42  ;;  %v1837_v55 = vshll.u32 %v1600_v10, 16 }
  0xe9   : > { %v896_v11 = vpop.f32.mrf.mxu2  ;;  %v1835_v2 = vrot.slane %v1834_v16, 4  ;;  %v1842_v42 = vshrl.u32 %v3428_v22, 16 }
  0xea   : > { %v932_v44 = vadd.f32 %v896_v11, %v730_v47  ;;  %v1441_v47 = vsel %vm3002_vm7, %v2548_v7, %v1440_v27  ;;  %v2135_v27 = vpack.c.b16 %v2122_v63, %v2121_v0  ;;  %v3432_v11 = vld [vmem:[%s3251_s9 + $0x34] sm:$0xf]  ;;  %v1839_v7 = vrot.slane %v1837_v55, 5  ;;  %v2646_v55 = vld [vmem:[%s3251_s9 + $0x24] sm:$0xff] }
  0xeb   : > { %v1360_v5 = vpop.f32.mrf.mxu0  ;;  %v1479_v21 = vunpack.c.l.b16 %v1441_v47  ;;  %v1851_v54 = vshll.u32 %v3432_v11, 16  ;;  %v1844_v47 = vrot.slane %v1842_v42, 4 }
  0xec   : > { %v1840_v0 = vsel %vm2862_vm4, %v1835_v2, %v1839_v7 }
  0xed   : > { %v1052_v3 = vpop.f32.mrf.mxu3  ;;  %v734_v9 = vpop.f32.mrf.mxu1  ;;  %v3457_v63 = vrot.slane %v1851_v54, 5 }
  0xee   : > { %v1088_v41 = vadd.f32 %v1052_v3, %v932_v44  ;;  %2595 = vmatmul.msk.bf16.gmra.mxu2 %vm568_vm3, %v2645_v29  ;;  %v735_v26 = vadd.f32 %v734_v9, %v3237_v43  ;;  %v1492_v44 = vpack.c.b16 %v1480_v6, %v1479_v21  ;;  %v2087_v29 = vrot.slane %v1600_v10, 5 }
  0xef   : > { %v1450_v10 = vrot.slane %v3149_v23, 5  ;;  %v1944_v21 = vunpack.c.l.b16 %v1840_v0  ;;  %v2091_v0 = vrot.slane %v3432_v11, 5 }
  0xf0   : > { %v3434_v34 = vadd.f32 %v1360_v5, %v1088_v41  ;;  %v1855_v5 = vshrl.u32 %v3432_v11, 16  ;;  %v2088_v9 = vsel %vm3002_vm7, %v2086_v56, %v2087_v29  ;;  %v2549_v41 = vrot.slane %v3129_v28, 9 }
  0xf1   : > { %v899_v14 = vpop.f32.mrf.mxu2  ;;  %v2613_v11 = vrot.slane %v3428_v22, 9 }
  0xf2   : > { %2603 = vmatmul.msk.bf16.gmra.mxu3 %vm568_vm3, %v1955_v50  ;;  %v933_v30 = vadd.f32 %v899_v14, %v733_v20  ;;  %v1447_v20 = vrot.slane %v3132_v59, 5  ;;  %v1830_v50 = vsel %vm2862_vm4, %v1825_v45, %v1829_v31  ;;  %v2085_v59 = vsel %vm3002_vm7, %v2612_v38, %v2084_v15  ;;  %v1603_v14 = vld [vmem:[%s3251_s9 + $0x38] sm:$0x1] }
  0xf3   : > { %v1363_v43 = vpop.f32.mrf.mxu0  ;;  %v1857_v46 = vrot.slane %v1855_v5, 4  ;;  %v1943_v15 = vunpack.c.l.b16 %v1830_v50  ;;  %v1861_v29 = vshll.u32 %v1603_v14, 16 }
  0xf4   : > { %v1449_v31 = vrot.slane %v1447_v20, 4  ;;  %v1448_v2 = vsel %vm3002_vm7, %v2549_v41, %v1447_v20 }
  0xf5   : > { %v1055_v40 = vpop.f32.mrf.mxu3  ;;  %v737_v51 = vpop.f32.mrf.mxu1  ;;  %v1956_v56 = vpack.c.b16 %v1944_v21, %v1943_v15  ;;  %v1481_v42 = vunpack.c.l.b16 %v1448_v2  ;;  %v1863_v50 = vrot.slane %v1861_v29, 5  ;;  %v2093_v21 = vrot.slane %v2091_v0, 4 }
  0xf6   : > { %2619 = vmatmul.msk.bf16.gmra.mxu0 %vm568_vm3, %v2135_v27  ;;  %v1089_v3 = vadd.f32 %v1055_v40, %v933_v30  ;;  %v738_v33 = vadd.f32 %v737_v51, %v3273_v12  ;;  %v1847_v12 = vrot.slane %v1845_v61, 5  ;;  %v2123_v27 = vunpack.c.l.b16 %v2085_v59  ;;  %v3469_v40 = vld [vmem:[%s3251_s9 + $0x3c] sm:$0xf]  ;;  %v3472_v51 = vld [vmem:[%s3251_s9 + $0x40] sm:$0xf] }
  0xf7   : > { %v2124_v30 = vunpack.c.l.b16 %v2088_v9  ;;  %v1451_v28 = vsel %vm3002_vm7, %v1449_v31, %v1450_v10  ;;  %v1866_v9 = vshrl.u32 %v3469_v40, 16  ;;  %v2550_v2 = vrot.slane %v3161_v49, 9 }
  0xf8   : > { %2556 = vmatmul.msk.bf16.gmra.mxu1 %vm568_vm3, %v1492_v44  ;;  %v3454_v35 = vadd.f32 %v1363_v43, %v1089_v3  ;;  %v1848_v7 = vor.u32 %v1847_v12, %v1844_v47  ;;  %v1482_v61 = vunpack.c.l.b16 %v1451_v28  ;;  %v1869_v47 = vshll.u32 %v3469_v40, 16 }
  0xf9   : > { %v901_v23 = vpop.f32.mrf.mxu2  ;;  %v2136_v20 = vpack.c.b16 %v2124_v30, %v2123_v27  ;;  %v1875_v12 = vshll.u32 %v3472_v51, 16  ;;  %v1868_v27 = vrot.slane %v1866_v9, 4 }
  0xfa   : > { %v934_v16 = vadd.f32 %v901_v23, %v735_v26  ;;  %v1858_v26 = vor.u32 %v1857_v46, %v3457_v63  ;;  %v1849_v5 = vrot.slane %v1848_v7, 4  ;;  %v1879_v23 = vshrl.u32 %v3472_v51, 16  ;;  %v3496_v7 = vld [vmem:[%s3251_s9 + $0x44] sm:$0x1] }
  0xfb   : > { %v1365_v6 = vpop.f32.mrf.mxu0  ;;  %v1493_v41 = vpack.c.b16 %v1482_v61, %v1481_v42  ;;  %v1871_v30 = vrot.slane %v1869_v47, 5  ;;  %v2092_v42 = vsel %vm3002_vm7, %v2613_v11, %v2091_v0  ;;  %v2098_v11 = vrot.slane %v3472_v51, 5 }
  0xfc   : > { %v1859_v3 = vrot.slane %v1858_v26, 4  ;;  %v2125_v0 = vunpack.c.l.b16 %v2092_v42  ;;  %v2614_v51 = vrot.slane %v3469_v40, 9  ;;  %v1464_v40 = vrot.slane %v3211_v4, 5  ;;  %v2648_v4 = vld [vmem:[%s3251_s9 + $0x3c] sm:$0xff] }
  0xfd   : > { %v1057_v45 = vpop.f32.mrf.mxu3  ;;  %v739_v43 = vpop.f32.mrf.mxu1 }
  0xfe   : > { %v1090_v38 = vadd.f32 %v1057_v45, %v934_v16  ;;  %2596 = vmatmul.msk.bf16.gmra.mxu2 %vm568_vm3, %v2646_v55  ;;  %v740_v44 = vadd.f32 %v739_v43, %v3295_v62  ;;  %v1454_v16 = vrot.slane %v3164_v52, 5  ;;  %v1864_v15 = vsel %vm2862_vm4, %v1859_v3, %v1863_v50 }
  0xff   : > { %v1877_v45 = vrot.slane %v1875_v12, 5  ;;  %v1881_v43 = vrot.slane %v1879_v23, 4  ;;  %v1457_v52 = vrot.slane %v3180_v58, 5  ;;  %v1885_v58 = vshll.u32 %v3496_v7, 16 }
 0x100   : > { %v3476_v59 = vadd.f32 %v1365_v6, %v1090_v38  ;;  %v2094_v6 = vrot.slane %v1603_v14, 5  ;;  %v1456_v28 = vrot.slane %v1454_v16, 4  ;;  %v2647_v38 = vld [vmem:[%s3251_s9 + $0x30] sm:$0xff]  ;;  %v1946_v14 = vunpack.c.l.b16 %v1864_v15  ;;  %v3513_v15 = vld [vmem:[%s3251_s9 + $0x48] sm:$0xf] }
 0x101   : > { %v904_v54 = vpop.f32.mrf.mxu2  ;;  %v1455_v3 = vsel %vm3002_vm7, %v2550_v2, %v1454_v16  ;;  %v1461_v2 = vrot.slane %v3194_v37, 5 }
 0x102   : > { %2604 = vmatmul.msk.bf16.gmra.mxu3 %vm568_vm3, %v1956_v56  ;;  %v935_v10 = vadd.f32 %v904_v54, %v738_v33  ;;  %v1854_v33 = vsel %vm2862_vm4, %v1849_v5, %v3457_v63  ;;  %v2095_v61 = vsel %vm3002_vm7, %v2093_v21, %v2094_v6  ;;  %v1882_v54 = vor.u32 %v1881_v43, %v1877_v45 }
 0x103   : > { %v1368_v62 = vpop.f32.mrf.mxu0  ;;  %v1945_v56 = vunpack.c.l.b16 %v1854_v33  ;;  %v1483_v23 = vunpack.c.l.b16 %v1455_v3 }
 0x104   : > { %v1883_v47 = vrot.slane %v1882_v54, 4  ;;  %v2551_v54 = vrot.slane %v3191_v17, 9 }
 0x105   : > { %v1060_v31 = vpop.f32.mrf.mxu3  ;;  %v742_v46 = vpop.f32.mrf.mxu1  ;;  %v1957_v50 = vpack.c.b16 %v1946_v14, %v1945_v56  ;;  %v2101_v56 = vrot.slane %v3496_v7, 5 }
 0x106   : > { %2620 = vmatmul.msk.bf16.gmra.mxu0 %vm568_vm3, %v2136_v20  ;;  %v1091_v55 = vadd.f32 %v1060_v31, %v935_v10  ;;  %v1872_v20 = vor.u32 %v1871_v30, %v1868_v27  ;;  %v743_v12 = vadd.f32 %v742_v46, %v3241_v48  ;;  %v1887_v31 = vrot.slane %v1885_v58, 5  ;;  %v3518_v27 = vld [vmem:[%s3251_s9 + $0x4c] sm:$0xf] }
 0x107   : > { %v1903_v14 = vshrl.u32 %v3518_v27, 16  ;;  %v1463_v58 = vrot.slane %v1461_v2, 4 }
 0x108   : > { %2557 = vmatmul.msk.bf16.gmra.mxu1 %vm568_vm3, %v1493_v41  ;;  %v3491_v63 = vadd.f32 %v1368_v62, %v1091_v55  ;;  %v2126_v62 = vunpack.c.l.b16 %v2095_v61  ;;  %v1873_v9 = vrot.slane %v1872_v20, 4  ;;  %v1888_v46 = vsel %vm2862_vm4, %v1883_v47, %v1887_v31 }
 0x109   : > { %v906_v22 = vpop.f32.mrf.mxu2  ;;  %v1948_v37 = vunpack.c.l.b16 %v1888_v46  ;;  %v2099_v61 = vsel %vm3002_vm7, %v2614_v51, %v2098_v11  ;;  %v1465_v17 = vsel %vm3002_vm7, %v1463_v58, %v1464_v40 }
 0x10a   : > { %v936_v26 = vadd.f32 %v906_v22, %v740_v44  ;;  %v1458_v44 = vsel %vm3002_vm7, %v1456_v28, %v1457_v52  ;;  %v2137_v16 = vpack.c.b16 %v2126_v62, %v2125_v0  ;;  %v1878_v48 = vsel %vm2862_vm4, %v1873_v9, %v1877_v45  ;;  %v1609_v0 = vld [vmem:[%s3251_s9 + $0x50] sm:$0x1] }
 0x10b   : > { %v1370_v29 = vpop.f32.mrf.mxu0  ;;  %v1484_v41 = vunpack.c.l.b16 %v1458_v44  ;;  %v2100_v22 = vrot.slane %v2098_v11, 4  ;;  %v1890_v28 = vshrl.u32 %v3513_v15, 16  ;;  %v1899_v45 = vshll.u32 %v3518_v27, 16 }
 0x10c   : > { %v2127_v62 = vunpack.c.l.b16 %v2099_v61  ;;  %v2108_v58 = vrot.slane %v1609_v0, 5 }
 0x10d   : > { %v1062_v5 = vpop.f32.mrf.mxu3  ;;  %v744_v49 = vpop.f32.mrf.mxu1  ;;  %v1494_v30 = vpack.c.b16 %v1484_v41, %v1483_v23  ;;  %v1462_v23 = vsel %vm3002_vm7, %v2551_v54, %v1461_v2 }
 0x10e   : > { %v1092_v10 = vadd.f32 %v1062_v5, %v936_v26  ;;  %2597 = vmatmul.msk.bf16.gmra.mxu2 %vm568_vm3, %v2647_v38  ;;  %v1893_v26 = vshll.u32 %v3513_v15, 16  ;;  %v745_v42 = vadd.f32 %v744_v49, %v3281_v19  ;;  %v1892_v5 = vrot.slane %v1890_v28, 4 }
 0x10f   : > { %v2102_v19 = vsel %vm3002_vm7, %v2100_v22, %v2101_v56  ;;  %v1901_v49 = vrot.slane %v1899_v45, 5  ;;  %v3555_v56 = vld [vmem:[%s3251_s9 + $0x54] sm:$0xf] }
 0x110   : > { %v3515_v21 = vadd.f32 %v1370_v29, %v1092_v10  ;;  %v1947_v29 = vunpack.c.l.b16 %v1878_v48  ;;  %v1895_v3 = vrot.slane %v1893_v26, 5  ;;  %v1905_v10 = vrot.slane %v1903_v14, 4  ;;  %v3558_v14 = vld [vmem:[%s3251_s9 + $0x58] sm:$0xf] }
 0x111   : > { %v909_v33 = vpop.f32.mrf.mxu2  ;;  %v2128_v47 = vunpack.c.l.b16 %v2102_v19  ;;  %v1914_v61 = vshrl.u32 %v3555_v56, 16 }
 0x112   : > { %2605 = vmatmul.msk.bf16.gmra.mxu3 %vm568_vm3, %v1957_v50  ;;  %v937_v55 = vadd.f32 %v909_v33, %v743_v12  ;;  %v1896_v41 = vor.u32 %v1895_v3, %v1892_v5  ;;  %v1958_v33 = vpack.c.b16 %v1948_v37, %v1947_v29  ;;  %v1906_v11 = vor.u32 %v1905_v10, %v1901_v49 }
 0x113   : > { %v1373_v6 = vpop.f32.mrf.mxu0  ;;  %v2138_v48 = vpack.c.b16 %v2128_v47, %v2127_v62  ;;  %v2615_v29 = vrot.slane %v3513_v15, 9  ;;  %v1923_v5 = vshll.u32 %v3558_v14, 16  ;;  %v1927_v3 = vshrl.u32 %v3558_v14, 16  ;;  %v2649_v62 = vld [vmem:[%s3251_s9 + $0x48] sm:$0xff] }
 0x114   : > { %v1897_v51 = vrot.slane %v1896_v41, 4  ;;  %v1907_v22 = vrot.slane %v1906_v11, 4  ;;  %v1471_v15 = vrot.slane %v3254_v24, 5  ;;  %v2552_v10 = vrot.slane %v3224_v60, 9  ;;  %v1612_v41 = vld [vmem:[%s3251_s9 + $0x5c] sm:$0x1] }
 0x115   : > { %v1065_v43 = vpop.f32.mrf.mxu3  ;;  %v747_v52 = vpop.f32.mrf.mxu1  ;;  %v1916_v47 = vrot.slane %v1914_v61, 4 }
 0x116   : > { %2621 = vmatmul.msk.bf16.gmra.mxu0 %vm568_vm3, %v2137_v16  ;;  %v1093_v38 = vadd.f32 %v1065_v43, %v937_v55  ;;  %v1909_v16 = vshll.u32 %v1609_v0, 16  ;;  %v748_v55 = vadd.f32 %v747_v52, %v3303_v18  ;;  %v1902_v40 = vsel %vm2862_vm4, %v1897_v51, %v1901_v49 }
 0x117   : > { %v1949_v19 = vunpack.c.l.b16 %v1902_v40  ;;  %v1933_v51 = vshll.u32 %v1612_v41, 16 }
 0x118   : > { %2558 = vmatmul.msk.bf16.gmra.mxu1 %vm568_vm3, %v1494_v30  ;;  %v3537_v20 = vadd.f32 %v1373_v6, %v1093_v38  ;;  %v1485_v6 = vunpack.c.l.b16 %v1462_v23  ;;  %v1486_v30 = vunpack.c.l.b16 %v1465_v17  ;;  %v1911_v2 = vrot.slane %v1909_v16, 5 }
 0x119   : > { %v911_v7 = vpop.f32.mrf.mxu2  ;;  %v2105_v38 = vrot.slane %v3518_v27, 5  ;;  %v1929_v17 = vrot.slane %v1927_v3, 4 }
 0x11a   : > { %v938_v44 = vadd.f32 %v911_v7, %v745_v42  ;;  %v1495_v45 = vpack.c.b16 %v1486_v30, %v1485_v6  ;;  %v1468_v42 = vrot.slane %v3227_v8, 5  ;;  %v1912_v27 = vsel %vm2862_vm4, %v1907_v22, %v1911_v2 }
 0x11b   : > { %v1375_v50 = vpop.f32.mrf.mxu0  ;;  %v1917_v7 = vshll.u32 %v3555_v56, 16  ;;  %v2107_v54 = vrot.slane %v2105_v38, 4  ;;  %v1950_v49 = vunpack.c.l.b16 %v1912_v27  ;;  %v2112_v27 = vrot.slane %v3558_v14, 5 }
 0x11c   : > { %v1469_v60 = vsel %vm3002_vm7, %v2552_v10, %v1468_v42 }
 0x11d   : > { %v1067_v9 = vpop.f32.mrf.mxu3  ;;  %v749_v12 = vpop.f32.mrf.mxu1  ;;  %v1919_v24 = vrot.slane %v1917_v7, 5  ;;  %v1959_v6 = vpack.c.b16 %v1950_v49, %v1949_v19  ;;  %v1487_v22 = vunpack.c.l.b16 %v1469_v60  ;;  %v2114_v3 = vrot.slane %v2112_v27, 4  ;;  %v2650_v49 = vld [vmem:[%s3251_s9 + $0x54] sm:$0xff] }
 0x11e   : > { %v1094_v31 = vadd.f32 %v1067_v9, %v938_v44  ;;  %2598 = vmatmul.msk.bf16.gmra.mxu2 %vm568_vm3, %v2648_v4  ;;  %v750_v8 = vadd.f32 %v749_v12, %v3330_v39  ;;  %v2106_v9 = vsel %vm3002_vm7, %v2615_v29, %v2105_v38  ;;  %v2109_v39 = vsel %vm3002_vm7, %v2107_v54, %v2108_v58 }
 0x11f   : > { %v1925_v12 = vrot.slane %v1923_v5, 5  ;;  %v2130_v30 = vunpack.c.l.b16 %v2109_v39  ;;  %v2616_v5 = vrot.slane %v3555_v56, 9  ;;  %v3666_v39 = vld [vmem:[#allocation2_spill] sm:$0xff] }
 0x120   : > { %v3551_v28 = vadd.f32 %v1375_v50, %v1094_v31  ;;  %v1470_v50 = vrot.slane %v1468_v42, 4 }
 0x121   : > { %v914_v46 = vpop.f32.mrf.mxu2  ;;  %v2113_v36 = vsel %vm3002_vm7, %v2616_v5, %v2112_v27 }
 0x122   : > { %2606 = vmatmul.msk.bf16.gmra.mxu3 %vm568_vm3, %v1958_v33  ;;  %v939_v43 = vadd.f32 %v914_v46, %v748_v55  ;;  %v2129_v33 = vunpack.c.l.b16 %v2106_v9  ;;  %v1472_v16 = vsel %vm3002_vm7, %v1470_v50, %v1471_v15  ;;  %v1930_v46 = vor.u32 %v1929_v17, %v1925_v12 }
 0x123   : > { %v1378_v26 = vpop.f32.mrf.mxu0  ;;  %v1488_v2 = vunpack.c.l.b16 %v1472_v16  ;;  %v2115_v15 = vrot.slane %v1612_v41, 5 }
 0x124   : > { %v1931_v42 = vrot.slane %v1930_v46, 4 }
 0x125   : > { %v1070_v18 = vpop.f32.mrf.mxu3  ;;  %v752_v52 = vpop.f32.mrf.mxu1  ;;  %v1496_v61 = vpack.c.b16 %v1488_v2, %v1487_v22  ;;  %v2116_v56 = vsel %vm3002_vm7, %v2114_v3, %v2115_v15 }
 0x126   : > { %2622 = vmatmul.msk.bf16.gmra.mxu0 %vm568_vm3, %v2138_v48  ;;  %v1095_v37 = vadd.f32 %v1070_v18, %v939_v43  ;;  %v1920_v48 = vor.u32 %v1919_v24, %v1916_v47  ;;  %v753_v43 = vadd.f32 %v752_v52, %v3258_v1  ;;  %v2131_v24 = vunpack.c.l.b16 %v2113_v36 }
 0x128   : > { %2559 = vmatmul.msk.bf16.gmra.mxu1 %vm568_vm3, %v1495_v45  ;;  %v3574_v44 = vadd.f32 %v1378_v26, %v1095_v37  ;;  %v2139_v45 = vpack.c.b16 %v2130_v30, %v2129_v33  ;;  %v1921_v40 = vrot.slane %v1920_v48, 4  ;;  %v1935_v37 = vrot.slane %v1933_v51, 5 }
 0x129   : > { %v916_v4 = vpop.f32.mrf.mxu2 }
 0x12a   : > { %v940_v0 = vadd.f32 %v916_v4, %v750_v8  ;;  %v1926_v52 = vsel %vm2862_vm4, %v1921_v40, %v1925_v12  ;;  %v1936_v58 = vsel %vm2862_vm4, %v1931_v42, %v1935_v37 }
 0x12b   : > { %v1380_v23 = vpop.f32.mrf.mxu0  ;;  %v1951_v10 = vunpack.c.l.b16 %v1926_v52  ;;  %v1952_v50 = vunpack.c.l.b16 %v1936_v58 }
 0x12d   : > { %v1072_v31 = vpop.f32.mrf.mxu3  ;;  %v754_v11 = vpop.f32.mrf.mxu1 }
 0x12e   : > { %v1096_v55 = vadd.f32 %v1072_v31, %v940_v0  ;;  %2599 = vmatmul.msk.bf16.gmra.mxu2 %vm568_vm3, %v2649_v62  ;;  %v755_v8 = vadd.f32 %v754_v11, %v3288_v57  ;;  %v1960_v57 = vpack.c.b16 %v1952_v50, %v1951_v10 }
 0x130   : > { %v3589_v26 = vadd.f32 %v1380_v23, %v1096_v55  ;;  %v2132_v23 = vunpack.c.l.b16 %v2116_v56 }
 0x131   : > { %v919_v38 = vpop.f32.mrf.mxu2 }
 0x132   : > { %2607 = vmatmul.msk.bf16.gmra.mxu3 %vm568_vm3, %v1959_v6  ;;  %v941_v18 = vadd.f32 %v919_v38, %v753_v43  ;;  %v2140_v31 = vpack.c.b16 %v2132_v23, %v2131_v24  ;;  %v3667_v6 = vld [vmem:[#allocation3_spill] sm:$0xff] }
 0x133   : > { %v1383_v29 = vpop.f32.mrf.mxu0 }
 0x135   : > { %v1075_v7 = vpop.f32.mrf.mxu3  ;;  %v757_v54 = vpop.f32.mrf.mxu1 }
 0x136   : > { %2623 = vmatmul.msk.bf16.gmra.mxu0 %vm568_vm3, %v2139_v45  ;;  %v1097_v1 = vadd.f32 %v1075_v7, %v941_v18  ;;  %v758_v12 = vadd.f32 %v757_v54, %v3666_v39 }
 0x138   : > { %2560 = vmatmul.msk.bf16.gmra.mxu1 %vm568_vm3, %v1496_v61  ;;  %v3601_v14 = vadd.f32 %v1383_v29, %v1097_v1 }
 0x139   : > { %v921_v4 = vpop.f32.mrf.mxu2 }
 0x13a   : > { %v942_v19 = vadd.f32 %v921_v4, %v755_v8 }
 0x13b   : > { %v1385_v0 = vpop.f32.mrf.mxu0 }
 0x13d   : > { %v1077_v62 = vpop.f32.mrf.mxu3  ;;  %v759_v9 = vpop.f32.mrf.mxu1 }
 0x13e   : > { %v1098_v47 = vadd.f32 %v1077_v62, %v942_v19  ;;  %2600 = vmatmul.msk.bf16.gmra.mxu2 %vm568_vm3, %v2650_v49  ;;  %v760_v30 = vadd.f32 %v759_v9, %v3667_v6 }
 0x140   : > { %v3610_v17 = vadd.f32 %v1385_v0, %v1098_v47 }
 0x141   : > { %v924_v41 = vpop.f32.mrf.mxu2 }
 0x142   : > { %2608 = vmatmul.msk.bf16.gmra.mxu3 %vm568_vm3, %v1960_v57  ;;  %v943_v33 = vadd.f32 %v924_v41, %v758_v12 }
 0x143   : > { %v1388_v11 = vpop.f32.mrf.mxu0 }
 0x145   : > { %v1080_v53 = vpop.f32.mrf.mxu3  ;;  %v1533_v60 = vpop.f32.mrf.mxu1 }
 0x146   : > { %2624 = vmatmul.msk.bf16.gmra.mxu0 %vm568_vm3, %v2140_v31  ;;  %v1099_v16 = vadd.f32 %v1080_v53, %v943_v33  ;;  %v1573_v55 = vadd.f32 %v1533_v60, %v3374_v25 }
 0x148   : > { %v3616_v48 = vadd.f32 %v1388_v11, %v1099_v16 }
 0x149   : > { %v926_v46 = vpop.f32.mrf.mxu2 }
 0x14a   : > { %v944_v51 = vadd.f32 %v926_v46, %v760_v30 }
 0x14b   : > { %v1390_v43 = vpop.f32.mrf.mxu0 }
 0x14d   : > { %v1082_v22 = vpop.f32.mrf.mxu3  ;;  %v1535_v2 = vpop.f32.mrf.mxu1 }
 0x14e   : > { %v1100_v38 = vadd.f32 %v1082_v22, %v944_v51  ;;  %v1574_v45 = vadd.f32 %v1535_v2, %v3388_v32 }
 0x150   : > { %v3619_v18 = vadd.f32 %v1390_v43, %v1100_v38 }
 0x151   : > { %v1689_v40 = vpop.f32.mrf.mxu2 }
 0x152   : > { %v1729_v29 = vadd.f32 %v1689_v40, %v1573_v55 }
 0x153   : > { %v2177_v42 = vpop.f32.mrf.mxu0 }
 0x155   : > { %v1997_v37 = vpop.f32.mrf.mxu3  ;;  %v1538_v27 = vpop.f32.mrf.mxu1 }
 0x156   : > { %v2037_v25 = vadd.f32 %v1997_v37, %v1729_v29  ;;  %v1575_v61 = vadd.f32 %v1538_v27, %v3411_v13 }
 0x158   : > { %v2217_v7 = vadd.f32 %v2177_v42, %v2037_v25 }
 0x159   : > { %v1691_v54 = vpop.f32.mrf.mxu2 }
 0x15a   : > { %v1730_v1 = vadd.f32 %v1691_v54, %v1574_v45  ;;  %v2254_v4 = vmul.f32 %v2217_v7, %v2217_v7 }
 0x15b   : > { %v2179_v52 = vpop.f32.mrf.mxu0 }
 0x15d   : > { %v1999_v58 = vpop.f32.mrf.mxu3  ;;  %v1540_v5 = vpop.f32.mrf.mxu1 }
 0x15e   : > { %v2038_v3 = vadd.f32 %v1999_v58, %v1730_v1  ;;  %v1576_v15 = vadd.f32 %v1540_v5, %v3434_v34 }
 0x160   : > { %v2218_v32 = vadd.f32 %v2179_v52, %v2038_v3 }
 0x161   : > { %v1694_v8 = vpop.f32.mrf.mxu2 }
 0x162   : > { %v2233_v19 = vadd.f32 %v2218_v32, %v2217_v7  ;;  %v2255_v49 = vmul.f32 %v2218_v32, %v2218_v32  ;;  %v1731_v10 = vadd.f32 %v1694_v8, %v1575_v61 }
 0x163   : > { %v2182_v50 = vpop.f32.mrf.mxu0 }
 0x164   : > { %v2270_v0 = vadd.f32 %v2255_v49, %v2254_v4 }
 0x165   : > { %v2002_v36 = vpop.f32.mrf.mxu3  ;;  %v1543_v56 = vpop.f32.mrf.mxu1 }
 0x166   : > { %v2039_v13 = vadd.f32 %v2002_v36, %v1731_v10  ;;  %v1577_v62 = vadd.f32 %v1543_v56, %v3454_v35 }
 0x168   : > { %v2219_v9 = vadd.f32 %v2182_v50, %v2039_v13 }
 0x169   : > { %v1696_v47 = vpop.f32.mrf.mxu2 }
 0x16a   : > { %v2234_v57 = vadd.f32 %v2233_v19, %v2219_v9  ;;  %v2256_v24 = vmul.f32 %v2219_v9, %v2219_v9  ;;  %v1732_v23 = vadd.f32 %v1696_v47, %v1576_v15 }
 0x16b   : > { %v2184_v39 = vpop.f32.mrf.mxu0 }
 0x16c   : > { %v2271_v34 = vadd.f32 %v2270_v0, %v2256_v24 }
 0x16d   : > { %v2004_v12 = vpop.f32.mrf.mxu3  ;;  %v1545_v41 = vpop.f32.mrf.mxu1 }
 0x16e   : > { %v2040_v31 = vadd.f32 %v2004_v12, %v1732_v23  ;;  %v1578_v43 = vadd.f32 %v1545_v41, %v3476_v59 }
 0x170   : > { %v2220_v33 = vadd.f32 %v2184_v39, %v2040_v31 }
 0x171   : > { %v1699_v11 = vpop.f32.mrf.mxu2 }
 0x172   : > { %v2235_v53 = vadd.f32 %v2234_v57, %v2220_v33  ;;  %v2257_v60 = vmul.f32 %v2220_v33, %v2220_v33  ;;  %v1733_v16 = vadd.f32 %v1699_v11, %v1577_v62 }
 0x173   : > { %v2187_v55 = vpop.f32.mrf.mxu0 }
 0x174   : > { %v2272_v6 = vadd.f32 %v2271_v34, %v2257_v60 }
 0x175   : > { %v2007_v30 = vpop.f32.mrf.mxu3  ;;  %v1548_v46 = vpop.f32.mrf.mxu1 }
 0x176   : > { %v2041_v35 = vadd.f32 %v2007_v30, %v1733_v16  ;;  %v1579_v61 = vadd.f32 %v1548_v46, %v3491_v63 }
 0x178   : > { %v2221_v51 = vadd.f32 %v2187_v55, %v2041_v35 }
 0x179   : > { %v1701_v22 = vpop.f32.mrf.mxu2 }
 0x17a   : > { %v2236_v2 = vadd.f32 %v2235_v53, %v2221_v51  ;;  %v2258_v38 = vmul.f32 %v2221_v51, %v2221_v51  ;;  %v1734_v45 = vadd.f32 %v1701_v22, %v1578_v43 }
 0x17b   : > { %v2189_v40 = vpop.f32.mrf.mxu0 }
 0x17c   : > { %v2273_v29 = vadd.f32 %v2272_v6, %v2258_v38 }
 0x17d   : > { %v2009_v42 = vpop.f32.mrf.mxu3  ;;  %v1550_v37 = vpop.f32.mrf.mxu1 }
 0x17e   : > { %v2042_v27 = vadd.f32 %v2009_v42, %v1734_v45  ;;  %v1580_v8 = vadd.f32 %v1550_v37, %v3515_v21 }
 0x180   : > { %v2222_v25 = vadd.f32 %v2189_v40, %v2042_v27 }
 0x181   : > { %v1704_v7 = vpop.f32.mrf.mxu2 }
 0x182   : > { %v2237_v54 = vadd.f32 %v2236_v2, %v2222_v25  ;;  %v2259_v1 = vmul.f32 %v2222_v25, %v2222_v25  ;;  %v1735_v52 = vadd.f32 %v1704_v7, %v1579_v61 }
 0x183   : > { %v2192_v58 = vpop.f32.mrf.mxu0 }
 0x184   : > { %v2274_v5 = vadd.f32 %v2273_v29, %v2259_v1 }
 0x185   : > { %v2012_v3 = vpop.f32.mrf.mxu3  ;;  %v1553_v59 = vpop.f32.mrf.mxu1 }
 0x186   : > { %v2043_v15 = vadd.f32 %v2012_v3, %v1735_v52  ;;  %v1581_v62 = vadd.f32 %v1553_v59, %v3537_v20 }
 0x188   : > { %v2223_v32 = vadd.f32 %v2192_v58, %v2043_v15 }
 0x189   : > { %v1706_v4 = vpop.f32.mrf.mxu2 }
 0x18a   : > { %v2238_v19 = vadd.f32 %v2237_v54, %v2223_v32  ;;  %v2260_v49 = vmul.f32 %v2223_v32, %v2223_v32  ;;  %v1736_v10 = vadd.f32 %v1706_v4, %v1580_v8 }
 0x18b   : > { %v2194_v50 = vpop.f32.mrf.mxu0 }
 0x18c   : > { %v2275_v0 = vadd.f32 %v2274_v5, %v2260_v49 }
 0x18d   : > { %v2014_v36 = vpop.f32.mrf.mxu3  ;;  %v1555_v63 = vpop.f32.mrf.mxu1 }
 0x18e   : > { %v2044_v56 = vadd.f32 %v2014_v36, %v1736_v10  ;;  %v1582_v31 = vadd.f32 %v1555_v63, %v3551_v28 }
 0x190   : > { %v2224_v13 = vadd.f32 %v2194_v50, %v2044_v56 }
 0x191   : > { %v1709_v9 = vpop.f32.mrf.mxu2 }
 0x192   : > { %v2239_v47 = vadd.f32 %v2238_v19, %v2224_v13  ;;  %v2261_v57 = vmul.f32 %v2224_v13, %v2224_v13  ;;  %v1737_v24 = vadd.f32 %v1709_v9, %v1581_v62 }
 0x193   : > { %v2197_v23 = vpop.f32.mrf.mxu0 }
 0x194   : > { %v2276_v39 = vadd.f32 %v2275_v0, %v2261_v57 }
 0x195   : > { %v2017_v34 = vpop.f32.mrf.mxu3  ;;  %v1558_v21 = vpop.f32.mrf.mxu1 }
 0x196   : > { %v2045_v12 = vadd.f32 %v2017_v34, %v1737_v24  ;;  %v1583_v35 = vadd.f32 %v1558_v21, %v3574_v44 }
 0x198   : > { %v2225_v41 = vadd.f32 %v2197_v23, %v2045_v12 }
 0x199   : > { %v1711_v33 = vpop.f32.mrf.mxu2 }
 0x19a   : > { %v2240_v11 = vadd.f32 %v2239_v47, %v2225_v41  ;;  %v2262_v53 = vmul.f32 %v2225_v41, %v2225_v41  ;;  %v1738_v60 = vadd.f32 %v1711_v33, %v1582_v31 }
 0x19b   : > { %v2199_v16 = vpop.f32.mrf.mxu0 }
 0x19c   : > { %v2277_v55 = vadd.f32 %v2276_v39, %v2262_v53 }
 0x19d   : > { %v2019_v6 = vpop.f32.mrf.mxu3  ;;  %v1560_v20 = vpop.f32.mrf.mxu1 }
 0x19e   : > { %v2046_v30 = vadd.f32 %v2019_v6, %v1738_v60  ;;  %v1584_v37 = vadd.f32 %v1560_v20, %v3589_v26 }
 0x1a0   : > { %v2226_v46 = vadd.f32 %v2199_v16, %v2046_v30 }
 0x1a1   : > { %v1714_v51 = vpop.f32.mrf.mxu2 }
 0x1a2   : > { %v2241_v43 = vadd.f32 %v2240_v11, %v2226_v46  ;;  %v2263_v22 = vmul.f32 %v2226_v46, %v2226_v46  ;;  %v1739_v2 = vadd.f32 %v1714_v51, %v1583_v35 }
 0x1a3   : > { %v2202_v38 = vpop.f32.mrf.mxu0 }
 0x1a4   : > { %v2278_v45 = vadd.f32 %v2277_v55, %v2263_v22 }
 0x1a5   : > { %v2022_v40 = vpop.f32.mrf.mxu3  ;;  %v1563_v29 = vpop.f32.mrf.mxu1 }
 0x1a6   : > { %v2047_v28 = vadd.f32 %v2022_v40, %v1739_v2  ;;  %v1585_v5 = vadd.f32 %v1563_v29, %v3601_v14 }
 0x1a8   : > { %v2227_v42 = vadd.f32 %v2202_v38, %v2047_v28 }
 0x1a9   : > { %v1716_v27 = vpop.f32.mrf.mxu2 }
 0x1aa   : > { %v2242_v25 = vadd.f32 %v2241_v43, %v2227_v42  ;;  %v2264_v61 = vmul.f32 %v2227_v42, %v2227_v42  ;;  %v1740_v7 = vadd.f32 %v1716_v27, %v1584_v37 }
 0x1ab   : > { %v2204_v54 = vpop.f32.mrf.mxu0 }
 0x1ac   : > { %v2279_v1 = vadd.f32 %v2278_v45, %v2264_v61 }
 0x1ad   : > { %v2024_v52 = vpop.f32.mrf.mxu3  ;;  %v1565_v3 = vpop.f32.mrf.mxu1 }
 0x1ae   : > { %v2048_v44 = vadd.f32 %v2024_v52, %v1740_v7  ;;  %v1586_v50 = vadd.f32 %v1565_v3, %v3610_v17 }
 0x1b0   : > { %v2228_v58 = vadd.f32 %v2204_v54, %v2048_v44 }
 0x1b1   : > { %v1719_v59 = vpop.f32.mrf.mxu2 }
 0x1b2   : > { %v2243_v15 = vadd.f32 %v2242_v25, %v2228_v58  ;;  %v2265_v32 = vmul.f32 %v2228_v58, %v2228_v58  ;;  %v1741_v8 = vadd.f32 %v1719_v59, %v1585_v5 }
 0x1b3   : > { %v2207_v4 = vpop.f32.mrf.mxu0 }
 0x1b4   : > { %v2280_v19 = vadd.f32 %v2279_v1, %v2265_v32 }
 0x1b5   : > { %v2027_v49 = vpop.f32.mrf.mxu3  ;;  %v1568_v13 = vpop.f32.mrf.mxu1 }
 0x1b6   : > { %v2049_v26 = vadd.f32 %v2027_v49, %v1741_v8  ;;  %v1587_v24 = vadd.f32 %v1568_v13, %v3616_v48 }
 0x1b8   : > { %v2229_v10 = vadd.f32 %v2207_v4, %v2049_v26 }
 0x1b9   : > { %v1721_v0 = vpop.f32.mrf.mxu2 }
 0x1ba   : > { %v2244_v36 = vadd.f32 %v2243_v15, %v2229_v10  ;;  %v2266_v63 = vmul.f32 %v2229_v10, %v2229_v10  ;;  %v1742_v56 = vadd.f32 %v1721_v0, %v1586_v50 }
 0x1bb   : > { %v2209_v62 = vpop.f32.mrf.mxu0 }
 0x1bc   : > { %v2281_v9 = vadd.f32 %v2280_v19, %v2266_v63 }
 0x1bd   : > { %v2029_v14 = vpop.f32.mrf.mxu3  ;;  %v1570_v41 = vpop.f32.mrf.mxu1 }
 0x1be   : > { %v2050_v47 = vadd.f32 %v2029_v14, %v1742_v56  ;;  %v1588_v53 = vadd.f32 %v1570_v41, %v3619_v18 }
 0x1c0   : > { %v2230_v57 = vadd.f32 %v2209_v62, %v2050_v47 }
 0x1c1   : > { %v1724_v23 = vpop.f32.mrf.mxu2 }
 0x1c2   : > { %v2245_v39 = vadd.f32 %v2244_v36, %v2230_v57  ;;  %v2267_v34 = vmul.f32 %v2230_v57, %v2230_v57  ;;  %v1743_v21 = vadd.f32 %v1724_v23, %v1587_v24 }
 0x1c3   : > { %v2212_v17 = vpop.f32.mrf.mxu0 }
 0x1c4   : > { %v2282_v12 = vadd.f32 %v2281_v9, %v2267_v34 }
 0x1c5   : > { %v2032_v31 = vpop.f32.mrf.mxu3 }
 0x1c6   : > { %v2051_v33 = vadd.f32 %v2032_v31, %v1743_v21 }
 0x1c8   : > { %v2231_v11 = vadd.f32 %v2212_v17, %v2051_v33 }
 0x1c9   : > { %v1726_v60 = vpop.f32.mrf.mxu2 }
 0x1ca   : > { %v2246_v16 = vadd.f32 %v2245_v39, %v2231_v11  ;;  %v2268_v55 = vmul.f32 %v2231_v11, %v2231_v11  ;;  %v1744_v6 = vadd.f32 %v1726_v60, %v1588_v53 }
 0x1cb   : > { %v2214_v46 = vpop.f32.mrf.mxu0 }
 0x1cc   : > { %v2283_v20 = vadd.f32 %v2282_v12, %v2268_v55 }
 0x1cd   : > { %v2034_v48 = vpop.f32.mrf.mxu3 }
 0x1ce   : > { %v2052_v30 = vadd.f32 %v2034_v48, %v1744_v6 }
 0x1d0   : > { %v2232_v35 = vadd.f32 %v2214_v46, %v2052_v30 }
 0x1d2   : > { %v2247_v51 = vadd.f32 %v2246_v16, %v2232_v35  ;;  %v2269_v43 = vmul.f32 %v2232_v35, %v2232_v35 }
 0x1d4   : > { %v2248_v22 = vrot.slane %v2247_v51, 4  ;;  %v2284_v2 = vadd.f32 %v2283_v20, %v2269_v43 }
 0x1d6   : > { %v2249_v38 = vadd.f32 %v2248_v22, %v2247_v51  ;;  %v2285_v45 = vrot.slane %v2284_v2, 4 }
 0x1d8   : > { %v2250_v40 = vrot.slane %v2249_v38, 2  ;;  %v2286_v18 = vadd.f32 %v2285_v45, %v2284_v2 }
 0x1da   : > { %v2251_v28 = vadd.f32 %v2250_v40, %v2249_v38  ;;  %v2287_v29 = vrot.slane %v2286_v18, 2 }
 0x1dc   : > { %v2252_v42 = vrot.slane %v2251_v28, 1  ;;  %v2288_v37 = vadd.f32 %v2287_v29, %v2286_v18 }
 0x1de   : > { %v2289_v27 = vrot.slane %v2288_v37, 1  ;;  %v2253_v25 = vadd.f32 %v2252_v42, %v2251_v28 }
 0x1e0   : > { %v2290_v61 = vadd.f32 %v2289_v27, %v2288_v37 }
 0x1e2   : > { %v2292_v7 = vsel %vm2291_vm8, %v2253_v25, %v2290_v61 }
 0x1e3   : > { %v2294_v54 = vsel %vm2293_vm9, %v2292_v7, 0.0 }
 0x1e4   : > { %2295 = vst [vmem:[%s312_s13] sm:$0xff] %v2294_v54 }
 0x1e5 PF: > { %s14_s19 = sadd.s32 1, %s2734_s19   ;;  %s3668_s15 = smov %s2726_s17 }
 0x1e6   : > { %p11_p8 = scmp.ge.s32.totalorder %s14_s19, 6   ;;  %s3669_s16 = smov %s2730_s18 }
 0x1e7   : > { %s3670_s17 = smov %s3673_s20  ;;  %s3671_s18 = smov %s3677_s21 }
 0x1e8   :  { %13 = sbr.rel (!%p11_p8) target bundleno = 3 (0x3), region = 72 }

// kernel: double_2d_conv.5
= control target key start
LH: loop header
LB: loop body
LE: loop exit
PB: predicated region body
PF: predicated region fallthrough
CT: control target
= control target key end

     0   :  { %s2843_s21 = smov 0   ;;  %s2845_s22 = smov 0   ;;  %s3797_s0 = inlined_call_operand.vmem [shape: bf16[2,16,18,8], index: 0, kind: input, shape index: {}]   ;;  %s3798_s1 = inlined_call_operand.vmem [shape: bf16[2,16,18,8], index: 1, kind: input, shape index: {}]   ;;  %s3799_s2 = inlined_call_operand.vmem [shape: bf16[2,16,18,8], index: 2, kind: input, shape index: {}]   ;;  %s3800_s3 = inlined_call_operand.vmem [shape: bf16[3,3,8,128], index: 3, kind: input, shape index: {}]   ;;  %s3801_s4 = inlined_call_operand.vmem [shape: f32[1,128], index: 4, kind: input, shape index: {}]   ;;  %s3802_s5 = inlined_call_operand.vmem [shape: f32[1,128], index: 5, kind: input, shape index: {}]   ;;  %s3803_s6 = inlined_call_operand.vmem [shape: f32[512,128], index: 6, kind: output, shape index: {}]  }
   0x1   :  { %s2847_s23 = smov 0   ;;  %s2849_s24 = smov 0  }
   0x2   :  { %s2851_s25 = smov 0  }
   0x3 LB: > { %s25_s26 = sadd.s32 1, %s2798_s23  ;;  %s28_s27 = sadd.s32 1, %s2802_s24  ;;  %s2806_s25 = sphi %s2851_s25, %s16_s25   ;;  %s2802_s24 = sphi %s2849_s24, %s3815_s24   ;;  %s2798_s23 = sphi %s2847_s23, %s3814_s23   ;;  %s2794_s22 = sphi %s2845_s22, %s3813_s22   ;;  %s2790_s21 = sphi %s2843_s21, %s3812_s21  }
   0x4   : > { %p26_p0 = scmp.ge.s32.totalorder %s25_s26, 2  ;;  %p2493_p1 = scmp.ge.s32.totalorder %s2806_s25, 1 }
   0x5   : > { %p272_p2 = scmp.lt.s32.totalorder %s2806_s25, 5 }
   0x6   : > { %s3817_s26 = smov (%p26_p0, %s25_s26), 0  ;;  %s3819_s27 = smov (!%p26_p0, %s28_s27), %s2802_s24 }
   0x7   : > { %p273_p3 = pnand %p2493_p1, %p272_p2  ;;  %p30_p4 = scmp.ge.s32.totalorder %s3819_s27, 2 }
   0x9   : > { %s3821_s27 = smov (%p30_p4, %s3819_s27), 0  ;;  %276 = sbr.rel (%p273_p3) target bundleno = 473 (0x1d9), region = 44 }
   0xe   : > { %v374_v0 = vld [vmem:[%s3800_s3 + $0x4] sm:$0xf]  ;;  %vm650_vm0 = vcmask 1043456   ;;  %s2494_s30 = sshll.u32 %s2790_s21, 3  ;;  %p330_p5 = scmp.lt.s32.totalorder %s2794_s22, 1  ;;  %vm625_vm3 = vcmask 64512  }
   0xf   : > { %v652_v1 = vsel %vm650_vm0, %v374_v0, 0  ;;  %p332_p6 = scmp.lt.s32.totalorder %s2494_s30, 15  ;;  %v375_v2 = vld [vmem:[%s3800_s3 + $0x8] sm:$0xf]  ;;  %v376_v4 = vld [vmem:[%s3800_s3 + $0xc] sm:$0xf] }
  0x10   : > { %2721 = vmatpush.bf16.msra.mxu1 %v652_v1  ;;  %2722 = vmatpush.bf16.msra.mxu2 %v652_v1  ;;  %s331_s7 = scalar_select %p330_p5, %s2794_s22, 1  ;;  %v935_v3 = vsel %vm650_vm0, %v375_v2, 0  ;;  %v373_v5 = vld [vmem:[%s3800_s3] sm:$0xf]  ;;  %v377_v6 = vld [vmem:[%s3800_s3 + $0x10] sm:$0xf] }
  0x11   : > { %2723 = vmatpush.bf16.msra.mxu3 %v652_v1  ;;  %661 = vmatpush.bf16.msra.mxu0 %v652_v1  ;;  %s3823_s30 = smov (!%p332_p6, %s2494_s30), 15  ;;  %v1091_v7 = vsel %vm650_vm0, %v376_v4, 0  ;;  %v768_v8 = vsel %vm650_vm0, %v373_v5, 0  ;;  %v1399_v9 = vsel %vm650_vm0, %v377_v6, 0  ;;  %vm406_vm1 = vsmask.f32 3328 }
  0x12   : > { %s2725_s10 = smul.u32 48, %s331_s7  ;;  %vm407_vm2 = vsmask.f32 7440  ;;  %vm827_vm5 = vcmask 1042432   ;;  %vm828_vm6 = vcmask 1046532  }
  0x13   : > { %s2724_s11 = smul.u32 3, %s3823_s30  ;;  %vm2944_vm4 = vmor %vm406_vm1, %vm407_vm2 }
  0x14   : > { %944 = vmatpush.bf16.msrb.mxu2 %v935_v3  ;;  %777 = vmatpush.bf16.msrb.mxu1 %v768_v8  ;;  %vm3084_vm7 = vmor %vm827_vm5, %vm828_vm6 }
  0x15   : > { %s336_s18 = sadd.s32 %s2725_s10, %s2724_s11  ;;  %1100 = vmatpush.bf16.msrb.mxu3 %v1091_v7  ;;  %1408 = vmatpush.bf16.msrb.mxu0 %v1399_v9 }
  0x16   : > { %s2900_s19 = sshll.u32 %s336_s18, 2 }
  0x17   : > { %s2906_s29 = scalar_lea.vmem %s3797_s0, %s2900_s19  ;;  %s3059_s8 = scalar_lea.vmem %s3798_s1, %s2900_s19 }
  0x18   : > { %v2909_v10 = vld [vmem:[%s2906_s29 + $0x18] sm:$0xf]  ;;  %v2912_v11 = vld [vmem:[%s2906_s29 + $0x1c] sm:$0xf]  ;;  %v2915_v12 = vld [vmem:[%s2906_s29 + $0x20] sm:$0x1]  ;;  %s3333_s20 = scalar_lea.vmem %s3799_s2, %s2900_s19 }
  0x19   : > { %v458_v13 = vshrl.u32 %v2909_v10, 16  ;;  %v461_v14 = vshll.u32 %v2909_v10, 16  ;;  %v467_v15 = vshll.u32 %v2912_v11, 16  ;;  %v471_v16 = vshrl.u32 %v2912_v11, 16  ;;  %v2922_v17 = vld [vmem:[%s2906_s29 + $0x30] sm:$0xf] }
  0x1a   : > { %v477_v18 = vshll.u32 %v2915_v12, 16  ;;  %v2926_v19 = vld [vmem:[%s2906_s29 + $0x34] sm:$0xf]  ;;  %v2929_v20 = vld [vmem:[%s2906_s29 + $0x38] sm:$0x1]  ;;  %v506_v21 = vshrl.u32 %v2922_v17, 16 }
  0x1b   : > { %v460_v22 = vrot.slane %v458_v13, 4  ;;  %v463_v23 = vrot.slane %v461_v14, 5  ;;  %v469_v24 = vrot.slane %v467_v15, 5  ;;  %v473_v25 = vrot.slane %v471_v16, 4  ;;  %v2933_v26 = vld [vmem:[%s2906_s29 + $0x48] sm:$0xf] }
  0x1c   : > { %v479_v27 = vrot.slane %v477_v18, 5  ;;  %v508_v28 = vrot.slane %v506_v21, 4  ;;  %v509_v29 = vshll.u32 %v2922_v17, 16  ;;  %v515_v30 = vshll.u32 %v2926_v19, 16  ;;  %v2940_v35 = vld [vmem:[%s2906_s29 + $0x4c] sm:$0xf] }
  0x1d   : > { %v464_v31 = vor.u32 %v463_v23, %v460_v22  ;;  %v474_v32 = vor.u32 %v473_v25, %v469_v24  ;;  %v519_v33 = vshrl.u32 %v2926_v19, 16  ;;  %v525_v34 = vshll.u32 %v2929_v20, 16  ;;  %v2951_v46 = vld [vmem:[%s2906_s29 + $0x50] sm:$0x1]  ;;  %v2960_v54 = vld [vmem:[%s2906_s29] sm:$0xf] }
  0x1e   : > { %v511_v37 = vrot.slane %v509_v29, 5  ;;  %v517_v38 = vrot.slane %v515_v30, 5  ;;  %v554_v39 = vshrl.u32 %v2933_v26, 16  ;;  %v557_v40 = vshll.u32 %v2933_v26, 16  ;;  %v2966_v2 = vld [vmem:[%s2906_s29 + $0x4] sm:$0xf] }
  0x1f   : > { %v465_v41 = vrot.slane %v464_v31, 4  ;;  %v475_v42 = vrot.slane %v474_v32, 4  ;;  %v521_v43 = vrot.slane %v519_v33, 4  ;;  %v527_v44 = vrot.slane %v525_v34, 5  ;;  %v2972_v8 = vld [vmem:[%s2906_s29 + $0x8] sm:$0x1] }
  0x20   : > { %v512_v45 = vor.u32 %v511_v37, %v508_v28  ;;  %v556_v47 = vrot.slane %v554_v39, 4  ;;  %v559_v48 = vrot.slane %v557_v40, 5  ;;  %v563_v49 = vshll.u32 %v2940_v35, 16  ;;  %v2979_v16 = vld [vmem:[%s2906_s29 + $0x24] sm:$0xf]  ;;  %s2500_s19 = sshll.u32 %s2794_s22, 1 }
  0x21   : > { %v470_v50 = vsel %vm2944_vm4, %v465_v41, %v469_v24  ;;  %v480_v51 = vsel %vm2944_vm4, %v475_v42, %v479_v27  ;;  %v522_v52 = vor.u32 %v521_v43, %v517_v38  ;;  %v567_v53 = vshrl.u32 %v2940_v35, 16  ;;  %v2986_v29 = vld [vmem:[%s2906_s29 + $0x28] sm:$0xf]  ;;  %v2991_v33 = vld [vmem:[%s2906_s29 + $0x2c] sm:$0x1]  ;;  %s363_s28 = sadd.s32 %s2790_s21, %s2500_s19 }
  0x22   : > { %v605_v55 = vunpack.c.l.b16 %v470_v50  ;;  %v606_v56 = vunpack.c.l.b16 %v480_v51  ;;  %v513_v57 = vrot.slane %v512_v45, 4  ;;  %v560_v58 = vor.u32 %v559_v48, %v556_v47  ;;  %v2997_v41 = vld [vmem:[%s2906_s29 + $0x3c] sm:$0xf] }
  0x23   : > { %v523_v59 = vrot.slane %v522_v52, 4  ;;  %v565_v60 = vrot.slane %v563_v49, 5  ;;  %v569_v61 = vrot.slane %v567_v53, 4  ;;  %v573_v62 = vshll.u32 %v2951_v46, 16 }
  0x24   : > { %v619_v63 = vpack.c.b16 %v606_v56, %v605_v55  ;;  %v518_v0 = vsel %vm2944_vm4, %v513_v57, %v517_v38  ;;  %v561_v1 = vrot.slane %v560_v58, 4  ;;  %v410_v3 = vshrl.u32 %v2960_v54, 16  ;;  %v3003_v55 = vld [vmem:[%s2906_s29 + $0x40] sm:$0xf] }
  0x25   : > { %v528_v4 = vsel %vm2944_vm4, %v523_v59, %v527_v44  ;;  %v609_v5 = vunpack.c.l.b16 %v518_v0  ;;  %v570_v6 = vor.u32 %v569_v61, %v565_v60  ;;  %v575_v7 = vrot.slane %v573_v62, 5  ;;  %v3014_v62 = vld [vmem:[%s2906_s29 + $0x54] sm:$0xf] }
  0x26   : > { %2505 = vmatmul.msk.bf16.vlgmr.msra.gmra.mxu1 %vm625_vm3, %v619_v63  ;;  %v610_v9 = vunpack.c.l.b16 %v528_v4  ;;  %v566_v13 = vsel %vm2944_vm4, %v561_v1, %v565_v60  ;;  %v412_v14 = vrot.slane %v410_v3, 4  ;;  %v413_v15 = vshll.u32 %v2960_v54, 16  ;;  %v3010_v60 = vld [vmem:[%s2906_s29 + $0x44] sm:$0x1] }
  0x27   : > { %v571_v18 = vrot.slane %v570_v6, 4  ;;  %v613_v21 = vunpack.c.l.b16 %v566_v13  ;;  %v419_v22 = vshll.u32 %v2966_v2, 16  ;;  %v423_v23 = vshrl.u32 %v2966_v2, 16 }
  0x28   : > { %v621_v24 = vpack.c.b16 %v610_v9, %v609_v5  ;;  %v415_v25 = vrot.slane %v413_v15, 5  ;;  %v429_v27 = vshll.u32 %v2972_v8, 16  ;;  %v835_v28 = vrot.slane %v2972_v8, 5 }
  0x29   : > { %v576_v30 = vsel %vm2944_vm4, %v571_v18, %v575_v7  ;;  %v421_v31 = vrot.slane %v419_v22, 5  ;;  %v425_v32 = vrot.slane %v423_v23, 4  ;;  %v482_v34 = vshrl.u32 %v2979_v16, 16 }
  0x2a   : > { %2507 = vmatmul.msk.bf16.vlgmr.msra.gmra.mxu2 %vm625_vm3, %v621_v24  ;;  %v614_v37 = vunpack.c.l.b16 %v576_v30  ;;  %v416_v38 = vor.u32 %v415_v25, %v412_v14  ;;  %v431_v39 = vrot.slane %v429_v27, 5  ;;  %v485_v40 = vshll.u32 %v2979_v16, 16  ;;  %v3025_v24 = vld [vmem:[%s2906_s29 + $0x58] sm:$0xf]  ;;  %v3028_v25 = vld [vmem:[%s2906_s29 + $0x5c] sm:$0x1] }
  0x2b   : > { %v426_v42 = vor.u32 %v425_v32, %v421_v31  ;;  %v484_v43 = vrot.slane %v482_v34, 4  ;;  %v491_v44 = vshll.u32 %v2986_v29, 16  ;;  %v495_v45 = vshrl.u32 %v2986_v29, 16  ;;  %v3033_v34 = vld [vmem:[%s2906_s29 + $0xc] sm:$0xf] }
  0x2c   : > { %v623_v47 = vpack.c.b16 %v614_v37, %v613_v21  ;;  %v417_v48 = vrot.slane %v416_v38, 4  ;;  %v487_v49 = vrot.slane %v485_v40, 5  ;;  %v501_v50 = vshll.u32 %v2991_v33, 16 }
  0x2d   : > { %v427_v51 = vrot.slane %v426_v42, 4  ;;  %v493_v52 = vrot.slane %v491_v44, 5  ;;  %v497_v53 = vrot.slane %v495_v45, 4  ;;  %v530_v56 = vshrl.u32 %v2997_v41, 16 }
  0x2e   : > { %2509 = vmatmul.msk.bf16.vlgmr.msra.gmra.mxu3 %vm625_vm3, %v623_v47  ;;  %v422_v57 = vsel %vm2944_vm4, %v417_v48, %v421_v31  ;;  %v488_v58 = vor.u32 %v487_v49, %v484_v43  ;;  %v503_v59 = vrot.slane %v501_v50, 5  ;;  %v533_v61 = vshll.u32 %v2997_v41, 16  ;;  %v3043_v50 = vld [vmem:[%s2906_s29 + $0x10] sm:$0xf] }
  0x2f   : > { %v432_v63 = vsel %vm2944_vm4, %v427_v51, %v431_v39  ;;  %v601_v0 = vunpack.c.l.b16 %v422_v57  ;;  %v498_v1 = vor.u32 %v497_v53, %v493_v52  ;;  %v532_v3 = vrot.slane %v530_v56, 4 }
  0x30   : > { %v602_v4 = vunpack.c.l.b16 %v432_v63  ;;  %v489_v5 = vrot.slane %v488_v58, 4  ;;  %v535_v6 = vrot.slane %v533_v61, 5  ;;  %v539_v7 = vshll.u32 %v3003_v55, 16  ;;  %v3047_v58 = vld [vmem:[%s2906_s29 + $0x14] sm:$0x1] }
  0x31   : > { %v499_v9 = vrot.slane %v498_v1, 4  ;;  %v543_v13 = vshrl.u32 %v3003_v55, 16  ;;  %v549_v14 = vshll.u32 %v3010_v60, 16  ;;  %v578_v15 = vshrl.u32 %v3014_v62, 16 }
  0x32   : > { %v617_v18 = vpack.c.b16 %v602_v4, %v601_v0  ;;  %v494_v21 = vsel %vm2944_vm4, %v489_v5, %v493_v52  ;;  %v536_v22 = vor.u32 %v535_v6, %v532_v3  ;;  %v541_v23 = vrot.slane %v539_v7, 5 }
  0x33   : > { %v504_v27 = vsel %vm2944_vm4, %v499_v9, %v503_v59  ;;  %v607_v30 = vunpack.c.l.b16 %v494_v21  ;;  %v545_v31 = vrot.slane %v543_v13, 4  ;;  %v551_v32 = vrot.slane %v549_v14, 5 }
  0x34   : > { %2503 = vmatmul.msk.bf16.vlgmr.msra.gmra.mxu0 %vm625_vm3, %v617_v18  ;;  %v608_v37 = vunpack.c.l.b16 %v504_v27  ;;  %v537_v38 = vrot.slane %v536_v22, 4  ;;  %v580_v39 = vrot.slane %v578_v15, 4  ;;  %v581_v40 = vshll.u32 %v3014_v62, 16 }
  0x35   : > { %v546_v42 = vor.u32 %v545_v31, %v541_v23  ;;  %v587_v43 = vshll.u32 %v3025_v24, 16  ;;  %v591_v44 = vshrl.u32 %v3025_v24, 16  ;;  %v597_v45 = vshll.u32 %v3028_v25, 16  ;;  %v3068_v31 = vld [vmem:[%s3059_s8] sm:$0xf] }
  0x36   : > { %v620_v47 = vpack.c.b16 %v608_v37, %v607_v30  ;;  %v542_v48 = vsel %vm2944_vm4, %v537_v38, %v541_v23  ;;  %v583_v49 = vrot.slane %v581_v40, 5  ;;  %v434_v51 = vshrl.u32 %v3033_v34, 16  ;;  %v379_v30 = vld [vmem:[%s3800_s3 + $0x18] sm:$0xf] }
  0x37   : > { %v547_v52 = vrot.slane %v546_v42, 4  ;;  %v611_v53 = vunpack.c.l.b16 %v542_v48  ;;  %v589_v56 = vrot.slane %v587_v43, 5  ;;  %v593_v57 = vrot.slane %v591_v44, 4 }
  0x38   : > { %2506 = vmatmul.msk.bf16.gmra.mxu1 %vm625_vm3, %v620_v47  ;;  %v584_v59 = vor.u32 %v583_v49, %v580_v39  ;;  %v599_v61 = vrot.slane %v597_v45, 5  ;;  %v436_v63 = vrot.slane %v434_v51, 4  ;;  %v437_v0 = vshll.u32 %v3033_v34, 16  ;;  %v3077_v47 = vld [vmem:[%s3059_s8 + $0x4] sm:$0xf] }
  0x39   : > { %v552_v1 = vsel %vm2944_vm4, %v547_v52, %v551_v32  ;;  %v594_v3 = vor.u32 %v593_v57, %v589_v56  ;;  %v443_v4 = vshll.u32 %v3043_v50, 16  ;;  %v447_v5 = vshrl.u32 %v3043_v50, 16 }
  0x3a   : > { %v612_v6 = vunpack.c.l.b16 %v552_v1  ;;  %v585_v7 = vrot.slane %v584_v59, 4  ;;  %v439_v9 = vrot.slane %v437_v0, 5  ;;  %v453_v13 = vshll.u32 %v3047_v58, 16 }
  0x3b   : > { %v595_v14 = vrot.slane %v594_v3, 4  ;;  %v445_v15 = vrot.slane %v443_v4, 5  ;;  %v449_v18 = vrot.slane %v447_v5, 4  ;;  %v2551_v42 = vrot.slane %v2960_v54, 9  ;;  %v378_v3 = vld [vmem:[%s3800_s3 + $0x14] sm:$0xf] }
  0x3c   : > { %v622_v21 = vpack.c.b16 %v612_v6, %v611_v53  ;;  %v590_v22 = vsel %vm2944_vm4, %v585_v7, %v589_v56  ;;  %v440_v23 = vor.u32 %v439_v9, %v436_v63  ;;  %v455_v27 = vrot.slane %v453_v13, 5  ;;  %v381_v9 = vld [vmem:[%s3800_s3 + $0x20] sm:$0xf] }
  0x3d   : > { %v600_v32 = vsel %vm2944_vm4, %v595_v14, %v599_v61  ;;  %v615_v37 = vunpack.c.l.b16 %v590_v22  ;;  %v450_v38 = vor.u32 %v449_v18, %v445_v15  ;;  %v832_v43 = vrot.slane %v2966_v2, 5  ;;  %v3089_v2 = vld [vmem:[%s3059_s8 + $0x8] sm:$0x1]  ;;  %v380_v61 = vld [vmem:[%s3800_s3 + $0x1c] sm:$0xf]  ;;  %v2697_v14 = vld [vmem:[%s2906_s29] sm:$0xff] }
  0x3e   : > { %2508 = vmatmul.msk.bf16.gmra.mxu2 %vm625_vm3, %v622_v21  ;;  %v616_v39 = vunpack.c.l.b16 %v600_v32  ;;  %v441_v40 = vrot.slane %v440_v23, 4  ;;  %v1735_v45 = vsel %vm650_vm0, %v379_v30, 0  ;;  %v1159_v48 = vshrl.u32 %v3068_v31, 16 }
  0x3f   : > { %v451_v44 = vrot.slane %v450_v38, 4  ;;  %v1162_v49 = vshll.u32 %v3068_v31, 16  ;;  %v834_v54 = vrot.slane %v832_v43, 4  ;;  %1744 = vmatpush.bf16.msra.mxu2 %v1735_v45  ;;  %v1168_v1 = vshll.u32 %v3077_v47, 16  ;;  %v3118_v38 = vld [vmem:[%s3059_s8 + $0xc] sm:$0xf] }
  0x40   : > { %v624_v51 = vpack.c.b16 %v616_v39, %v615_v37  ;;  %v446_v52 = vsel %vm2944_vm4, %v441_v40, %v445_v15  ;;  %v1161_v59 = vrot.slane %v1159_v48, 4  ;;  %v833_v4 = vsel %vm3084_vm7, %v2551_v42, %v832_v43  ;;  %v3122_v39 = vld [vmem:[%s3059_s8 + $0x10] sm:$0xf] }
  0x41   : > { %v456_v56 = vsel %vm2944_vm4, %v451_v44, %v455_v27  ;;  %v603_v57 = vunpack.c.l.b16 %v446_v52  ;;  %v1164_v0 = vrot.slane %v1162_v49, 5  ;;  %v836_v5 = vsel %vm3084_vm7, %v834_v54, %v835_v28 }
  0x42   : > { %2510 = vmatmul.msk.bf16.gmra.mxu3 %vm625_vm3, %v624_v51  ;;  %v604_v63 = vunpack.c.l.b16 %v456_v56  ;;  %v1172_v6 = vshrl.u32 %v3077_v47, 16  ;;  %v1178_v7 = vshll.u32 %v3089_v2, 16  ;;  %v1170_v18 = vrot.slane %v1168_v1, 5 }
  0x43   : > { %v1165_v15 = vor.u32 %v1164_v0, %v1161_v59  ;;  %v2043_v21 = vsel %vm650_vm0, %v380_v61, 0  ;;  %v1579_v28 = vsel %vm650_vm0, %v378_v3, 0  ;;  %v886_v22 = vunpack.c.l.b16 %v833_v4  ;;  %v2705_v0 = vld [vmem:[%s3059_s8] sm:$0xff] }
  0x44   : > { %v618_v13 = vpack.c.b16 %v604_v63, %v603_v57  ;;  %v1174_v8 = vrot.slane %v1172_v6, 4  ;;  %2052 = vmatpush.bf16.msra.mxu3 %v2043_v21  ;;  %v887_v23 = vunpack.c.l.b16 %v836_v5  ;;  %1588 = vmatpush.bf16.msra.mxu1 %v1579_v28  ;;  %v2223_v30 = vsel %vm650_vm0, %v381_v9, 0 }
  0x45   : > { %v1166_v27 = vrot.slane %v1165_v15, 4  ;;  %v1180_v37 = vrot.slane %v1178_v7, 5  ;;  %2232 = vmatpush.bf16.msra.mxu0 %v2223_v30  ;;  %v839_v42 = vrot.slane %v3043_v50, 5  ;;  %v1183_v45 = vshrl.u32 %v3118_v38, 16  ;;  %v3156_v30 = vld [vmem:[%s3059_s8 + $0x18] sm:$0xf] }
  0x46   : > { %2504 = vmatmul.msk.bf16.gmra.mxu0 %vm625_vm3, %v618_v13  ;;  %v1175_v32 = vor.u32 %v1174_v8, %v1170_v18  ;;  %v902_v43 = vpack.c.b16 %v887_v23, %v886_v22  ;;  %v1186_v48 = vshll.u32 %v3118_v38, 16  ;;  %v1192_v51 = vshll.u32 %v3122_v39, 16  ;;  %v2698_v8 = vld [vmem:[%s2906_s29 + $0xc] sm:$0xff] }
  0x47   : > { %v1171_v44 = vsel %vm2944_vm4, %v1166_v27, %v1170_v18  ;;  %v1196_v52 = vshrl.u32 %v3122_v39, 16  ;;  %v2553_v54 = vrot.slane %v2909_v10, 9  ;;  %v2552_v50 = vrot.slane %v3033_v34, 9 }
  0x48   : > { %2543 = vmatmul.msk.bf16.vlgmr.msrb.gmra.mxu1 %vm625_vm3, %v2697_v14  ;;  %v1176_v40 = vrot.slane %v1175_v32, 4  ;;  %v846_v56 = vrot.slane %v2912_v11, 5  ;;  %v1350_v57 = vunpack.c.l.b16 %v1171_v44  ;;  %v841_v59 = vrot.slane %v839_v42, 4  ;;  %v3143_v11 = vld [vmem:[%s3059_s8 + $0x14] sm:$0x1] }
  0x49   : > { %v842_v61 = vrot.slane %v3047_v58, 5  ;;  %v849_v63 = vrot.slane %v2915_v12, 5  ;;  %v1185_v3 = vrot.slane %v1183_v45, 4  ;;  %v1188_v4 = vrot.slane %v1186_v48, 5 }
  0x4a   : > { %v1181_v49 = vsel %vm2944_vm4, %v1176_v40, %v1180_v37  ;;  %v847_v10 = vsel %vm3084_vm7, %v2553_v54, %v846_v56  ;;  %v1194_v5 = vrot.slane %v1192_v51, 5  ;;  %v1198_v34 = vrot.slane %v1196_v52, 4  ;;  %v3160_v40 = vld [vmem:[%s3059_s8 + $0x1c] sm:$0xf] }
  0x4b   : > { %v1351_v1 = vunpack.c.l.b16 %v1181_v49  ;;  %v848_v6 = vrot.slane %v846_v56, 4  ;;  %v890_v7 = vunpack.c.l.b16 %v847_v10  ;;  %v840_v12 = vsel %vm3084_vm7, %v2552_v50, %v839_v42 }
  0x4c   : > { %v843_v13 = vsel %vm3084_vm7, %v841_v59, %v842_v61  ;;  %v1189_v14 = vor.u32 %v1188_v4, %v1185_v3  ;;  %v1199_v18 = vor.u32 %v1198_v34, %v1194_v5  ;;  %v1202_v21 = vshll.u32 %v3143_v11, 16  ;;  %v2706_v59 = vld [vmem:[%s3059_s8 + $0xc] sm:$0xff] }
  0x4d   : > { %v850_v58 = vsel %vm3084_vm7, %v848_v6, %v849_v63  ;;  %v1366_v9 = vpack.c.b16 %v1351_v1, %v1350_v57  ;;  %v888_v22 = vunpack.c.l.b16 %v840_v12  ;;  %v889_v23 = vunpack.c.l.b16 %v843_v13  ;;  %v3190_v13 = vld [vmem:[%s3059_s8 + $0x28] sm:$0xf] }
  0x4e   : > { %2559 = vmatmul.msk.bf16.vlgmr.msrb.gmra.mxu2 %vm625_vm3, %v902_v43  ;;  %v891_v15 = vunpack.c.l.b16 %v850_v58  ;;  %v1190_v27 = vrot.slane %v1189_v14, 4  ;;  %v1200_v32 = vrot.slane %v1199_v18, 4  ;;  %v1204_v37 = vrot.slane %v1202_v21, 5  ;;  %v2699_v58 = vld [vmem:[%s2906_s29 + $0x18] sm:$0xff] }
  0x4f   : > { %v2554_v42 = vrot.slane %v2979_v16, 9  ;;  %v853_v43 = vrot.slane %v2986_v29, 5  ;;  %v903_v44 = vpack.c.b16 %v889_v23, %v888_v22  ;;  %v1207_v45 = vshrl.u32 %v3156_v30, 16 }
  0x50   : > { %v904_v28 = vpack.c.b16 %v891_v15, %v890_v7  ;;  %v856_v48 = vrot.slane %v2991_v33, 5  ;;  %v1195_v49 = vsel %vm2944_vm4, %v1190_v27, %v1194_v5  ;;  %v1210_v51 = vshll.u32 %v3156_v30, 16  ;;  %v3180_v5 = vld [vmem:[%s3059_s8 + $0x20] sm:$0x1] }
  0x51   : > { %v854_v52 = vsel %vm3084_vm7, %v2554_v42, %v853_v43  ;;  %v855_v54 = vrot.slane %v853_v43, 4  ;;  %v1205_v16 = vsel %vm2944_vm4, %v1200_v32, %v1204_v37  ;;  %v1216_v29 = vshll.u32 %v3160_v40, 16 }
  0x52   : > { %2599 = vmatmul.msk.bf16.vlgmr.msrb.gmra.mxu3 %vm625_vm3, %v2705_v0  ;;  %v1220_v50 = vshrl.u32 %v3160_v40, 16  ;;  %v892_v56 = vunpack.c.l.b16 %v854_v52  ;;  %v1352_v61 = vunpack.c.l.b16 %v1195_v49  ;;  %v1353_v63 = vunpack.c.l.b16 %v1205_v16 }
  0x53   : > { %v857_v33 = vsel %vm3084_vm7, %v855_v54, %v856_v48  ;;  %v1209_v0 = vrot.slane %v1207_v45, 4  ;;  %v1212_v1 = vrot.slane %v1210_v51, 5  ;;  %v1218_v3 = vrot.slane %v1216_v29, 5  ;;  %v2707_v45 = vld [vmem:[%s3059_s8 + $0x18] sm:$0xff]  ;;  %v3204_v51 = vld [vmem:[%s3059_s8 + $0x2c] sm:$0x1] }
  0x54   : > { %v893_v57 = vunpack.c.l.b16 %v857_v33  ;;  %v1222_v4 = vrot.slane %v1220_v50, 4  ;;  %v1367_v34 = vpack.c.b16 %v1353_v63, %v1352_v61  ;;  %v1226_v12 = vshll.u32 %v3180_v5, 16  ;;  %v2700_v50 = vld [vmem:[%s2906_s29 + $0x24] sm:$0xff] }
  0x55   : > { %v1213_v6 = vor.u32 %v1212_v1, %v1209_v0  ;;  %v1240_v22 = vshll.u32 %v3190_v13, 16  ;;  %v1244_v23 = vshrl.u32 %v3190_v13, 16  ;;  %v1250_v16 = vshll.u32 %v3204_v51, 16 }
  0x56   : > { %2607 = vmatmul.msk.bf16.vlgmr.msrb.gmra.mxu0 %vm625_vm3, %v1366_v9  ;;  %v905_v10 = vpack.c.b16 %v893_v57, %v892_v56  ;;  %v1223_v7 = vor.u32 %v1222_v4, %v1218_v3  ;;  %v3187_v9 = vld [vmem:[%s3059_s8 + $0x24] sm:$0xf]  ;;  %v1228_v18 = vrot.slane %v1226_v12, 5  ;;  %v2555_v12 = vrot.slane %v2922_v17, 9 }
  0x57   : > { %v1214_v14 = vrot.slane %v1213_v6, 4  ;;  %v1231_v21 = vshrl.u32 %v3187_v9, 16  ;;  %v1242_v43 = vrot.slane %v1240_v22, 5  ;;  %v1252_v57 = vrot.slane %v1250_v16, 5 }
  0x58   : > { %2544 = vmatmul.msk.bf16.gmra.mxu1 %vm625_vm3, %v2698_v8  ;;  %v1224_v15 = vrot.slane %v1223_v7, 4  ;;  %v1234_v8 = vshll.u32 %v3187_v9, 16  ;;  %v863_v22 = vrot.slane %v2929_v20, 5 }
  0x59   : > { %v1219_v27 = vsel %vm2944_vm4, %v1214_v14, %v1218_v3  ;;  %v1233_v37 = vrot.slane %v1231_v21, 4 }
  0x5a   : > { %v1229_v32 = vsel %vm2944_vm4, %v1224_v15, %v1228_v18  ;;  %v1236_v42 = vrot.slane %v1234_v8, 5  ;;  %v1354_v48 = vunpack.c.l.b16 %v1219_v27 }
  0x5b   : > { %v1355_v49 = vunpack.c.l.b16 %v1229_v32 }
  0x5c   : > { %v1237_v52 = vor.u32 %v1236_v42, %v1233_v37  ;;  %v2701_v42 = vld [vmem:[%s2906_s29 + $0x30] sm:$0xff] }
  0x5d   : > { %v1368_v29 = vpack.c.b16 %v1355_v49, %v1354_v48  ;;  %v3243_v49 = vld [vmem:[%s3059_s8 + $0x3c] sm:$0xf] }
  0x5e   : > { %2560 = vmatmul.msk.bf16.gmra.mxu2 %vm625_vm3, %v903_v44  ;;  %v1246_v44 = vrot.slane %v1244_v23, 4  ;;  %v1238_v56 = vrot.slane %v1237_v52, 4  ;;  %v3231_v23 = vld [vmem:[%s3059_s8 + $0x38] sm:$0x1]  ;;  %v3246_v52 = vld [vmem:[%s3059_s8 + $0x40] sm:$0xf] }
  0x5f   : > { %v1274_v32 = vshll.u32 %v3231_v23, 16 }
  0x60   : > { %v1247_v54 = vor.u32 %v1246_v44, %v1242_v43  ;;  %v1243_v61 = vsel %vm2944_vm4, %v1238_v56, %v1242_v43  ;;  %v1279_v56 = vshrl.u32 %v3243_v49, 16 }
  0x61   : > { %v1356_v6 = vunpack.c.l.b16 %v1243_v61  ;;  %v1276_v48 = vrot.slane %v1274_v32, 5  ;;  %v1292_v61 = vshrl.u32 %v3246_v52, 16 }
  0x62   : > { %2600 = vmatmul.msk.bf16.gmra.mxu3 %vm625_vm3, %v2706_v59  ;;  %v1248_v33 = vrot.slane %v1247_v54, 4  ;;  %v3214_v59 = vld [vmem:[%s3059_s8 + $0x34] sm:$0xf] }
  0x63   : > { %v1264_v3 = vshll.u32 %v3214_v59, 16  ;;  %v1268_v4 = vshrl.u32 %v3214_v59, 16 }
  0x64   : > { %v1253_v63 = vsel %vm2944_vm4, %v1248_v33, %v1252_v57  ;;  %v1282_v33 = vshll.u32 %v3243_v49, 16  ;;  %v1288_v57 = vshll.u32 %v3246_v52, 16 }
  0x65   : > { %v1357_v7 = vunpack.c.l.b16 %v1253_v63  ;;  %v1266_v18 = vrot.slane %v1264_v3, 5  ;;  %v1270_v21 = vrot.slane %v1268_v4, 4  ;;  %v2556_v3 = vrot.slane %v2997_v41, 9 }
  0x66   : > { %2608 = vmatmul.msk.bf16.gmra.mxu0 %vm625_vm3, %v1367_v34  ;;  %v860_v34 = vrot.slane %v2926_v19, 5 }
  0x67   : > { %v1369_v27 = vpack.c.b16 %v1357_v7, %v1356_v6  ;;  %v1284_v6 = vrot.slane %v1282_v33, 5  ;;  %v1290_v7 = vrot.slane %v1288_v57, 5 }
  0x68   : > { %2545 = vmatmul.msk.bf16.gmra.mxu1 %vm625_vm3, %v2699_v58  ;;  %v2708_v58 = vld [vmem:[%s3059_s8 + $0x24] sm:$0xff]  ;;  %v862_v8 = vrot.slane %v860_v34, 4  ;;  %v861_v17 = vsel %vm3084_vm7, %v2555_v12, %v860_v34  ;;  %v1281_v34 = vrot.slane %v1279_v56, 4  ;;  %v1294_v12 = vrot.slane %v1292_v61, 4  ;;  %v2710_v56 = vld [vmem:[%s3059_s8 + $0x3c] sm:$0xff] }
  0x69   : > { %v894_v43 = vunpack.c.l.b16 %v861_v17  ;;  %v3273_v17 = vld [vmem:[%s3059_s8 + $0x48] sm:$0xf] }
  0x6a   : > { %v864_v37 = vsel %vm3084_vm7, %v862_v8, %v863_v22  ;;  %v2702_v8 = vld [vmem:[%s2906_s29 + $0x3c] sm:$0xff] }
  0x6b   : > { %v895_v20 = vunpack.c.l.b16 %v864_v37  ;;  %v3276_v37 = vld [vmem:[%s3059_s8 + $0x4c] sm:$0xf] }
  0x6d   : > { %v906_v54 = vpack.c.b16 %v895_v20, %v894_v43  ;;  %v1306_v43 = vshll.u32 %v3273_v17, 16 }
  0x6e   : > { %2561 = vmatmul.msk.bf16.gmra.mxu2 %vm625_vm3, %v904_v28  ;;  %v3211_v28 = vld [vmem:[%s3059_s8 + $0x30] sm:$0xf] }
  0x6f   : > { %v1255_v0 = vshrl.u32 %v3211_v28, 16  ;;  %v1258_v1 = vshll.u32 %v3211_v28, 16 }
  0x71   : > { %v1257_v14 = vrot.slane %v1255_v0, 4  ;;  %v1260_v15 = vrot.slane %v1258_v1, 5  ;;  %v2709_v0 = vld [vmem:[%s3059_s8 + $0x30] sm:$0xff] }
  0x72   : > { %2601 = vmatmul.msk.bf16.gmra.mxu3 %vm625_vm3, %v2707_v45 }
  0x73   : > { %v1261_v19 = vor.u32 %v1260_v15, %v1257_v14 }
  0x75   : > { %v1262_v44 = vrot.slane %v1261_v19, 4 }
  0x76   : > { %2609 = vmatmul.msk.bf16.gmra.mxu0 %vm625_vm3, %v1368_v29 }
  0x77   : > { %v1267_v16 = vsel %vm2944_vm4, %v1262_v44, %v1266_v18  ;;  %v1312_v44 = vshll.u32 %v3276_v37, 16 }
  0x78   : > { %2546 = vmatmul.msk.bf16.gmra.mxu1 %vm625_vm3, %v2700_v50  ;;  %v867_v50 = vrot.slane %v3003_v55, 5  ;;  %v1358_v63 = vunpack.c.l.b16 %v1267_v16  ;;  %v870_v55 = vrot.slane %v3010_v60, 5  ;;  %v1316_v16 = vshrl.u32 %v3276_v37, 16 }
  0x79   : > { %v1314_v61 = vrot.slane %v1312_v44, 5 }
  0x7a   : > { %v869_v4 = vrot.slane %v867_v50, 4  ;;  %v868_v15 = vsel %vm3084_vm7, %v2556_v3, %v867_v50  ;;  %v1308_v50 = vrot.slane %v1306_v43, 5  ;;  %v1318_v3 = vrot.slane %v1316_v16, 4 }
  0x7b   : > { %v896_v22 = vunpack.c.l.b16 %v868_v15 }
  0x7c   : > { %v871_v41 = vsel %vm3084_vm7, %v869_v4, %v870_v55  ;;  %v3293_v4 = vld [vmem:[%s3059_s8 + $0x50] sm:$0x1] }
  0x7e   : > { %2562 = vmatmul.msk.bf16.gmra.mxu2 %vm625_vm3, %v905_v10  ;;  %v1271_v10 = vor.u32 %v1270_v21, %v1266_v18  ;;  %v1285_v18 = vor.u32 %v1284_v6, %v1281_v34  ;;  %v1295_v21 = vor.u32 %v1294_v12, %v1290_v7  ;;  %v2703_v12 = vld [vmem:[%s2906_s29 + $0x48] sm:$0xff] }
  0x80   : > { %v1272_v45 = vrot.slane %v1271_v10, 4  ;;  %v1286_v19 = vrot.slane %v1285_v18, 4  ;;  %v1296_v10 = vrot.slane %v1295_v21, 4 }
  0x82   : > { %2602 = vmatmul.msk.bf16.gmra.mxu3 %vm625_vm3, %v2708_v58  ;;  %v1277_v29 = vsel %vm2944_vm4, %v1272_v45, %v1276_v48  ;;  %v3262_v58 = vld [vmem:[%s3059_s8 + $0x44] sm:$0x1]  ;;  %v1291_v45 = vsel %vm2944_vm4, %v1286_v19, %v1290_v7  ;;  %v1319_v7 = vor.u32 %v1318_v3, %v1314_v61 }
  0x83   : > { %v1359_v1 = vunpack.c.l.b16 %v1277_v29  ;;  %v1298_v60 = vshll.u32 %v3262_v58, 16  ;;  %v1360_v33 = vunpack.c.l.b16 %v1291_v45 }
  0x84   : > { %v1320_v18 = vrot.slane %v1319_v7, 4  ;;  %v3352_v7 = vld [vmem:[%s3333_s20 + $0x4] sm:$0xf] }
  0x85   : > { %v1370_v14 = vpack.c.b16 %v1359_v1, %v1358_v63  ;;  %v1300_v32 = vrot.slane %v1298_v60, 5  ;;  %v2557_v63 = vrot.slane %v2933_v26, 9  ;;  %v877_v1 = vrot.slane %v2951_v46, 5  ;;  %v3306_v60 = vld [vmem:[%s3059_s8 + $0x54] sm:$0xf] }
  0x86   : > { %2610 = vmatmul.msk.bf16.gmra.mxu0 %vm625_vm3, %v1369_v27  ;;  %v897_v27 = vunpack.c.l.b16 %v871_v41  ;;  %v1322_v46 = vshll.u32 %v3293_v4, 16  ;;  %v1327_v19 = vshrl.u32 %v3306_v60, 16 }
  0x87   : > { %v1301_v48 = vsel %vm2944_vm4, %v1296_v10, %v1300_v32  ;;  %v1330_v10 = vshll.u32 %v3306_v60, 16 }
  0x88   : > { %2547 = vmatmul.msk.bf16.gmra.mxu1 %vm625_vm3, %v2701_v42  ;;  %v1303_v42 = vshrl.u32 %v3273_v17, 16  ;;  %v907_v20 = vpack.c.b16 %v897_v27, %v896_v22  ;;  %v1361_v57 = vunpack.c.l.b16 %v1301_v48  ;;  %v1324_v21 = vrot.slane %v1322_v46, 5  ;;  %v2704_v46 = vld [vmem:[%s2906_s29 + $0x54] sm:$0xff]  ;;  %s2501_s29 = sshll.u32 %s363_s28, 4 }
  0x89   : > { %p365_p7 = scmp.lt.s32.totalorder %s2501_s29, 63 }
  0x8a   : > { %v1305_v29 = vrot.slane %v1303_v42, 4  ;;  %v1371_v55 = vpack.c.b16 %v1361_v57, %v1360_v33  ;;  %v1325_v42 = vsel %vm2944_vm4, %v1320_v18, %v1324_v21  ;;  %v2558_v33 = vrot.slane %v3014_v62, 9 }
  0x8b   : > { %v1363_v16 = vunpack.c.l.b16 %v1325_v42  ;;  %s3825_s29 = smov (!%p365_p7, %s2501_s29), 63 }
  0x8e   : > { %2563 = vmatmul.msk.bf16.gmra.mxu2 %vm625_vm3, %v906_v54  ;;  %v874_v54 = vrot.slane %v2940_v35, 5  ;;  %v1309_v35 = vor.u32 %v1308_v50, %v1305_v29  ;;  %v1329_v29 = vrot.slane %v1327_v19, 4  ;;  %v1332_v50 = vrot.slane %v1330_v10, 5 }
  0x90   : > { %v875_v6 = vsel %vm3084_vm7, %v2557_v63, %v874_v54  ;;  %v1333_v3 = vor.u32 %v1332_v50, %v1329_v29 }
  0x91   : > { %v898_v15 = vunpack.c.l.b16 %v875_v6 }
  0x92   : > { %2603 = vmatmul.msk.bf16.gmra.mxu3 %vm625_vm3, %v2709_v0  ;;  %v876_v0 = vrot.slane %v874_v54, 4  ;;  %v2711_v54 = vld [vmem:[%s3059_s8 + $0x48] sm:$0xff]  ;;  %v1334_v10 = vrot.slane %v1333_v3, 4 }
  0x94   : > { %v878_v26 = vsel %vm3084_vm7, %v876_v0, %v877_v1 }
  0x95   : > { %v899_v41 = vunpack.c.l.b16 %v878_v26 }
  0x96   : > { %2611 = vmatmul.msk.bf16.gmra.mxu0 %vm625_vm3, %v1370_v14  ;;  %v1310_v14 = vrot.slane %v1309_v35, 4  ;;  %v3344_v35 = vld [vmem:[%s3333_s20] sm:$0xf] }
  0x97   : > { %v908_v27 = vpack.c.b16 %v899_v41, %v898_v15  ;;  %v1803_v15 = vshrl.u32 %v3344_v35, 16  ;;  %v1806_v41 = vshll.u32 %v3344_v35, 16 }
  0x98   : > { %2548 = vmatmul.msk.bf16.gmra.mxu1 %vm625_vm3, %v2702_v8  ;;  %v3309_v8 = vld [vmem:[%s3059_s8 + $0x58] sm:$0xf]  ;;  %v1315_v22 = vsel %vm2944_vm4, %v1310_v14, %v1314_v61  ;;  %v884_v61 = vrot.slane %v3028_v25, 5  ;;  %v1476_v14 = vrot.slane %v3077_v47, 5  ;;  %v1479_v47 = vrot.slane %v3089_v2, 5 }
  0x99   : > { %v1336_v32 = vshll.u32 %v3309_v8, 16  ;;  %v1340_v44 = vshrl.u32 %v3309_v8, 16  ;;  %v1362_v45 = vunpack.c.l.b16 %v1315_v22  ;;  %v1812_v22 = vshll.u32 %v3352_v7, 16 }
  0x9b   : > { %v1342_v63 = vrot.slane %v1340_v44, 4  ;;  %v1372_v62 = vpack.c.b16 %v1363_v16, %v1362_v45  ;;  %v2615_v44 = vrot.slane %v3068_v31, 9  ;;  %v1478_v45 = vrot.slane %v1476_v14, 4 }
  0x9c   : > { %v1808_v16 = vrot.slane %v1806_v41, 5  ;;  %v1814_v50 = vrot.slane %v1812_v22, 5 }
  0x9d   : > { %v1477_v31 = vsel %vm3084_vm7, %v2615_v44, %v1476_v14  ;;  %v1480_v3 = vsel %vm3084_vm7, %v1478_v45, %v1479_v47  ;;  %v3392_v47 = vld [vmem:[%s3333_s20 + $0xc] sm:$0xf]  ;;  %v3395_v44 = vld [vmem:[%s3333_s20 + $0x10] sm:$0xf] }
  0x9e   : > { %2564 = vmatmul.msk.bf16.gmra.mxu2 %vm625_vm3, %v907_v20  ;;  %v881_v20 = vrot.slane %v3025_v24, 5  ;;  %v3336_v24 = vld [vmem:[%s3059_s8 + $0x5c] sm:$0x1]  ;;  %v1531_v41 = vunpack.c.l.b16 %v1480_v3  ;;  %v1827_v3 = vshrl.u32 %v3392_v47, 16 }
  0x9f   : > { %v1346_v26 = vshll.u32 %v3336_v24, 16 }
  0xa0   : > { %v883_v57 = vrot.slane %v881_v20, 4  ;;  %v882_v25 = vsel %vm3084_vm7, %v2558_v33, %v881_v20 }
  0xa1   : > { %v900_v18 = vunpack.c.l.b16 %v882_v25  ;;  %v1348_v42 = vrot.slane %v1346_v26, 5 }
  0xa2   : > { %2604 = vmatmul.msk.bf16.gmra.mxu3 %vm625_vm3, %v2710_v56  ;;  %v1338_v56 = vrot.slane %v1336_v32, 5 }
  0xa3   : > { %v3296_v34 = vpop.f32.mrf.mxu1 }
  0xa4   : > { %v1343_v6 = vor.u32 %v1342_v63, %v1338_v56  ;;  %v1648_v63 = vld [vmem:[%s3333_s20 + $0x8] sm:$0x1] }
  0xa6   : > { %2612 = vmatmul.msk.bf16.gmra.mxu0 %vm625_vm3, %v1371_v55  ;;  %v885_v55 = vsel %vm3084_vm7, %v883_v57, %v884_v61  ;;  %v1344_v32 = vrot.slane %v1343_v6, 4  ;;  %v1339_v61 = vsel %vm2944_vm4, %v1334_v10, %v1338_v56  ;;  %v2120_v10 = vrot.slane %v3352_v7, 5 }
  0xa7   : > { %v901_v21 = vunpack.c.l.b16 %v885_v55  ;;  %v2712_v55 = vld [vmem:[%s3059_s8 + $0x54] sm:$0xff]  ;;  %v1364_v6 = vunpack.c.l.b16 %v1339_v61  ;;  %s2502_s8 = sshll.u32 %s3825_s29, 3 }
  0xa8   : > { %2549 = vmatmul.msk.bf16.gmra.mxu1 %vm625_vm3, %v2703_v12  ;;  %v1349_v2 = vsel %vm2944_vm4, %v1344_v32, %v1348_v42  ;;  %s3720_s11 = scalar_lea.vmem %s3803_s6, %s2502_s8 }
  0xa9   : > { %v909_v29 = vpack.c.b16 %v901_v21, %v900_v18  ;;  %v1365_v56 = vunpack.c.l.b16 %v1349_v2  ;;  %v2122_v2 = vrot.slane %v2120_v10, 4 }
  0xab   : > { %v3319_v43 = vpop.f32.mrf.mxu1  ;;  %v1373_v14 = vpack.c.b16 %v1365_v56, %v1364_v6  ;;  %v1486_v6 = vrot.slane %v3143_v11, 5  ;;  %v2713_v56 = vld [vmem:[%s3333_s20] sm:$0xff] }
  0xad   : > { %v3323_v48 = vpop.f32.mrf.mxu2 }
  0xae   : > { %2565 = vmatmul.msk.bf16.gmra.mxu2 %vm625_vm3, %v908_v27  ;;  %v1816_v27 = vshrl.u32 %v3352_v7, 16 }
  0xb0   : > { %v1818_v33 = vrot.slane %v1816_v27, 4 }
  0xb1   : > { %v3338_v0 = vpop.f32.mrf.mxu0  ;;  %v3340_v1 = vpop.f32.mrf.mxu3 }
  0xb2   : > { %2605 = vmatmul.msk.bf16.gmra.mxu3 %vm625_vm3, %v2711_v54  ;;  %v1805_v54 = vrot.slane %v1803_v15, 4  ;;  %v1819_v26 = vor.u32 %v1818_v33, %v1814_v50  ;;  %v1530_v15 = vunpack.c.l.b16 %v1477_v31  ;;  %v1483_v33 = vrot.slane %v3122_v39, 5 }
  0xb3   : > { %v2123_v31 = vrot.slane %v1648_v63, 5 }
  0xb4   : > { %v1809_v25 = vor.u32 %v1808_v16, %v1805_v54  ;;  %v1820_v22 = vrot.slane %v1819_v26, 4  ;;  %v1546_v42 = vpack.c.b16 %v1531_v41, %v1530_v15 }
  0xb5   : > { %v3355_v12 = vpop.f32.mrf.mxu1  ;;  %v3363_v19 = vpop.f32.mrf.mxu2  ;;  %v2124_v15 = vsel %vm3084_vm7, %v2122_v2, %v2123_v31 }
  0xb6   : > { %2613 = vmatmul.msk.bf16.gmra.mxu0 %vm625_vm3, %v1372_v62  ;;  %v1810_v21 = vrot.slane %v1809_v25, 4  ;;  %v1830_v25 = vshll.u32 %v3392_v47, 16 }
  0xb8   : > { %2550 = vmatmul.msk.bf16.gmra.mxu1 %vm625_vm3, %v2704_v46  ;;  %v1822_v46 = vshll.u32 %v1648_v63, 16  ;;  %v1815_v16 = vsel %vm2944_vm4, %v1810_v21, %v1814_v50  ;;  %v1836_v50 = vshll.u32 %v3395_v44, 16  ;;  %v1829_v21 = vrot.slane %v1827_v3, 4 }
  0xb9   : > { %v3367_v20 = vpop.f32.mrf.mxu0  ;;  %v3370_v57 = vpop.f32.mrf.mxu3  ;;  %v1994_v63 = vunpack.c.l.b16 %v1815_v16 }
  0xba   : > { %v1824_v27 = vrot.slane %v1822_v46, 5 }
  0xbc   : > { %v1825_v61 = vsel %vm2944_vm4, %v1820_v22, %v1824_v27  ;;  %v1838_v22 = vrot.slane %v1836_v50, 5 }
  0xbd   : > { %v3377_v62 = vpop.f32.mrf.mxu1  ;;  %v1995_v26 = vunpack.c.l.b16 %v1825_v61  ;;  %v2175_v61 = vunpack.c.l.b16 %v2124_v15  ;;  %v2680_v15 = vrot.slane %v3392_v47, 9 }
  0xbe   : > { %2566 = vmatmul.msk.bf16.gmra.mxu2 %vm625_vm3, %v909_v29  ;;  %v2679_v29 = vrot.slane %v3344_v35, 9  ;;  %v1840_v35 = vshrl.u32 %v3395_v44, 16 }
  0xbf   : > { %v2010_v16 = vpack.c.b16 %v1995_v26, %v1994_v63 }
  0xc0   : > { %v2121_v46 = vsel %vm3084_vm7, %v2679_v29, %v2120_v10  ;;  %v1842_v27 = vrot.slane %v1840_v35, 4 }
  0xc1   : > { %v3385_v18 = vpop.f32.mrf.mxu2  ;;  %v2174_v29 = vunpack.c.l.b16 %v2121_v46 }
  0xc2   : > { %2606 = vmatmul.msk.bf16.gmra.mxu3 %vm625_vm3, %v2712_v55  ;;  %v1485_v55 = vrot.slane %v1483_v33, 4  ;;  %v1843_v3 = vor.u32 %v1842_v27, %v1838_v22 }
  0xc3   : > { %v3389_v32 = vpop.f32.mrf.mxu0 }
  0xc4   : > { %v1487_v10 = vsel %vm3084_vm7, %v1485_v55, %v1486_v6  ;;  %v3437_v55 = vld [vmem:[%s3333_s20 + $0x1c] sm:$0xf]  ;;  %v1844_v63 = vrot.slane %v1843_v3, 4 }
  0xc5   : > { %v3397_v45 = vpop.f32.mrf.mxu3  ;;  %v779_v54 = vpop.f32.mrf.mxu1  ;;  %v1533_v35 = vunpack.c.l.b16 %v1487_v10  ;;  %v1493_v10 = vrot.slane %v3180_v5, 5 }
  0xc6   : > { %3808 = vst [vmem:[#allocation2_spill] sm:$0xff] %v3397_v45  ;;  %2614 = vmatmul.msk.bf16.gmra.mxu0 %vm625_vm3, %v1373_v14  ;;  %v780_v7 = vadd.f32 %v779_v54, %v3338_v0  ;;  %v2616_v0 = vrot.slane %v3118_v38, 9  ;;  %v1832_v14 = vrot.slane %v1830_v25, 5  ;;  %v3433_v45 = vld [vmem:[%s3333_s20 + $0x18] sm:$0xf] }
  0xc8   : > { %2623 = vmatmul.msk.bf16.vlgmr.msra.gmra.mxu1 %vm625_vm3, %v1546_v42  ;;  %v1651_v42 = vld [vmem:[%s3333_s20 + $0x14] sm:$0x1]  ;;  %v1484_v54 = vsel %vm3084_vm7, %v2616_v0, %v1483_v33  ;;  %v1833_v31 = vor.u32 %v1832_v14, %v1829_v21  ;;  %v2190_v33 = vpack.c.b16 %v2175_v61, %v2174_v29  ;;  %v1851_v21 = vshrl.u32 %v3433_v45, 16 }
  0xc9   : > { %v3412_v39 = vpop.f32.mrf.mxu2  ;;  %v1846_v25 = vshll.u32 %v1651_v42, 16  ;;  %v1532_v50 = vunpack.c.l.b16 %v1484_v54  ;;  %v1854_v14 = vshll.u32 %v3433_v45, 16  ;;  %v1490_v54 = vrot.slane %v3160_v40, 5 }
  0xca   : > { %v2130_v40 = vrot.slane %v1651_v42, 5  ;;  %v1654_v42 = vld [vmem:[%s3333_s20 + $0x20] sm:$0x1] }
  0xcb   : > { %v3421_v41 = vpop.f32.mrf.mxu0  ;;  %v1848_v26 = vrot.slane %v1846_v25, 5  ;;  %v1547_v46 = vpack.c.b16 %v1533_v35, %v1532_v50  ;;  %v1856_v3 = vrot.slane %v1854_v14, 5  ;;  %v2617_v50 = vrot.slane %v3156_v30, 9 }
  0xcc   : > { %v1492_v35 = vrot.slane %v1490_v54, 4 }
  0xcd   : > { %v3424_v38 = vpop.f32.mrf.mxu3  ;;  %v781_v11 = vpop.f32.mrf.mxu1  ;;  %v1849_v29 = vsel %vm2944_vm4, %v1844_v63, %v1848_v26  ;;  %v1491_v14 = vsel %vm3084_vm7, %v2617_v50, %v1490_v54 }
  0xce   : > { %3809 = vst [vmem:[#allocation3_spill] sm:$0xff] %v3424_v38  ;;  %2663 = vmatmul.msk.bf16.vlgmr.msra.gmra.mxu2 %vm625_vm3, %v2713_v56  ;;  %v782_v2 = vadd.f32 %v781_v11, %v3367_v20  ;;  %v1834_v56 = vrot.slane %v1833_v31, 4  ;;  %v2127_v20 = vrot.slane %v3395_v44, 5  ;;  %v1853_v31 = vrot.slane %v1851_v21, 4 }
  0xcf   : > { %v1997_v26 = vunpack.c.l.b16 %v1849_v29  ;;  %v1494_v30 = vsel %vm3084_vm7, %v1492_v35, %v1493_v10  ;;  %v1534_v29 = vunpack.c.l.b16 %v1491_v14  ;;  %v2134_v35 = vrot.slane %v3437_v55, 5 }
  0xd0   : > { %v1839_v47 = vsel %vm2944_vm4, %v1834_v56, %v1838_v22  ;;  %v2129_v61 = vrot.slane %v2127_v20, 4  ;;  %v2128_v5 = vsel %vm3084_vm7, %v2680_v15, %v2127_v20  ;;  %v2714_v56 = vld [vmem:[%s3333_s20 + $0xc] sm:$0xff]  ;;  %v1857_v15 = vor.u32 %v1856_v3, %v1853_v31 }
  0xd1   : > { %v946_v38 = vpop.f32.mrf.mxu2  ;;  %v1996_v63 = vunpack.c.l.b16 %v1839_v47  ;;  %v2176_v20 = vunpack.c.l.b16 %v2128_v5  ;;  %v2137_v14 = vrot.slane %v1654_v42, 5 }
  0xd2   : > { %2671 = vmatmul.msk.bf16.vlgmr.msra.gmra.mxu3 %vm625_vm3, %v2010_v16  ;;  %v986_v0 = vadd.f32 %v946_v38, %v780_v7  ;;  %v1860_v7 = vshll.u32 %v3437_v55, 16  ;;  %v1864_v38 = vshrl.u32 %v3437_v55, 16  ;;  %v1858_v5 = vrot.slane %v1857_v15, 4 }
  0xd3   : > { %v1410_v6 = vpop.f32.mrf.mxu0 }
  0xd4   : > { %v1862_v22 = vrot.slane %v1860_v7, 5 }
  0xd5   : > { %v1102_v27 = vpop.f32.mrf.mxu3  ;;  %v784_v11 = vpop.f32.mrf.mxu1 }
  0xd6   : > { %2687 = vmatmul.msk.bf16.vlgmr.msra.gmra.mxu0 %vm625_vm3, %v2190_v33  ;;  %v1142_v44 = vadd.f32 %v1102_v27, %v986_v0  ;;  %v785_v16 = vadd.f32 %v784_v11, %v3389_v32  ;;  %v1866_v33 = vrot.slane %v1864_v38, 4  ;;  %v2011_v38 = vpack.c.b16 %v1997_v26, %v1996_v63 }
  0xd7   : > { %v1863_v26 = vsel %vm2944_vm4, %v1858_v5, %v1862_v22 }
  0xd8   : > { %2624 = vmatmul.msk.bf16.gmra.mxu1 %vm625_vm3, %v1547_v46  ;;  %v3456_v25 = vadd.f32 %v1410_v6, %v1142_v44  ;;  %v2131_v46 = vsel %vm3084_vm7, %v2129_v61, %v2130_v40  ;;  %v1867_v11 = vor.u32 %v1866_v33, %v1862_v22  ;;  %v1535_v61 = vunpack.c.l.b16 %v1494_v30  ;;  %v3474_v33 = vld [vmem:[%s3333_s20 + $0x24] sm:$0xf] }
  0xd9   : > { %v948_v32 = vpop.f32.mrf.mxu2  ;;  %v2177_v44 = vunpack.c.l.b16 %v2131_v46  ;;  %v1875_v15 = vshrl.u32 %v3474_v33, 16 }
  0xda   : > { %v987_v0 = vadd.f32 %v948_v32, %v782_v2  ;;  %v1870_v2 = vshll.u32 %v1654_v42, 16  ;;  %v1868_v31 = vrot.slane %v1867_v11, 4 }
  0xdb   : > { %v1412_v27 = vpop.f32.mrf.mxu0  ;;  %v2191_v10 = vpack.c.b16 %v2177_v44, %v2176_v20 }
  0xdc   : > { %v1872_v54 = vrot.slane %v1870_v2, 5 }
  0xdd   : > { %v1104_v21 = vpop.f32.mrf.mxu3  ;;  %v786_v6 = vpop.f32.mrf.mxu1 }
  0xde   : > { %v1143_v7 = vadd.f32 %v1104_v21, %v987_v0  ;;  %2664 = vmatmul.msk.bf16.gmra.mxu2 %vm625_vm3, %v2714_v56  ;;  %v787_v47 = vadd.f32 %v786_v6, %v3421_v41  ;;  %v1548_v0 = vpack.c.b16 %v1535_v61, %v1534_v29  ;;  %v3477_v56 = vld [vmem:[%s3333_s20 + $0x28] sm:$0xf]  ;;  %v1873_v46 = vsel %vm2944_vm4, %v1868_v31, %v1872_v54  ;;  %v2715_v29 = vld [vmem:[%s3333_s20 + $0x18] sm:$0xff] }
  0xdf   : > { %v1878_v21 = vshll.u32 %v3474_v33, 16  ;;  %v2136_v6 = vrot.slane %v2134_v35, 4  ;;  %v1884_v22 = vshll.u32 %v3477_v56, 16  ;;  %v1888_v30 = vshrl.u32 %v3477_v56, 16 }
  0xe0   : > { %v3470_v32 = vadd.f32 %v1412_v27, %v1143_v7  ;;  %v1497_v27 = vrot.slane %v3190_v13, 5  ;;  %v1999_v2 = vunpack.c.l.b16 %v1873_v46  ;;  %v2618_v7 = vrot.slane %v3187_v9, 9 }
  0xe1   : > { %v951_v40 = vpop.f32.mrf.mxu2  ;;  %v1877_v61 = vrot.slane %v1875_v15, 4  ;;  %v1886_v31 = vrot.slane %v1884_v22, 5  ;;  %v1890_v54 = vrot.slane %v1888_v30, 4  ;;  %v2141_v15 = vrot.slane %v3477_v56, 5  ;;  %v3510_v22 = vld [vmem:[%s3333_s20 + $0x30] sm:$0xf] }
  0xe2   : > { %2672 = vmatmul.msk.bf16.gmra.mxu3 %vm625_vm3, %v2011_v38  ;;  %v988_v3 = vadd.f32 %v951_v40, %v785_v16  ;;  %v2681_v16 = vrot.slane %v3433_v45, 9  ;;  %v1500_v45 = vrot.slane %v3204_v51, 5  ;;  %v1499_v38 = vrot.slane %v1497_v27, 4 }
  0xe3   : > { %v1415_v50 = vpop.f32.mrf.mxu0  ;;  %v1880_v40 = vrot.slane %v1878_v21, 5  ;;  %v2138_v51 = vsel %vm3084_vm7, %v2136_v6, %v2137_v14  ;;  %v2143_v56 = vrot.slane %v2141_v15, 4 }
  0xe4   : > { %v2135_v42 = vsel %vm3084_vm7, %v2681_v16, %v2134_v35  ;;  %v1501_v35 = vsel %vm3084_vm7, %v1499_v38, %v1500_v45  ;;  %v1891_v16 = vor.u32 %v1890_v54, %v1886_v31  ;;  %v2682_v38 = vrot.slane %v3474_v33, 9 }
  0xe5   : > { %v1107_v41 = vpop.f32.mrf.mxu3  ;;  %v789_v63 = vpop.f32.mrf.mxu1  ;;  %v1881_v46 = vor.u32 %v1880_v40, %v1877_v61  ;;  %v1537_v6 = vunpack.c.l.b16 %v1501_v35  ;;  %v1902_v61 = vshll.u32 %v3510_v22, 16 }
  0xe6   : > { %2688 = vmatmul.msk.bf16.gmra.mxu0 %vm625_vm3, %v2191_v10  ;;  %v1144_v55 = vadd.f32 %v1107_v41, %v988_v3  ;;  %v790_v20 = vadd.f32 %v789_v63, %v3296_v34  ;;  %v1998_v34 = vunpack.c.l.b16 %v1863_v26  ;;  %v1657_v10 = vld [vmem:[%s3333_s20 + $0x2c] sm:$0x1]  ;;  %v2179_v63 = vunpack.c.l.b16 %v2138_v51 }
  0xe7   : > { %v1882_v45 = vrot.slane %v1881_v46, 4 }
  0xe8   : > { %2625 = vmatmul.msk.bf16.gmra.mxu1 %vm625_vm3, %v1548_v0  ;;  %v3493_v13 = vadd.f32 %v1415_v50, %v1144_v55  ;;  %v2012_v50 = vpack.c.b16 %v1999_v2, %v1998_v34  ;;  %v2178_v0 = vunpack.c.l.b16 %v2135_v42  ;;  %v1894_v55 = vshll.u32 %v1657_v10, 16 }
  0xe9   : > { %v953_v11 = vpop.f32.mrf.mxu2  ;;  %v1892_v2 = vrot.slane %v1891_v16, 4  ;;  %v1899_v42 = vshrl.u32 %v3510_v22, 16 }
  0xea   : > { %v989_v44 = vadd.f32 %v953_v11, %v787_v47  ;;  %v1498_v47 = vsel %vm3084_vm7, %v2618_v7, %v1497_v27  ;;  %v2192_v27 = vpack.c.b16 %v2179_v63, %v2178_v0  ;;  %v3514_v11 = vld [vmem:[%s3333_s20 + $0x34] sm:$0xf]  ;;  %v1896_v7 = vrot.slane %v1894_v55, 5  ;;  %v2716_v55 = vld [vmem:[%s3333_s20 + $0x24] sm:$0xff] }
  0xeb   : > { %v1417_v5 = vpop.f32.mrf.mxu0  ;;  %v1536_v21 = vunpack.c.l.b16 %v1498_v47  ;;  %v1908_v54 = vshll.u32 %v3514_v11, 16  ;;  %v1901_v47 = vrot.slane %v1899_v42, 4 }
  0xec   : > { %v1897_v0 = vsel %vm2944_vm4, %v1892_v2, %v1896_v7 }
  0xed   : > { %v1109_v3 = vpop.f32.mrf.mxu3  ;;  %v791_v9 = vpop.f32.mrf.mxu1  ;;  %v3539_v63 = vrot.slane %v1908_v54, 5 }
  0xee   : > { %v1145_v41 = vadd.f32 %v1109_v3, %v989_v44  ;;  %2665 = vmatmul.msk.bf16.gmra.mxu2 %vm625_vm3, %v2715_v29  ;;  %v792_v26 = vadd.f32 %v791_v9, %v3319_v43  ;;  %v1549_v44 = vpack.c.b16 %v1537_v6, %v1536_v21  ;;  %v2144_v29 = vrot.slane %v1657_v10, 5 }
  0xef   : > { %v1507_v10 = vrot.slane %v3231_v23, 5  ;;  %v2001_v21 = vunpack.c.l.b16 %v1897_v0  ;;  %v2148_v0 = vrot.slane %v3514_v11, 5 }
  0xf0   : > { %v3516_v34 = vadd.f32 %v1417_v5, %v1145_v41  ;;  %v1912_v5 = vshrl.u32 %v3514_v11, 16  ;;  %v2145_v9 = vsel %vm3084_vm7, %v2143_v56, %v2144_v29  ;;  %v2619_v41 = vrot.slane %v3211_v28, 9 }
  0xf1   : > { %v956_v14 = vpop.f32.mrf.mxu2  ;;  %v2683_v11 = vrot.slane %v3510_v22, 9 }
  0xf2   : > { %2673 = vmatmul.msk.bf16.gmra.mxu3 %vm625_vm3, %v2012_v50  ;;  %v990_v30 = vadd.f32 %v956_v14, %v790_v20  ;;  %v1504_v20 = vrot.slane %v3214_v59, 5  ;;  %v1887_v50 = vsel %vm2944_vm4, %v1882_v45, %v1886_v31  ;;  %v2142_v59 = vsel %vm3084_vm7, %v2682_v38, %v2141_v15  ;;  %v1660_v14 = vld [vmem:[%s3333_s20 + $0x38] sm:$0x1] }
  0xf3   : > { %v1420_v43 = vpop.f32.mrf.mxu0  ;;  %v1914_v46 = vrot.slane %v1912_v5, 4  ;;  %v2000_v15 = vunpack.c.l.b16 %v1887_v50  ;;  %v1918_v29 = vshll.u32 %v1660_v14, 16 }
  0xf4   : > { %v1506_v31 = vrot.slane %v1504_v20, 4  ;;  %v1505_v2 = vsel %vm3084_vm7, %v2619_v41, %v1504_v20 }
  0xf5   : > { %v1112_v40 = vpop.f32.mrf.mxu3  ;;  %v794_v51 = vpop.f32.mrf.mxu1  ;;  %v2013_v56 = vpack.c.b16 %v2001_v21, %v2000_v15  ;;  %v1538_v42 = vunpack.c.l.b16 %v1505_v2  ;;  %v1920_v50 = vrot.slane %v1918_v29, 5  ;;  %v2150_v21 = vrot.slane %v2148_v0, 4 }
  0xf6   : > { %2689 = vmatmul.msk.bf16.gmra.mxu0 %vm625_vm3, %v2192_v27  ;;  %v1146_v3 = vadd.f32 %v1112_v40, %v990_v30  ;;  %v795_v33 = vadd.f32 %v794_v51, %v3355_v12  ;;  %v1904_v12 = vrot.slane %v1902_v61, 5  ;;  %v2180_v27 = vunpack.c.l.b16 %v2142_v59  ;;  %v3551_v40 = vld [vmem:[%s3333_s20 + $0x3c] sm:$0xf]  ;;  %v3554_v51 = vld [vmem:[%s3333_s20 + $0x40] sm:$0xf] }
  0xf7   : > { %v2181_v30 = vunpack.c.l.b16 %v2145_v9  ;;  %v1508_v28 = vsel %vm3084_vm7, %v1506_v31, %v1507_v10  ;;  %v1923_v9 = vshrl.u32 %v3551_v40, 16  ;;  %v2620_v2 = vrot.slane %v3243_v49, 9 }
  0xf8   : > { %2626 = vmatmul.msk.bf16.gmra.mxu1 %vm625_vm3, %v1549_v44  ;;  %v3536_v35 = vadd.f32 %v1420_v43, %v1146_v3  ;;  %v1905_v7 = vor.u32 %v1904_v12, %v1901_v47  ;;  %v1539_v61 = vunpack.c.l.b16 %v1508_v28  ;;  %v1926_v47 = vshll.u32 %v3551_v40, 16 }
  0xf9   : > { %v958_v23 = vpop.f32.mrf.mxu2  ;;  %v2193_v20 = vpack.c.b16 %v2181_v30, %v2180_v27  ;;  %v1932_v12 = vshll.u32 %v3554_v51, 16  ;;  %v1925_v27 = vrot.slane %v1923_v9, 4 }
  0xfa   : > { %v991_v16 = vadd.f32 %v958_v23, %v792_v26  ;;  %v1915_v26 = vor.u32 %v1914_v46, %v3539_v63  ;;  %v1906_v5 = vrot.slane %v1905_v7, 4  ;;  %v1936_v23 = vshrl.u32 %v3554_v51, 16  ;;  %v3578_v7 = vld [vmem:[%s3333_s20 + $0x44] sm:$0x1] }
  0xfb   : > { %v1422_v6 = vpop.f32.mrf.mxu0  ;;  %v1550_v41 = vpack.c.b16 %v1539_v61, %v1538_v42  ;;  %v1928_v30 = vrot.slane %v1926_v47, 5  ;;  %v2149_v42 = vsel %vm3084_vm7, %v2683_v11, %v2148_v0  ;;  %v2155_v11 = vrot.slane %v3554_v51, 5 }
  0xfc   : > { %v1916_v3 = vrot.slane %v1915_v26, 4  ;;  %v2182_v0 = vunpack.c.l.b16 %v2149_v42  ;;  %v2684_v51 = vrot.slane %v3551_v40, 9  ;;  %v1521_v40 = vrot.slane %v3293_v4, 5  ;;  %v2718_v4 = vld [vmem:[%s3333_s20 + $0x3c] sm:$0xff] }
  0xfd   : > { %v1114_v45 = vpop.f32.mrf.mxu3  ;;  %v796_v43 = vpop.f32.mrf.mxu1 }
  0xfe   : > { %v1147_v38 = vadd.f32 %v1114_v45, %v991_v16  ;;  %2666 = vmatmul.msk.bf16.gmra.mxu2 %vm625_vm3, %v2716_v55  ;;  %v797_v44 = vadd.f32 %v796_v43, %v3377_v62  ;;  %v1511_v16 = vrot.slane %v3246_v52, 5  ;;  %v1921_v15 = vsel %vm2944_vm4, %v1916_v3, %v1920_v50 }
  0xff   : > { %v1934_v45 = vrot.slane %v1932_v12, 5  ;;  %v1938_v43 = vrot.slane %v1936_v23, 4  ;;  %v1514_v52 = vrot.slane %v3262_v58, 5  ;;  %v1942_v58 = vshll.u32 %v3578_v7, 16 }
 0x100   : > { %v3558_v59 = vadd.f32 %v1422_v6, %v1147_v38  ;;  %v2151_v6 = vrot.slane %v1660_v14, 5  ;;  %v1513_v28 = vrot.slane %v1511_v16, 4  ;;  %v2717_v38 = vld [vmem:[%s3333_s20 + $0x30] sm:$0xff]  ;;  %v2003_v14 = vunpack.c.l.b16 %v1921_v15  ;;  %v3595_v15 = vld [vmem:[%s3333_s20 + $0x48] sm:$0xf] }
 0x101   : > { %v961_v54 = vpop.f32.mrf.mxu2  ;;  %v1512_v3 = vsel %vm3084_vm7, %v2620_v2, %v1511_v16  ;;  %v1518_v2 = vrot.slane %v3276_v37, 5 }
 0x102   : > { %2674 = vmatmul.msk.bf16.gmra.mxu3 %vm625_vm3, %v2013_v56  ;;  %v992_v10 = vadd.f32 %v961_v54, %v795_v33  ;;  %v1911_v33 = vsel %vm2944_vm4, %v1906_v5, %v3539_v63  ;;  %v2152_v61 = vsel %vm3084_vm7, %v2150_v21, %v2151_v6  ;;  %v1939_v54 = vor.u32 %v1938_v43, %v1934_v45 }
 0x103   : > { %v1425_v62 = vpop.f32.mrf.mxu0  ;;  %v2002_v56 = vunpack.c.l.b16 %v1911_v33  ;;  %v1540_v23 = vunpack.c.l.b16 %v1512_v3 }
 0x104   : > { %v1940_v47 = vrot.slane %v1939_v54, 4  ;;  %v2621_v54 = vrot.slane %v3273_v17, 9 }
 0x105   : > { %v1117_v31 = vpop.f32.mrf.mxu3  ;;  %v799_v46 = vpop.f32.mrf.mxu1  ;;  %v2014_v50 = vpack.c.b16 %v2003_v14, %v2002_v56  ;;  %v2158_v56 = vrot.slane %v3578_v7, 5 }
 0x106   : > { %2690 = vmatmul.msk.bf16.gmra.mxu0 %vm625_vm3, %v2193_v20  ;;  %v1148_v55 = vadd.f32 %v1117_v31, %v992_v10  ;;  %v1929_v20 = vor.u32 %v1928_v30, %v1925_v27  ;;  %v800_v12 = vadd.f32 %v799_v46, %v3323_v48  ;;  %v1944_v31 = vrot.slane %v1942_v58, 5  ;;  %v3600_v27 = vld [vmem:[%s3333_s20 + $0x4c] sm:$0xf] }
 0x107   : > { %v1960_v14 = vshrl.u32 %v3600_v27, 16  ;;  %v1520_v58 = vrot.slane %v1518_v2, 4 }
 0x108   : > { %2627 = vmatmul.msk.bf16.gmra.mxu1 %vm625_vm3, %v1550_v41  ;;  %v3573_v63 = vadd.f32 %v1425_v62, %v1148_v55  ;;  %v2183_v62 = vunpack.c.l.b16 %v2152_v61  ;;  %v1930_v9 = vrot.slane %v1929_v20, 4  ;;  %v1945_v46 = vsel %vm2944_vm4, %v1940_v47, %v1944_v31 }
 0x109   : > { %v963_v22 = vpop.f32.mrf.mxu2  ;;  %v2005_v37 = vunpack.c.l.b16 %v1945_v46  ;;  %v2156_v61 = vsel %vm3084_vm7, %v2684_v51, %v2155_v11  ;;  %v1522_v17 = vsel %vm3084_vm7, %v1520_v58, %v1521_v40 }
 0x10a   : > { %v993_v26 = vadd.f32 %v963_v22, %v797_v44  ;;  %v1515_v44 = vsel %vm3084_vm7, %v1513_v28, %v1514_v52  ;;  %v2194_v16 = vpack.c.b16 %v2183_v62, %v2182_v0  ;;  %v1935_v48 = vsel %vm2944_vm4, %v1930_v9, %v1934_v45  ;;  %v1666_v0 = vld [vmem:[%s3333_s20 + $0x50] sm:$0x1] }
 0x10b   : > { %v1427_v29 = vpop.f32.mrf.mxu0  ;;  %v1541_v41 = vunpack.c.l.b16 %v1515_v44  ;;  %v2157_v22 = vrot.slane %v2155_v11, 4  ;;  %v1947_v28 = vshrl.u32 %v3595_v15, 16  ;;  %v1956_v45 = vshll.u32 %v3600_v27, 16 }
 0x10c   : > { %v2184_v62 = vunpack.c.l.b16 %v2156_v61  ;;  %v2165_v58 = vrot.slane %v1666_v0, 5 }
 0x10d   : > { %v1119_v5 = vpop.f32.mrf.mxu3  ;;  %v801_v49 = vpop.f32.mrf.mxu1  ;;  %v1551_v30 = vpack.c.b16 %v1541_v41, %v1540_v23  ;;  %v1519_v23 = vsel %vm3084_vm7, %v2621_v54, %v1518_v2 }
 0x10e   : > { %v1149_v10 = vadd.f32 %v1119_v5, %v993_v26  ;;  %2667 = vmatmul.msk.bf16.gmra.mxu2 %vm625_vm3, %v2717_v38  ;;  %v1950_v26 = vshll.u32 %v3595_v15, 16  ;;  %v802_v42 = vadd.f32 %v801_v49, %v3363_v19  ;;  %v1949_v5 = vrot.slane %v1947_v28, 4 }
 0x10f   : > { %v2159_v19 = vsel %vm3084_vm7, %v2157_v22, %v2158_v56  ;;  %v1958_v49 = vrot.slane %v1956_v45, 5  ;;  %v3637_v56 = vld [vmem:[%s3333_s20 + $0x54] sm:$0xf] }
 0x110   : > { %v3597_v21 = vadd.f32 %v1427_v29, %v1149_v10  ;;  %v2004_v29 = vunpack.c.l.b16 %v1935_v48  ;;  %v1952_v3 = vrot.slane %v1950_v26, 5  ;;  %v1962_v10 = vrot.slane %v1960_v14, 4  ;;  %v3640_v14 = vld [vmem:[%s3333_s20 + $0x58] sm:$0xf] }
 0x111   : > { %v966_v33 = vpop.f32.mrf.mxu2  ;;  %v2185_v47 = vunpack.c.l.b16 %v2159_v19  ;;  %v1971_v61 = vshrl.u32 %v3637_v56, 16 }
 0x112   : > { %2675 = vmatmul.msk.bf16.gmra.mxu3 %vm625_vm3, %v2014_v50  ;;  %v994_v55 = vadd.f32 %v966_v33, %v800_v12  ;;  %v1953_v41 = vor.u32 %v1952_v3, %v1949_v5  ;;  %v2015_v33 = vpack.c.b16 %v2005_v37, %v2004_v29  ;;  %v1963_v11 = vor.u32 %v1962_v10, %v1958_v49 }
 0x113   : > { %v1430_v6 = vpop.f32.mrf.mxu0  ;;  %v2195_v48 = vpack.c.b16 %v2185_v47, %v2184_v62  ;;  %v2685_v29 = vrot.slane %v3595_v15, 9  ;;  %v1980_v5 = vshll.u32 %v3640_v14, 16  ;;  %v1984_v3 = vshrl.u32 %v3640_v14, 16  ;;  %v2719_v62 = vld [vmem:[%s3333_s20 + $0x48] sm:$0xff] }
 0x114   : > { %v1954_v51 = vrot.slane %v1953_v41, 4  ;;  %v1964_v22 = vrot.slane %v1963_v11, 4  ;;  %v1528_v15 = vrot.slane %v3336_v24, 5  ;;  %v2622_v10 = vrot.slane %v3306_v60, 9  ;;  %v1669_v41 = vld [vmem:[%s3333_s20 + $0x5c] sm:$0x1] }
 0x115   : > { %v1122_v43 = vpop.f32.mrf.mxu3  ;;  %v804_v52 = vpop.f32.mrf.mxu1  ;;  %v1973_v47 = vrot.slane %v1971_v61, 4 }
 0x116   : > { %2691 = vmatmul.msk.bf16.gmra.mxu0 %vm625_vm3, %v2194_v16  ;;  %v1150_v38 = vadd.f32 %v1122_v43, %v994_v55  ;;  %v1966_v16 = vshll.u32 %v1666_v0, 16  ;;  %v805_v55 = vadd.f32 %v804_v52, %v3385_v18  ;;  %v1959_v40 = vsel %vm2944_vm4, %v1954_v51, %v1958_v49 }
 0x117   : > { %v2006_v19 = vunpack.c.l.b16 %v1959_v40  ;;  %v1990_v51 = vshll.u32 %v1669_v41, 16 }
 0x118   : > { %2628 = vmatmul.msk.bf16.gmra.mxu1 %vm625_vm3, %v1551_v30  ;;  %v3619_v20 = vadd.f32 %v1430_v6, %v1150_v38  ;;  %v1542_v6 = vunpack.c.l.b16 %v1519_v23  ;;  %v1543_v30 = vunpack.c.l.b16 %v1522_v17  ;;  %v1968_v2 = vrot.slane %v1966_v16, 5 }
 0x119   : > { %v968_v7 = vpop.f32.mrf.mxu2  ;;  %v2162_v38 = vrot.slane %v3600_v27, 5  ;;  %v1986_v17 = vrot.slane %v1984_v3, 4 }
 0x11a   : > { %v995_v44 = vadd.f32 %v968_v7, %v802_v42  ;;  %v1552_v45 = vpack.c.b16 %v1543_v30, %v1542_v6  ;;  %v1525_v42 = vrot.slane %v3309_v8, 5  ;;  %v1969_v27 = vsel %vm2944_vm4, %v1964_v22, %v1968_v2 }
 0x11b   : > { %v1432_v50 = vpop.f32.mrf.mxu0  ;;  %v1974_v7 = vshll.u32 %v3637_v56, 16  ;;  %v2164_v54 = vrot.slane %v2162_v38, 4  ;;  %v2007_v49 = vunpack.c.l.b16 %v1969_v27  ;;  %v2169_v27 = vrot.slane %v3640_v14, 5 }
 0x11c   : > { %v1526_v60 = vsel %vm3084_vm7, %v2622_v10, %v1525_v42 }
 0x11d   : > { %v1124_v9 = vpop.f32.mrf.mxu3  ;;  %v806_v12 = vpop.f32.mrf.mxu1  ;;  %v1976_v24 = vrot.slane %v1974_v7, 5  ;;  %v2016_v6 = vpack.c.b16 %v2007_v49, %v2006_v19  ;;  %v1544_v22 = vunpack.c.l.b16 %v1526_v60  ;;  %v2171_v3 = vrot.slane %v2169_v27, 4  ;;  %v2720_v49 = vld [vmem:[%s3333_s20 + $0x54] sm:$0xff] }
 0x11e   : > { %v1151_v31 = vadd.f32 %v1124_v9, %v995_v44  ;;  %2668 = vmatmul.msk.bf16.gmra.mxu2 %vm625_vm3, %v2718_v4  ;;  %v807_v8 = vadd.f32 %v806_v12, %v3412_v39  ;;  %v2163_v9 = vsel %vm3084_vm7, %v2685_v29, %v2162_v38  ;;  %v2166_v39 = vsel %vm3084_vm7, %v2164_v54, %v2165_v58 }
 0x11f   : > { %v1982_v12 = vrot.slane %v1980_v5, 5  ;;  %v2187_v30 = vunpack.c.l.b16 %v2166_v39  ;;  %v2686_v5 = vrot.slane %v3637_v56, 9  ;;  %v3810_v39 = vld [vmem:[#allocation2_spill] sm:$0xff] }
 0x120   : > { %v3633_v28 = vadd.f32 %v1432_v50, %v1151_v31  ;;  %v1527_v50 = vrot.slane %v1525_v42, 4 }
 0x121   : > { %v971_v46 = vpop.f32.mrf.mxu2  ;;  %v2170_v36 = vsel %vm3084_vm7, %v2686_v5, %v2169_v27 }
 0x122   : > { %2676 = vmatmul.msk.bf16.gmra.mxu3 %vm625_vm3, %v2015_v33  ;;  %v996_v43 = vadd.f32 %v971_v46, %v805_v55  ;;  %v2186_v33 = vunpack.c.l.b16 %v2163_v9  ;;  %v1529_v16 = vsel %vm3084_vm7, %v1527_v50, %v1528_v15  ;;  %v1987_v46 = vor.u32 %v1986_v17, %v1982_v12 }
 0x123   : > { %v1435_v26 = vpop.f32.mrf.mxu0  ;;  %v1545_v2 = vunpack.c.l.b16 %v1529_v16  ;;  %v2172_v15 = vrot.slane %v1669_v41, 5 }
 0x124   : > { %v1988_v42 = vrot.slane %v1987_v46, 4 }
 0x125   : > { %v1127_v18 = vpop.f32.mrf.mxu3  ;;  %v809_v52 = vpop.f32.mrf.mxu1  ;;  %v1553_v61 = vpack.c.b16 %v1545_v2, %v1544_v22  ;;  %v2173_v56 = vsel %vm3084_vm7, %v2171_v3, %v2172_v15 }
 0x126   : > { %2692 = vmatmul.msk.bf16.gmra.mxu0 %vm625_vm3, %v2195_v48  ;;  %v1152_v37 = vadd.f32 %v1127_v18, %v996_v43  ;;  %v1977_v48 = vor.u32 %v1976_v24, %v1973_v47  ;;  %v810_v43 = vadd.f32 %v809_v52, %v3340_v1  ;;  %v2188_v24 = vunpack.c.l.b16 %v2170_v36 }
 0x128   : > { %2629 = vmatmul.msk.bf16.gmra.mxu1 %vm625_vm3, %v1552_v45  ;;  %v3656_v44 = vadd.f32 %v1435_v26, %v1152_v37  ;;  %v2196_v45 = vpack.c.b16 %v2187_v30, %v2186_v33  ;;  %v1978_v40 = vrot.slane %v1977_v48, 4  ;;  %v1992_v37 = vrot.slane %v1990_v51, 5 }
 0x129   : > { %v973_v4 = vpop.f32.mrf.mxu2 }
 0x12a   : > { %v997_v0 = vadd.f32 %v973_v4, %v807_v8  ;;  %v1983_v52 = vsel %vm2944_vm4, %v1978_v40, %v1982_v12  ;;  %v1993_v58 = vsel %vm2944_vm4, %v1988_v42, %v1992_v37 }
 0x12b   : > { %v1437_v23 = vpop.f32.mrf.mxu0  ;;  %v2008_v10 = vunpack.c.l.b16 %v1983_v52  ;;  %v2009_v50 = vunpack.c.l.b16 %v1993_v58 }
 0x12d   : > { %v1129_v31 = vpop.f32.mrf.mxu3  ;;  %v811_v11 = vpop.f32.mrf.mxu1 }
 0x12e   : > { %v1153_v55 = vadd.f32 %v1129_v31, %v997_v0  ;;  %2669 = vmatmul.msk.bf16.gmra.mxu2 %vm625_vm3, %v2719_v62  ;;  %v812_v8 = vadd.f32 %v811_v11, %v3370_v57  ;;  %v2017_v57 = vpack.c.b16 %v2009_v50, %v2008_v10 }
 0x130   : > { %v3671_v26 = vadd.f32 %v1437_v23, %v1153_v55  ;;  %v2189_v23 = vunpack.c.l.b16 %v2173_v56  ;;  %v3811_v55 = vld [vmem:[#allocation3_spill] sm:$0xff] }
 0x131   : > { %v976_v38 = vpop.f32.mrf.mxu2 }
 0x132   : > { %2677 = vmatmul.msk.bf16.gmra.mxu3 %vm625_vm3, %v2016_v6  ;;  %v998_v18 = vadd.f32 %v976_v38, %v810_v43  ;;  %v2197_v31 = vpack.c.b16 %v2189_v23, %v2188_v24 }
 0x133   : > { %v1440_v29 = vpop.f32.mrf.mxu0 }
 0x135   : > { %v1132_v7 = vpop.f32.mrf.mxu3  ;;  %v814_v54 = vpop.f32.mrf.mxu1 }
 0x136   : > { %2693 = vmatmul.msk.bf16.gmra.mxu0 %vm625_vm3, %v2196_v45  ;;  %v1154_v1 = vadd.f32 %v1132_v7, %v998_v18  ;;  %v815_v12 = vadd.f32 %v814_v54, %v3810_v39 }
 0x138   : > { %2630 = vmatmul.msk.bf16.gmra.mxu1 %vm625_vm3, %v1553_v61  ;;  %v3683_v14 = vadd.f32 %v1440_v29, %v1154_v1  ;;  %v3707_v61 = vld [vmem:[%s3801_s4] ss:$0 sm:$0xff] }
 0x139   : > { %v978_v4 = vpop.f32.mrf.mxu2 }
 0x13a   : > { %v999_v19 = vadd.f32 %v978_v4, %v812_v8 }
 0x13b   : > { %v1442_v0 = vpop.f32.mrf.mxu0 }
 0x13d   : > { %v1134_v62 = vpop.f32.mrf.mxu3  ;;  %v816_v9 = vpop.f32.mrf.mxu1 }
 0x13e   : > { %v1155_v47 = vadd.f32 %v1134_v62, %v999_v19  ;;  %2670 = vmatmul.msk.bf16.gmra.mxu2 %vm625_vm3, %v2720_v49  ;;  %v817_v6 = vadd.f32 %v816_v9, %v3811_v55 }
 0x140   : > { %v3692_v17 = vadd.f32 %v1442_v0, %v1155_v47 }
 0x141   : > { %v981_v41 = vpop.f32.mrf.mxu2 }
 0x142   : > { %2678 = vmatmul.msk.bf16.gmra.mxu3 %vm625_vm3, %v2017_v57  ;;  %v1000_v53 = vadd.f32 %v981_v41, %v815_v12 }
 0x143   : > { %v1445_v33 = vpop.f32.mrf.mxu0 }
 0x145   : > { %v1137_v11 = vpop.f32.mrf.mxu3  ;;  %v1590_v60 = vpop.f32.mrf.mxu1 }
 0x146   : > { %2694 = vmatmul.msk.bf16.gmra.mxu0 %vm625_vm3, %v2197_v31  ;;  %v1156_v16 = vadd.f32 %v1137_v11, %v1000_v53  ;;  %v1630_v38 = vadd.f32 %v1590_v60, %v3456_v25  ;;  %v3712_v25 = vld [vmem:[%s3802_s5] ss:$0 sm:$0xff] }
 0x148   : > { %v3697_v30 = vadd.f32 %v1445_v33, %v1156_v16 }
 0x149   : > { %v983_v48 = vpop.f32.mrf.mxu2 }
 0x14a   : > { %v1001_v46 = vadd.f32 %v983_v48, %v817_v6 }
 0x14b   : > { %v1447_v51 = vpop.f32.mrf.mxu0 }
 0x14d   : > { %v1139_v43 = vpop.f32.mrf.mxu3  ;;  %v1592_v22 = vpop.f32.mrf.mxu1 }
 0x14e   : > { %v1157_v2 = vadd.f32 %v1139_v43, %v1001_v46  ;;  %v1631_v54 = vadd.f32 %v1592_v22, %v3470_v32 }
 0x150   : > { %v3702_v45 = vadd.f32 %v1447_v51, %v1157_v2 }
 0x151   : > { %v1746_v18 = vpop.f32.mrf.mxu2 }
 0x152   : > { %v1786_v40 = vadd.f32 %v1746_v18, %v1630_v38 }
 0x153   : > { %v2234_v29 = vpop.f32.mrf.mxu0 }
 0x155   : > { %v2054_v42 = vpop.f32.mrf.mxu3  ;;  %v1595_v37 = vpop.f32.mrf.mxu1 }
 0x156   : > { %v2094_v27 = vadd.f32 %v2054_v42, %v1786_v40  ;;  %v1632_v49 = vadd.f32 %v1595_v37, %v3493_v13 }
 0x158   : > { %v2274_v7 = vadd.f32 %v2234_v29, %v2094_v27 }
 0x159   : > { %v1748_v1 = vpop.f32.mrf.mxu2 }
 0x15a   : > { %v2294_v52 = vmul.f32 %v3707_v61, %v2274_v7  ;;  %v1787_v58 = vadd.f32 %v1748_v1, %v1631_v54 }
 0x15b   : > { %v2236_v5 = vpop.f32.mrf.mxu0 }
 0x15c   : > { %v2314_v3 = vadd.f32 %v3712_v25, %v2294_v52 }
 0x15d   : > { %v2056_v15 = vpop.f32.mrf.mxu3  ;;  %v1597_v8 = vpop.f32.mrf.mxu1 }
 0x15e   : > { %v2330_v4 = vmax.f32 %v2314_v3, 0.0  ;;  %v2095_v19 = vadd.f32 %v2056_v15, %v1787_v58  ;;  %v1633_v23 = vadd.f32 %v1597_v8, %v3516_v34 }
 0x160   : > { %2346 = vst [vmem:[%s3720_s11] sm:$0xff] %v2330_v4  ;;  %v2275_v32 = vadd.f32 %v2236_v5, %v2095_v19 }
 0x161   : > { %v1751_v10 = vpop.f32.mrf.mxu2 }
 0x162   : > { %v2295_v50 = vmul.f32 %v3707_v61, %v2275_v32  ;;  %v1788_v0 = vadd.f32 %v1751_v10, %v1632_v49 }
 0x163   : > { %v2239_v36 = vpop.f32.mrf.mxu0 }
 0x164   : > { %v2315_v56 = vadd.f32 %v3712_v25, %v2295_v50 }
 0x165   : > { %v2059_v62 = vpop.f32.mrf.mxu3  ;;  %v1600_v9 = vpop.f32.mrf.mxu1 }
 0x166   : > { %v2331_v47 = vmax.f32 %v2315_v56, 0.0  ;;  %v2096_v57 = vadd.f32 %v2059_v62, %v1788_v0  ;;  %v1634_v55 = vadd.f32 %v1600_v9, %v3536_v35 }
 0x168   : > { %2347 = vst [vmem:[%s3720_s11 + $0x8] sm:$0xff] %v2331_v47  ;;  %v2276_v24 = vadd.f32 %v2239_v36, %v2096_v57 }
 0x169   : > { %v1753_v39 = vpop.f32.mrf.mxu2 }
 0x16a   : > { %v2296_v12 = vmul.f32 %v3707_v61, %v2276_v24  ;;  %v1789_v13 = vadd.f32 %v1753_v39, %v1633_v23 }
 0x16b   : > { %v2241_v41 = vpop.f32.mrf.mxu0 }
 0x16c   : > { %v2316_v31 = vadd.f32 %v3712_v25, %v2296_v12 }
 0x16d   : > { %v2061_v53 = vpop.f32.mrf.mxu3  ;;  %v1602_v33 = vpop.f32.mrf.mxu1 }
 0x16e   : > { %v2332_v11 = vmax.f32 %v2316_v31, 0.0  ;;  %v2097_v60 = vadd.f32 %v2061_v53, %v1789_v13  ;;  %v1635_v40 = vadd.f32 %v1602_v33, %v3558_v59 }
 0x170   : > { %2348 = vst [vmem:[%s3720_s11 + $0x10] sm:$0xff] %v2332_v11  ;;  %v2277_v16 = vadd.f32 %v2241_v41, %v2097_v60 }
 0x171   : > { %v1756_v6 = vpop.f32.mrf.mxu2 }
 0x172   : > { %v2297_v48 = vmul.f32 %v3707_v61, %v2277_v16  ;;  %v1790_v34 = vadd.f32 %v1756_v6, %v1634_v55 }
 0x173   : > { %v2244_v46 = vpop.f32.mrf.mxu0 }
 0x174   : > { %v2317_v51 = vadd.f32 %v3712_v25, %v2297_v48 }
 0x175   : > { %v2064_v43 = vpop.f32.mrf.mxu3  ;;  %v1605_v22 = vpop.f32.mrf.mxu1 }
 0x176   : > { %v2333_v2 = vmax.f32 %v2317_v51, 0.0  ;;  %v2098_v38 = vadd.f32 %v2064_v43, %v1790_v34  ;;  %v1636_v5 = vadd.f32 %v1605_v22, %v3573_v63 }
 0x178   : > { %2349 = vst [vmem:[%s3720_s11 + $0x18] sm:$0xff] %v2333_v2  ;;  %v2278_v18 = vadd.f32 %v2244_v46, %v2098_v38 }
 0x179   : > { %v1758_v29 = vpop.f32.mrf.mxu2 }
 0x17a   : > { %v2298_v42 = vmul.f32 %v3707_v61, %v2278_v18  ;;  %v1791_v35 = vadd.f32 %v1758_v29, %v1635_v40 }
 0x17b   : > { %v2246_v37 = vpop.f32.mrf.mxu0 }
 0x17c   : > { %v2318_v27 = vadd.f32 %v3712_v25, %v2298_v42 }
 0x17d   : > { %v2066_v7 = vpop.f32.mrf.mxu3  ;;  %v1607_v54 = vpop.f32.mrf.mxu1 }
 0x17e   : > { %v2334_v1 = vmax.f32 %v2318_v27, 0.0  ;;  %v2099_v52 = vadd.f32 %v2066_v7, %v1791_v35  ;;  %v1637_v0 = vadd.f32 %v1607_v54, %v3597_v21 }
 0x180   : > { %2350 = vst [vmem:[%s3720_s11 + $0x20] sm:$0xff] %v2334_v1  ;;  %v2279_v58 = vadd.f32 %v2246_v37, %v2099_v52 }
 0x181   : > { %v1761_v3 = vpop.f32.mrf.mxu2 }
 0x182   : > { %v2299_v15 = vmul.f32 %v3707_v61, %v2279_v58  ;;  %v1792_v59 = vadd.f32 %v1761_v3, %v1636_v5 }
 0x183   : > { %v2249_v8 = vpop.f32.mrf.mxu0 }
 0x184   : > { %v2319_v4 = vadd.f32 %v3712_v25, %v2299_v15 }
 0x185   : > { %v2069_v19 = vpop.f32.mrf.mxu3  ;;  %v1610_v32 = vpop.f32.mrf.mxu1 }
 0x186   : > { %v2335_v49 = vmax.f32 %v2319_v4, 0.0  ;;  %v2100_v10 = vadd.f32 %v2069_v19, %v1792_v59  ;;  %v1638_v12 = vadd.f32 %v1610_v32, %v3619_v20 }
 0x188   : > { %2351 = vst [vmem:[%s3720_s11 + $0x28] sm:$0xff] %v2335_v49  ;;  %v2280_v50 = vadd.f32 %v2249_v8, %v2100_v10 }
 0x189   : > { %v1763_v36 = vpop.f32.mrf.mxu2 }
 0x18a   : > { %v2300_v56 = vmul.f32 %v3707_v61, %v2280_v50  ;;  %v1793_v63 = vadd.f32 %v1763_v36, %v1637_v0 }
 0x18b   : > { %v2251_v62 = vpop.f32.mrf.mxu0 }
 0x18c   : > { %v2320_v9 = vadd.f32 %v3712_v25, %v2300_v56 }
 0x18d   : > { %v2071_v47 = vpop.f32.mrf.mxu3  ;;  %v1612_v57 = vpop.f32.mrf.mxu1 }
 0x18e   : > { %v2336_v24 = vmax.f32 %v2320_v9, 0.0  ;;  %v2101_v23 = vadd.f32 %v2071_v47, %v1793_v63  ;;  %v1639_v6 = vadd.f32 %v1612_v57, %v3633_v28 }
 0x190   : > { %2352 = vst [vmem:[%s3720_s11 + $0x30] sm:$0xff] %v2336_v24  ;;  %v2281_v39 = vadd.f32 %v2251_v62, %v2101_v23 }
 0x191   : > { %v1766_v13 = vpop.f32.mrf.mxu2 }
 0x192   : > { %v2301_v41 = vmul.f32 %v3707_v61, %v2281_v39  ;;  %v1794_v21 = vadd.f32 %v1766_v13, %v1638_v12 }
 0x193   : > { %v2254_v31 = vpop.f32.mrf.mxu0 }
 0x194   : > { %v2321_v53 = vadd.f32 %v3712_v25, %v2301_v41 }
 0x195   : > { %v2074_v33 = vpop.f32.mrf.mxu3  ;;  %v1615_v11 = vpop.f32.mrf.mxu1 }
 0x196   : > { %v2337_v60 = vmax.f32 %v2321_v53, 0.0  ;;  %v2102_v16 = vadd.f32 %v2074_v33, %v1794_v21  ;;  %v1640_v40 = vadd.f32 %v1615_v11, %v3656_v44 }
 0x198   : > { %2353 = vst [vmem:[%s3720_s11 + $0x38] sm:$0xff] %v2337_v60  ;;  %v2282_v55 = vadd.f32 %v2254_v31, %v2102_v16 }
 0x199   : > { %v1768_v48 = vpop.f32.mrf.mxu2 }
 0x19a   : > { %v2302_v34 = vmul.f32 %v3707_v61, %v2282_v55  ;;  %v1795_v20 = vadd.f32 %v1768_v48, %v1639_v6 }
 0x19b   : > { %v2256_v46 = vpop.f32.mrf.mxu0 }
 0x19c   : > { %v2322_v51 = vadd.f32 %v3712_v25, %v2302_v34 }
 0x19d   : > { %v2076_v43 = vpop.f32.mrf.mxu3  ;;  %v1617_v22 = vpop.f32.mrf.mxu1 }
 0x19e   : > { %v2338_v2 = vmax.f32 %v2322_v51, 0.0  ;;  %v2103_v38 = vadd.f32 %v2076_v43, %v1795_v20  ;;  %v1641_v58 = vadd.f32 %v1617_v22, %v3671_v26 }
 0x1a0   : > { %2354 = vst [vmem:[%s3720_s11 + $0x40] sm:$0xff] %v2338_v2  ;;  %v2283_v18 = vadd.f32 %v2256_v46, %v2103_v38 }
 0x1a1   : > { %v1771_v29 = vpop.f32.mrf.mxu2 }
 0x1a2   : > { %v2303_v42 = vmul.f32 %v3707_v61, %v2283_v18  ;;  %v1796_v28 = vadd.f32 %v1771_v29, %v1640_v40 }
 0x1a3   : > { %v2259_v35 = vpop.f32.mrf.mxu0 }
 0x1a4   : > { %v2323_v37 = vadd.f32 %v3712_v25, %v2303_v42 }
 0x1a5   : > { %v2079_v27 = vpop.f32.mrf.mxu3  ;;  %v1620_v1 = vpop.f32.mrf.mxu1 }
 0x1a6   : > { %v2339_v7 = vmax.f32 %v2323_v37, 0.0  ;;  %v2104_v54 = vadd.f32 %v2079_v27, %v1796_v28  ;;  %v1642_v49 = vadd.f32 %v1620_v1, %v3683_v14 }
 0x1a8   : > { %2355 = vst [vmem:[%s3720_s11 + $0x48] sm:$0xff] %v2339_v7  ;;  %v2284_v52 = vadd.f32 %v2259_v35, %v2104_v54 }
 0x1a9   : > { %v1773_v5 = vpop.f32.mrf.mxu2 }
 0x1aa   : > { %v2304_v3 = vmul.f32 %v3707_v61, %v2284_v52  ;;  %v1797_v44 = vadd.f32 %v1773_v5, %v1641_v58 }
 0x1ab   : > { %v2261_v15 = vpop.f32.mrf.mxu0 }
 0x1ac   : > { %v2324_v59 = vadd.f32 %v3712_v25, %v2304_v3 }
 0x1ad   : > { %v2081_v8 = vpop.f32.mrf.mxu3  ;;  %v1622_v10 = vpop.f32.mrf.mxu1 }
 0x1ae   : > { %v2340_v4 = vmax.f32 %v2324_v59, 0.0  ;;  %v2105_v19 = vadd.f32 %v2081_v8, %v1797_v44  ;;  %v1643_v57 = vadd.f32 %v1622_v10, %v3692_v17 }
 0x1b0   : > { %2356 = vst [vmem:[%s3720_s11 + $0x50] sm:$0xff] %v2340_v4  ;;  %v2285_v32 = vadd.f32 %v2261_v15, %v2105_v19 }
 0x1b1   : > { %v1776_v50 = vpop.f32.mrf.mxu2 }
 0x1b2   : > { %v2305_v0 = vmul.f32 %v3707_v61, %v2285_v32  ;;  %v1798_v26 = vadd.f32 %v1776_v50, %v1642_v49 }
 0x1b3   : > { %v2264_v36 = vpop.f32.mrf.mxu0 }
 0x1b4   : > { %v2325_v56 = vadd.f32 %v3712_v25, %v2305_v0 }
 0x1b5   : > { %v2084_v63 = vpop.f32.mrf.mxu3  ;;  %v1625_v39 = vpop.f32.mrf.mxu1 }
 0x1b6   : > { %v2341_v62 = vmax.f32 %v2325_v56, 0.0  ;;  %v2106_v9 = vadd.f32 %v2084_v63, %v1798_v26  ;;  %v1644_v33 = vadd.f32 %v1625_v39, %v3697_v30 }
 0x1b8   : > { %2357 = vst [vmem:[%s3720_s11 + $0x58] sm:$0xff] %v2341_v62  ;;  %v2286_v47 = vadd.f32 %v2264_v36, %v2106_v9 }
 0x1b9   : > { %v1778_v24 = vpop.f32.mrf.mxu2 }
 0x1ba   : > { %v2306_v23 = vmul.f32 %v3707_v61, %v2286_v47  ;;  %v1799_v14 = vadd.f32 %v1778_v24, %v1643_v57 }
 0x1bb   : > { %v2266_v12 = vpop.f32.mrf.mxu0 }
 0x1bc   : > { %v2326_v13 = vadd.f32 %v3712_v25, %v2306_v23 }
 0x1bd   : > { %v2086_v41 = vpop.f32.mrf.mxu3  ;;  %v1627_v55 = vpop.f32.mrf.mxu1 }
 0x1be   : > { %v2342_v21 = vmax.f32 %v2326_v13, 0.0  ;;  %v2107_v31 = vadd.f32 %v2086_v41, %v1799_v14  ;;  %v1645_v51 = vadd.f32 %v1627_v55, %v3702_v45 }
 0x1c0   : > { %2358 = vst [vmem:[%s3720_s11 + $0x60] sm:$0xff] %v2342_v21  ;;  %v2287_v53 = vadd.f32 %v2266_v12, %v2107_v31 }
 0x1c1   : > { %v1781_v11 = vpop.f32.mrf.mxu2 }
 0x1c2   : > { %v2307_v60 = vmul.f32 %v3707_v61, %v2287_v53  ;;  %v1800_v17 = vadd.f32 %v1781_v11, %v1644_v33 }
 0x1c3   : > { %v2269_v6 = vpop.f32.mrf.mxu0 }
 0x1c4   : > { %v2327_v16 = vadd.f32 %v3712_v25, %v2307_v60 }
 0x1c5   : > { %v2089_v48 = vpop.f32.mrf.mxu3 }
 0x1c6   : > { %v2343_v34 = vmax.f32 %v2327_v16, 0.0  ;;  %v2108_v20 = vadd.f32 %v2089_v48, %v1800_v17 }
 0x1c8   : > { %2359 = vst [vmem:[%s3720_s11 + $0x68] sm:$0xff] %v2343_v34  ;;  %v2288_v46 = vadd.f32 %v2269_v6, %v2108_v20 }
 0x1c9   : > { %v1783_v43 = vpop.f32.mrf.mxu2 }
 0x1ca   : > { %v2308_v30 = vmul.f32 %v3707_v61, %v2288_v46  ;;  %v1801_v22 = vadd.f32 %v1783_v43, %v1645_v51 }
 0x1cb   : > { %v2271_v29 = vpop.f32.mrf.mxu0 }
 0x1cc   : > { %v2328_v2 = vadd.f32 %v3712_v25, %v2308_v30 }
 0x1cd   : > { %v2091_v38 = vpop.f32.mrf.mxu3 }
 0x1ce   : > { %v2344_v18 = vmax.f32 %v2328_v2, 0.0  ;;  %v2109_v40 = vadd.f32 %v2091_v38, %v1801_v22 }
 0x1d0   : > { %2360 = vst [vmem:[%s3720_s11 + $0x70] sm:$0xff] %v2344_v18  ;;  %v2289_v42 = vadd.f32 %v2271_v29, %v2109_v40 }
 0x1d2   : > { %v2309_v28 = vmul.f32 %v3707_v61, %v2289_v42 }
 0x1d4   : > { %v2329_v35 = vadd.f32 %v3712_v25, %v2309_v28 }
 0x1d6   : > { %v2345_v37 = vmax.f32 %v2329_v35, 0.0 }
 0x1d8   : > { %2361 = vst [vmem:[%s3720_s11 + $0x78] sm:$0xff] %v2345_v37 }
 0x1d9 PF: > { %s16_s25 = sadd.s32 1, %s2806_s25   ;;  %s3812_s21 = smov %s2798_s23 }
 0x1da   : > { %p13_p8 = scmp.ge.s32.totalorder %s16_s25, 6   ;;  %s3813_s22 = smov %s2802_s24 }
 0x1db   : > { %s3814_s23 = smov %s3817_s26  ;;  %s3815_s24 = smov %s3821_s27 }
 0x1dc   :  { %15 = sbr.rel (!%p13_p8) target bundleno = 3 (0x3), region = 80 }

</bundles_post_ra>
